<compile_context>
chip_gen: v5e
topology: v5e:2x2
jax: 0.10.0
libtpu: 0.0.40
codegen_flags: <defaults>
</compile_context>

<pallas_src>
import functools

import jax
import jax.numpy as jnp
from jax.experimental import pallas as pl
from jax.experimental.pallas import tpu as pltpu


H1 = 512
H2 = 256


def _disc_kernel(x_ref, w1_ref, w2_ref, b2_ref, w3_ref, b3_ref, o_ref):
    # x_ref : (D+1, block_b) bf16  -- batch on the lane axis, ones row appended
    # w1_ref: (512, D+1)     bf16  -- bias column folded in
    # w2_ref: (256, 512)     bf16,  b2_ref: (256, 1) f32
    # w3_ref: (1, 256)       bf16,  b3_ref: (1, 1)   f32
    # o_ref : (1, block_b)   f32

    # Layer 1: Linear(D -> 512) + LeakyReLU(0.2). Bias comes via the folded
    # ones-row/bias-column, so this is a single MXU op + one VPU max.
    h = jnp.dot(w1_ref[...], x_ref[...], preferred_element_type=jnp.float32)
    h = jnp.maximum(h, 0.2 * h)                               # (512, bb) f32

    # Layer 2: Linear(512 -> 256) + LeakyReLU(0.2).
    h = jnp.dot(w2_ref[...], h.astype(jnp.bfloat16),
                preferred_element_type=jnp.float32)
    h = h + b2_ref[...]
    h = jnp.maximum(h, 0.2 * h)                               # (256, bb) f32

    # Layer 3: Linear(256 -> 1) + Sigmoid, on the MXU (reuses the bf16 cast),
    # keeping the tiny reduction off the VPU/XLU path. Output is lane-dense.
    z = jnp.dot(w3_ref[...], h.astype(jnp.bfloat16),
                preferred_element_type=jnp.float32) + b3_ref[...]
    o_ref[...] = jax.nn.sigmoid(z).astype(o_ref.dtype)        # (1, bb)


@functools.partial(jax.jit, static_argnames=("block_b",))
def discriminator_forward(x, params, block_b=None):
    """x: (B, D) float32. params: PyTorch-layout weights/biases (f32)."""
    B, D = x.shape

    if block_b is None:
        # Two blocks (one per v7x TensorCore) when the batch is big enough,
        # otherwise a single block; always a multiple of 128 lanes, capped so
        # the double-buffered x tile stays far inside the VMEM limit.
        half = -(-B // 2)
        block_b = min(2048, max(128, -(-half // 128) * 128))

    num_blocks = pl.cdiv(B, block_b)
    B_pad = num_blocks * block_b
    if B_pad != B:
        x = jnp.pad(x, ((0, B_pad - B), (0, 0)))

    # Wrapper-side layout plumbing (cheap XLA ops at these sizes).
    # TODO(synk): at training-scale B*D, fold the transpose/cast into the
    # kernel (lax.dot_general on (B, D) x) to avoid an extra HBM pass over x.
    xT = x.T.astype(jnp.bfloat16)                              # (D, B_pad)
    ones = jnp.ones((1, B_pad), jnp.bfloat16)
    x_aug = jnp.concatenate([xT, ones], axis=0)                # (D+1, B_pad)

    w1_aug = jnp.concatenate(
        [params["w1"], params["b1"]], axis=1).astype(jnp.bfloat16)  # (512, D+1)
    w2 = params["w2"].astype(jnp.bfloat16)                     # (256, 512)
    b2 = params["b2"]                                          # (256, 1) f32
    w3 = params["w3"].astype(jnp.bfloat16)                     # (1, 256)
    b3 = params["b3"]                                          # (1, 1) f32

    full = lambda shape: pl.BlockSpec(shape, lambda i: (0, 0))

    out = pl.pallas_call(
        _disc_kernel,
        out_shape=jax.ShapeDtypeStruct((1, B_pad), jnp.float32),
        grid_spec=pltpu.PrefetchScalarGridSpec(
            num_scalar_prefetch=0,
            grid=(num_blocks,),
            in_specs=[
                pl.BlockSpec((D + 1, block_b), lambda i: (0, i)),  # x.T tile
                full((H1, D + 1)),
                full((H2, H1)), full((H2, 1)),
                full((1, H2)), full((1, 1)),
            ],
            out_specs=pl.BlockSpec((1, block_b), lambda i: (0, i)),
        ),
        compiler_params=pltpu.CompilerParams(
            dimension_semantics=("parallel",),
            vmem_limit_bytes=32 * 1024 * 1024,
        ),
    )(x_aug, w1_aug, w2, b2, w3, b3)

    return out.reshape(B_pad, 1)[:B]


def init_params(key, input_shape):
    """PyTorch-style Linear init (uniform +/- 1/sqrt(fan_in)), torch layout:
    weight (out, in), bias stored as an (out, 1) column."""
    ks = jax.random.split(key, 6)

    def linear(kw, kb, fan_in, fan_out):
        bound = 1.0 / float(fan_in) ** 0.5
        w = jax.random.uniform(kw, (fan_out, fan_in), jnp.float32, -bound, bound)
        b = jax.random.uniform(kb, (fan_out, 1), jnp.float32, -bound, bound)
        return w, b

    w1, b1 = linear(ks[0], ks[1], input_shape, H1)
    w2, b2 = linear(ks[2], ks[3], H1, H2)
    w3, b3 = linear(ks[4], ks[5], H2, 1)
    return {"w1": w1, "b1": b1, "w2": w2, "b2": b2, "w3": w3, "b3": b3}


def _reference(x, p):
    """Pure-JAX f32 reference matching the PyTorch module."""
    h = x @ p["w1"].T + p["b1"].T
    h = jnp.where(h > 0, h, 0.2 * h)
    h = h @ p["w2"].T + p["b2"].T
    h = jnp.where(h > 0, h, 0.2 * h)
    h = h @ p["w3"].T + p["b3"].T
    return jax.nn.sigmoid(h)


if __name__ == "__main__":
    key = jax.random.PRNGKey(0)
    k_x, k_p = jax.random.split(key)

    batch = 512        # auto block_b -> 256: 2 grid steps, one per v7x TC
    input_shape = 64   # flattened input feature size fed to the Discriminator

    x = jax.random.normal(k_x, (batch, input_shape), jnp.float32)
    params = init_params(k_p, input_shape)

    out = jax.block_until_ready(discriminator_forward(x, params))
    ref = _reference(x, params)

    assert out.shape == (batch, 1)
    # bf16 matmul operands -> loosened tolerance vs the f32 reference.
    assert jnp.allclose(out, ref, atol=2e-2, rtol=2e-2), "mismatch vs reference"

    print("KERNEL_OK")
</pallas_src>

<mosaic_0001>
module attributes {stable_mosaic.version = 11 : i64} {
  func.func @_disc_kernel(%arg0: i32, %arg1: memref<65x256xbf16, #tpu.memory_space<vmem>>, %arg2: memref<512x65xbf16, #tpu.memory_space<vmem>>, %arg3: memref<256x512xbf16, #tpu.memory_space<vmem>>, %arg4: memref<256x1xf32, #tpu.memory_space<vmem>>, %arg5: memref<1x256xbf16, #tpu.memory_space<vmem>>, %arg6: memref<1x1xf32, #tpu.memory_space<vmem>>, %arg7: memref<1x256xf32, #tpu.memory_space<vmem>>) attributes {dimension_semantics = [#tpu.dimension_semantics<parallel>], iteration_bounds = array<i64: 2>, scalar_prefetch = 0 : i64, scratch_operands = 0 : i64, tpu.core_type = #tpu.core_type<tc>, window_params = [{transform_indices = @transform_0, window_bounds = array<i64: 65, 256>}, {pipeline_mode = #tpu.pipeline_mode<synchronous>, transform_indices = @transform_1, window_bounds = array<i64: 512, 65>}, {pipeline_mode = #tpu.pipeline_mode<synchronous>, transform_indices = @transform_2, window_bounds = array<i64: 256, 512>}, {pipeline_mode = #tpu.pipeline_mode<synchronous>, transform_indices = @transform_3, window_bounds = array<i64: 256, 1>}, {pipeline_mode = #tpu.pipeline_mode<synchronous>, transform_indices = @transform_4, window_bounds = array<i64: 1, 256>}, {pipeline_mode = #tpu.pipeline_mode<synchronous>, transform_indices = @transform_5, window_bounds = array<i64: 1, 1>}, {transform_indices = @transform_6, window_bounds = array<i64: 1, 256>}]} {
    %c0 = arith.constant 0 : index
    %c0_0 = arith.constant 0 : index
    %0 = vector.load %arg2[%c0, %c0_0] : memref<512x65xbf16, #tpu.memory_space<vmem>>, vector<512x65xbf16>
    %c0_1 = arith.constant 0 : index
    %c0_2 = arith.constant 0 : index
    %1 = vector.load %arg1[%c0_1, %c0_2] : memref<65x256xbf16, #tpu.memory_space<vmem>>, vector<65x256xbf16>
    %cst = arith.constant dense<0.000000e+00> : vector<512x256xf32>
    %2 = tpu.matmul %0, %1, %cst {dimension_numbers = #tpu.dot_dimension_numbers<[1], [0], [0], [1], [0, 0, 1, 1], [], []>} : vector<512x65xbf16>, vector<65x256xbf16>, vector<512x256xf32> -> vector<512x256xf32>
    %cst_3 = arith.constant 2.000000e-01 : f32
    %3 = vector.broadcast %cst_3 : f32 to vector<512x256xf32>
    %4 = arith.mulf %3, %2 : vector<512x256xf32>
    %5 = arith.maximumf %2, %4 : vector<512x256xf32>
    %c0_4 = arith.constant 0 : index
    %c0_5 = arith.constant 0 : index
    %6 = vector.load %arg3[%c0_4, %c0_5] : memref<256x512xbf16, #tpu.memory_space<vmem>>, vector<256x512xbf16>
    %7 = arith.truncf %5 : vector<512x256xf32> to vector<512x256xbf16>
    %cst_6 = arith.constant dense<0.000000e+00> : vector<256x256xf32>
    %8 = tpu.matmul %6, %7, %cst_6 {dimension_numbers = #tpu.dot_dimension_numbers<[1], [0], [0], [1], [0, 0, 1, 1], [], []>} : vector<256x512xbf16>, vector<512x256xbf16>, vector<256x256xf32> -> vector<256x256xf32>
    %c0_7 = arith.constant 0 : index
    %c0_8 = arith.constant 0 : index
    %9 = vector.load %arg4[%c0_7, %c0_8] : memref<256x1xf32, #tpu.memory_space<vmem>>, vector<256x1xf32>
    %10 = vector.broadcast %9 : vector<256x1xf32> to vector<256x256xf32>
    %11 = arith.addf %8, %10 : vector<256x256xf32>
    %cst_9 = arith.constant 2.000000e-01 : f32
    %12 = vector.broadcast %cst_9 : f32 to vector<256x256xf32>
    %13 = arith.mulf %12, %11 : vector<256x256xf32>
    %14 = arith.maximumf %11, %13 : vector<256x256xf32>
    %c0_10 = arith.constant 0 : index
    %c0_11 = arith.constant 0 : index
    %15 = vector.load %arg5[%c0_10, %c0_11] : memref<1x256xbf16, #tpu.memory_space<vmem>>, vector<1x256xbf16>
    %16 = arith.truncf %14 : vector<256x256xf32> to vector<256x256xbf16>
    %cst_12 = arith.constant dense<0.000000e+00> : vector<1x256xf32>
    %17 = tpu.matmul %15, %16, %cst_12 {dimension_numbers = #tpu.dot_dimension_numbers<[1], [0], [0], [1], [0, 0, 1, 1], [], []>} : vector<1x256xbf16>, vector<256x256xbf16>, vector<1x256xf32> -> vector<1x256xf32>
    %c0_13 = arith.constant 0 : index
    %c0_14 = arith.constant 0 : index
    %18 = vector.load %arg6[%c0_13, %c0_14] : memref<1x1xf32, #tpu.memory_space<vmem>>, vector<1x1xf32>
    %19 = vector.broadcast %18 : vector<1x1xf32> to vector<1x256xf32>
    %20 = arith.addf %17, %19 : vector<1x256xf32>
    %21 = arith.negf %20 : vector<1x256xf32>
    %22 = math.exp %21 : vector<1x256xf32>
    %cst_15 = arith.constant 1.000000e+00 : f32
    %23 = vector.broadcast %cst_15 : f32 to vector<1x256xf32>
    %24 = arith.addf %23, %22 : vector<1x256xf32>
    %25 = arith.divf %23, %24 : vector<1x256xf32>
    %c0_16 = arith.constant 0 : index
    %c0_17 = arith.constant 0 : index
    %26 = vector.load %arg7[%c0_16, %c0_17] : memref<1x256xf32, #tpu.memory_space<vmem>>, vector<1x256xf32>
    tpu.vector_store %arg7[%c0_16, %c0_17], %25 {strides = array<i32>} : memref<1x256xf32, #tpu.memory_space<vmem>>, vector<1x256xf32>,
    return
  }
  func.func @transform_0(%arg0: i32) -> (i32, i32) {
    %c0_i32 = arith.constant 0 : i32
    %c0_i32_0 = arith.constant 0 : i32
    return %c0_i32, %arg0 : i32, i32
  }
  func.func @transform_1(%arg0: i32) -> (i32, i32) {
    %c0_i32 = arith.constant 0 : i32
    %c0_i32_0 = arith.constant 0 : i32
    %c0_i32_1 = arith.constant 0 : i32
    return %c0_i32, %c0_i32_0 : i32, i32
  }
  func.func @transform_2(%arg0: i32) -> (i32, i32) {
    %c0_i32 = arith.constant 0 : i32
    %c0_i32_0 = arith.constant 0 : i32
    %c0_i32_1 = arith.constant 0 : i32
    return %c0_i32, %c0_i32_0 : i32, i32
  }
  func.func @transform_3(%arg0: i32) -> (i32, i32) {
    %c0_i32 = arith.constant 0 : i32
    %c0_i32_0 = arith.constant 0 : i32
    %c0_i32_1 = arith.constant 0 : i32
    return %c0_i32, %c0_i32_0 : i32, i32
  }
  func.func @transform_4(%arg0: i32) -> (i32, i32) {
    %c0_i32 = arith.constant 0 : i32
    %c0_i32_0 = arith.constant 0 : i32
    %c0_i32_1 = arith.constant 0 : i32
    return %c0_i32, %c0_i32_0 : i32, i32
  }
  func.func @transform_5(%arg0: i32) -> (i32, i32) {
    %c0_i32 = arith.constant 0 : i32
    %c0_i32_0 = arith.constant 0 : i32
    %c0_i32_1 = arith.constant 0 : i32
    return %c0_i32, %c0_i32_0 : i32, i32
  }
  func.func @transform_6(%arg0: i32) -> (i32, i32) {
    %c0_i32 = arith.constant 0 : i32
    %c0_i32_0 = arith.constant 0 : i32
    return %c0_i32, %arg0 : i32, i32
  }
}

</mosaic_0001>

<bundles_post_ra>
// kernel: discriminator_forward.1
= control target key start
LH: loop header
LB: loop body
LE: loop exit
PB: predicated region body
PF: predicated region fallthrough
CT: control target
= control target key end

     0   :  { %s5860_s0 = inlined_call_operand.vmem [shape: bf16[65,512], index: 0, kind: input, shape index: {}]   ;;  %s5861_s1 = inlined_call_operand.vmem [shape: bf16[512,65], index: 1, kind: input, shape index: {}]   ;;  %s5862_s2 = inlined_call_operand.vmem [shape: bf16[256,512], index: 2, kind: input, shape index: {}]   ;;  %s5863_s3 = inlined_call_operand.vmem [shape: f32[256,1], index: 3, kind: input, shape index: {}]   ;;  %s5864_s4 = inlined_call_operand.vmem [shape: bf16[1,256], index: 4, kind: input, shape index: {}]   ;;  %s5865_s5 = inlined_call_operand.<no memory space> [shape: f32[1,1], index: 5, kind: input, shape index: {}]   ;;  %s5866_s6 = inlined_call_operand.hbm [shape: f32[1,512], index: 6, kind: output, shape index: {}]  }
   0x1   :  { %v11_v0 = vstv %s5865_s5 }
   0x2   :  { %12 = vst [vmem:[#allocation2] sm:$0x1] %v11_v0 }
   0x3   :  { %13 = vsyncpa [#allocation5], 0 }
   0x4   :  { %15 = vsyncpa [#allocation5 + $0x1], 0  ;;  %s3762_s23 = smov 0   ;;  %s3764_s24 = smov 0  }
   0x5   :  { %s3766_s25 = smov 0   ;;  %s3768_s26 = smov 0  }
   0x6 LB: > { %s3007_s5 = sadd.s32 4294967295, %s3721_s26   ;;  %s3008_s27 = sadd.s32 4294967294, %s3721_s26   ;;  %s3721_s26 = sphi %s3768_s26, %s6104_s26   ;;  %s3717_s25 = sphi %s3766_s25, %s6103_s25   ;;  %s3713_s24 = sphi %s3764_s24, %s6102_s24   ;;  %s3709_s23 = sphi %s3762_s23, %s6101_s23  }
   0x7   : > { %s3785_s28 = sadd.s32 1, %s3721_s26   ;;  %s28_s29 = sadd.s32 1, %s3717_s25 }
   0x8   : > { %s25_s30 = ssub.s32 %s3721_s26, %s3785_s28  ;;  %p35_p0 = scmp.ne.s32.totalorder %s3717_s25, %s3713_s24 }
   0x9   : > { %p26_p1 = scmp.eq.s32.totalorder %s25_s30, 0  ;;  %p36_p2 = scmp.eq.s32.totalorder %s3721_s26, 0 }
   0xa   : > { %p170_p3 = scmp.eq.s32.totalorder %s3007_s5, 1  ;;  %p175_p4 = scmp.ne.s32.totalorder %s3713_s24, %s3709_s23 }
   0xb   : > { %s3798_s7 = scalar_select %p26_p1, %s3717_s25, %s28_s29  }
   0xc   : > { %p37_p5 = por %p36_p2, %p35_p0  ;;  %p3800_p6 = por %p170_p3, %p35_p0 }
   0xd   : > { %p176_p7 = scmp.eq.s32.totalorder %s3008_s27, 1  ;;  %p3010_p9 = scmp.ge.s32.totalorder %s3721_s26, 2 }
   0xf   : > { %p3804_p8 = por %p176_p7, %p175_p4  ;;  %207 = sbr.rel (%p3010_p9) target bundleno = 33 (0x21), region = 36 }
  0x14   : > { %210 = sbr.rel (!%p37_p5) target bundleno = 33 (0x21), region = 40  ;;  %s212_s10 = sand.u32 (%p37_p5), 1, %s3717_s25  }
  0x15   : > { %s3501_s11 = sshll.u32 (%p37_p5), %s3721_s26, 3  ;;  %s3606_s12 = smul.u32 (%p37_p5), 72, %s212_s10 }
  0x16   : > { %s217_s15 = scalar_lea.vmem (%p37_p5), %s5860_s0, %s3501_s11 }
  0x17   : > { %v262_v1 = vld [vmem:[%s217_s15] sm:$0xff] (%p37_p5)  ;;  %v264_v2 = vld [vmem:[%s217_s15 + $0x10] sm:$0xff] (%p37_p5)  ;;  %s214_s16 = scalar_lea.vmem (%p37_p5), [#allocation3], %s3606_s12 }
  0x18   : > { %v266_v3 = vld [vmem:[%s217_s15 + $0x20] sm:$0xff] (%p37_p5)  ;;  %263 = vst [vmem:[%s214_s16] sm:$0xff] (%p37_p5), %v262_v1  ;;  %v268_v4 = vld [vmem:[%s217_s15 + $0x30] sm:$0xff] (%p37_p5) }
  0x19   : > { %265 = vst [vmem:[%s214_s16 + $0x8] sm:$0xff] %v264_v2  ;;  %v270_v5 = vld [vmem:[%s217_s15 + $0x40] sm:$0xff]  ;;  %v272_v6 = vld [vmem:[%s217_s15 + $0x50] sm:$0xff] }
  0x1a   : > { %267 = vst [vmem:[%s214_s16 + $0x10] sm:$0xff] %v266_v3  ;;  %v274_v7 = vld [vmem:[%s217_s15 + $0x60] sm:$0xff]  ;;  %v276_v8 = vld [vmem:[%s217_s15 + $0x70] sm:$0xff] }
  0x1b   : > { %269 = vst [vmem:[%s214_s16 + $0x18] sm:$0xff] %v268_v4  ;;  %v278_v9 = vld [vmem:[%s217_s15 + $0x80] sm:$0xff] }
  0x1c   : > { %271 = vst [vmem:[%s214_s16 + $0x20] sm:$0xff] %v270_v5 }
  0x1d   : > { %273 = vst [vmem:[%s214_s16 + $0x28] sm:$0xff] %v272_v6 }
  0x1e   : > { %275 = vst [vmem:[%s214_s16 + $0x30] sm:$0xff] %v274_v7 }
  0x1f   : > { %277 = vst [vmem:[%s214_s16 + $0x38] sm:$0xff] %v276_v8 }
  0x20   : > { %279 = vst [vmem:[%s214_s16 + $0x40] sm:$0xff] %v278_v9 }
  0x21 PF: > { %p3013_p10 = scmp.ge.s32.totalorder %s3721_s26, 1  ;;  %p284_p11 = scmp.lt.s32.totalorder %s3721_s26, 3 }
  0x23   : > { %p285_p12 = pnand %p3013_p10, %p284_p11 }
  0x25   : > { %288 = sbr.rel (%p285_p12) target bundleno = 1582 (0x62e), region = 78 }
  0x2a   : > { %s3819_s17 = sand.u32 1, %s3713_s24   ;;  %v3723_v10 = vmov 0   ;;  %vm698_vm0 = vcmask 1040384   ;;  %v3502_v28 = vld [vmem:[%s5861_s1] sm:$0xff]  ;;  %vm601_vm1 = vcmask 531456   ;;  %v3503_v29 = vld [vmem:[%s5861_s1 + $0x8] sm:$0xff] }
  0x2b   : > { %s3607_s18 = smul.u32 72, %s3819_s17  ;;  %3649 = vset.pattern.permute.xlu1 %v3723_v10  ;;  %3650 = vset.pattern.permute.xlu2 %v3723_v10  ;;  %v700_v13 = vsel %vm698_vm0, 65535, %v3723_v10  ;;  %v3504_v30 = vld [vmem:[%s5861_s1 + $0x10] sm:$0xff]  ;;  %v3505_v31 = vld [vmem:[%s5861_s1 + $0x18] sm:$0xff]  ;;  %v3506_v41 = vld [vmem:[%s5861_s1 + $0x20] sm:$0xff]  ;;  %s3014_s15 = sshll.u32 %s3819_s17, 1 }
  0x2c   : > { %3648 = vset.pattern.permute.xlu0 %v3723_v10  ;;  %v3507_v48 = vld [vmem:[%s5861_s1 + $0x28] sm:$0xff]  ;;  %v3508_v49 = vld [vmem:[%s5861_s1 + $0x30] sm:$0xff]  ;;  %v3509_v50 = vld [vmem:[%s5861_s1 + $0x38] sm:$0xff]  ;;  %s3498_s16 = sshll.u32 %s3007_s5, 1  ;;  %s319_s5 = scalar_lea.vmem [#allocation4], %s3014_s15 }
  0x2d   : > { %s3822_s19 = scalar_lea.vmem [#allocation3], %s3607_s18  ;;  %v3510_v51 = vld [vmem:[%s5861_s1 + $0x40] sm:$0xff]  ;;  %v3511_v59 = vld [vmem:[%s5861_s1 + $0x48] sm:$0xff]  ;;  %v3512_v3 = vld [vmem:[%s5861_s1 + $0x50] sm:$0xff]  ;;  %s2938_s20 = scalar_lea.hbm %s5866_s6, %s3498_s16 }
  0x2e   : > { %v395_v11 = vld [vmem:[%s3822_s19 + $0x40] sm:$0x11]  ;;  %v3169_v15 = vld [vmem:[%s3822_s19 + $0x30] sm:$0xf]  ;;  %v3541_v16 = vld [vmem:[%s3822_s19 + $0x34] sm:$0xf0] }
  0x2f   : > { %v581_v12 = vunpack.c.l.b16 %v395_v11  ;;  %v3170_v18 = vor.u32 %v3541_v16, %v3169_v15  ;;  %v3161_v19 = vld [vmem:[%s3822_s19 + $0x20] sm:$0xf]  ;;  %v3539_v20 = vld [vmem:[%s3822_s19 + $0x24] sm:$0xf0]  ;;  %v3153_v22 = vld [vmem:[%s3822_s19 + $0x10] sm:$0xf]  ;;  %v582_v32 = vunpack.c.h.b16 %v395_v11 }
  0x30   : > { %v3162_v21 = vor.u32 %v3539_v20, %v3161_v19  ;;  %v3537_v23 = vld [vmem:[%s3822_s19 + $0x14] sm:$0xf0]  ;;  %v3145_v25 = vld [vmem:[%s3822_s19] sm:$0xf]  ;;  %v3535_v26 = vld [vmem:[%s3822_s19 + $0x4] sm:$0xf0] }
  0x31   : > { %v591_v14 = vpack.c.b16 %v581_v12, %v581_v12  ;;  %v3154_v24 = vor.u32 %v3537_v23, %v3153_v22  ;;  %v3146_v27 = vor.u32 %v3535_v26, %v3145_v25  ;;  %v592_v33 = vpack.c.b16 %v582_v32, %v582_v32  ;;  %v3540_v34 = vld [vmem:[%s3822_s19 + $0x34] sm:$0xf]  ;;  %v3171_v35 = vld [vmem:[%s3822_s19 + $0x38] sm:$0xf0]  ;;  %v3538_v38 = vld [vmem:[%s3822_s19 + $0x24] sm:$0xf] }
  0x32   : > { %v3174_v37 = vor.u32 %v3540_v34, %v3171_v35  ;;  %v3163_v39 = vld [vmem:[%s3822_s19 + $0x28] sm:$0xf0]  ;;  %v3536_v42 = vld [vmem:[%s3822_s19 + $0x14] sm:$0xf]  ;;  %v3155_v43 = vld [vmem:[%s3822_s19 + $0x18] sm:$0xf0] }
  0x33   : > { %v702_v17 = vand.u32 %v700_v13, %v591_v14  ;;  %v705_v36 = vand.u32 %v700_v13, %v592_v33  ;;  %v3166_v40 = vor.u32 %v3538_v38, %v3163_v39  ;;  %v3534_v44 = vld [vmem:[%s3822_s19 + $0x4] sm:$0xf]  ;;  %v3158_v45 = vor.u32 %v3536_v42, %v3155_v43  ;;  %v3147_v46 = vld [vmem:[%s3822_s19 + $0x8] sm:$0xf0]  ;;  %s2940_s21 = sshll.u32 %s319_s5, 4  ;;  %s2942_s22 = sshll.u32 %s2938_s20, 4  ;;  %s2941_s21 = int_to_ptr.vmem [resolvable:$true] %s2940_s21  ;;  %s2943_s22 = int_to_ptr.hbm [resolvable:$true] %s2942_s22 }
  0x34   : > { %v3150_v47 = vor.u32 %v3534_v44, %v3147_v46  ;;  %v3513_v11 = vld [vmem:[%s5861_s1 + $0x58] sm:$0xff]  ;;  %v3514_v19 = vld [vmem:[%s5861_s1 + $0x60] sm:$0xff]  ;;  %v3916_v23 = vld [vmem:[%s5861_s1 + $0x68] sm:$0xff]  ;;  %s2928_s27 = scalar_lea.sflag [#allocation5], %s3819_s17  ;;  %s3673_s29 = sshra.s32 %s2943_s22, 4  ;;  %s3674_s29 = int_to_ptr.hbm [resolvable:$true] %s3673_s29 }
  0x35   : > { %710 = vmatpush.bf16.msra.mxu0 %v702_v17  ;;  %879 = vmatpush.bf16.msra.mxu1 %v705_v36  ;;  %v3940_v33 = vld [vmem:[%s5861_s1 + $0x78] sm:$0xff]  ;;  %s3675_s30 = scalar_lea.hbm %s3674_s29, 2  ;;  %s3679_s12 = scalar_lea.hbm %s5866_s6, 4 }
  0x36   : > { %p3676_p13 = scmp.ne.s32.totalorder %s3674_s29, %s3675_s30  ;;  %p3680_p2 = scmp.lt.s32.totalorder %s3674_s29, %s5866_s6 }
  0x37   : > { %p3681_p3 = scmp.lt.s32.totalorder %s3679_s12, %s3675_s30 }
  0x38   : > { %p3677_p0 = pnand %p3676_p13, %p3800_p6 }
  0x39   : > { %711 = vmatpush.bf16.msra.mxu0 %v3170_v18  ;;  %880 = vmatpush.bf16.msra.mxu1 %v3174_v37  ;;  %p3682_p4 = por %p3681_p3, %p3680_p2 }
  0x3a   : > { %p3678_p1 = pneg %p3677_p0 }
  0x3c   : > { %p3683_p5 = pnand %p3682_p4, %p3678_p1 }
  0x3d   : > { %712 = vmatpush.bf16.msra.mxu0 %v3162_v21  ;;  %881 = vmatpush.bf16.msra.mxu1 %v3166_v40 }
  0x41   : > { %713 = vmatpush.bf16.msra.mxu0 %v3154_v24  ;;  %882 = vmatpush.bf16.msra.mxu1 %v3158_v45 }
  0x45   : > { %714 = vmatpush.bf16.msra.mxu0 %v3146_v27  ;;  %883 = vmatpush.bf16.msra.mxu1 %v3150_v47 }
  0x48   : > { %3175 = vmatmul.msk.bf16.vlgmr.msra.gmra.mxu0 %vm601_vm1, %v3502_v28  ;;  %3207 = vmatmul.msk.bf16.vlgmr.msra.gmra.mxu1 %vm601_vm1, %v3502_v28  ;;  %v3928_v28 = vld [vmem:[%s5861_s1 + $0x70] sm:$0xff] }
  0x58   : > { %3176 = vmatmul.msk.bf16.gmra.mxu0 %vm601_vm1, %v3503_v29  ;;  %3208 = vmatmul.msk.bf16.gmra.mxu1 %vm601_vm1, %v3503_v29 }
  0x68   : > { %3177 = vmatmul.msk.bf16.gmra.mxu0 %vm601_vm1, %v3504_v30  ;;  %3209 = vmatmul.msk.bf16.gmra.mxu1 %vm601_vm1, %v3504_v30 }
  0x78   : > { %3178 = vmatmul.msk.bf16.gmra.mxu0 %vm601_vm1, %v3505_v31  ;;  %3210 = vmatmul.msk.bf16.gmra.mxu1 %vm601_vm1, %v3505_v31 }
  0x88   : > { %3179 = vmatmul.msk.bf16.gmra.mxu0 %vm601_vm1, %v3506_v41  ;;  %3211 = vmatmul.msk.bf16.gmra.mxu1 %vm601_vm1, %v3506_v41 }
  0x98   : > { %3180 = vmatmul.msk.bf16.gmra.mxu0 %vm601_vm1, %v3507_v48  ;;  %3212 = vmatmul.msk.bf16.gmra.mxu1 %vm601_vm1, %v3507_v48 }
  0xa8   : > { %3181 = vmatmul.msk.bf16.gmra.mxu0 %vm601_vm1, %v3508_v49  ;;  %3213 = vmatmul.msk.bf16.gmra.mxu1 %vm601_vm1, %v3508_v49  ;;  %v3952_v49 = vld [vmem:[%s5861_s1 + $0x80] sm:$0xff] }
  0xb8   : > { %3182 = vmatmul.msk.bf16.gmra.mxu0 %vm601_vm1, %v3509_v50  ;;  %3214 = vmatmul.msk.bf16.gmra.mxu1 %vm601_vm1, %v3509_v50 }
  0xc5   : > { %v716_v52 = vpop.f32.mrf.mxu0  ;;  %v3910_v22 = vpop.f32.mrf.mxu1 }
  0xc6   : > { %v1045_v53 = vmul.f32 0.2, %v716_v52 }
  0xc8   : > { %3183 = vmatmul.msk.bf16.gmra.mxu0 %vm601_vm1, %v3510_v51  ;;  %v1173_v56 = vmax.f32 %v716_v52, %v1045_v53  ;;  %3215 = vmatmul.msk.bf16.gmra.mxu1 %vm601_vm1, %v3510_v51 }
  0xcd   : > { %v718_v54 = vpop.f32.mrf.mxu0  ;;  %v3918_v25 = vpop.f32.mrf.mxu1 }
  0xce   : > { %v1047_v55 = vmul.f32 0.2, %v718_v54 }
  0xd0   : > { %v1175_v57 = vmax.f32 %v718_v54, %v1047_v55 }
  0xd2   : > { %v3883_v58 = vpack.c.bf16 %v1175_v57, %v1173_v56 }
  0xd5   : > { %v721_v60 = vpop.f32.mrf.mxu0  ;;  %v3922_v27 = vpop.f32.mrf.mxu1 }
  0xd6   : > { %v1049_v61 = vmul.f32 0.2, %v721_v60 }
  0xd8   : > { %3184 = vmatmul.msk.bf16.gmra.mxu0 %vm601_vm1, %v3511_v59  ;;  %v1177_v0 = vmax.f32 %v721_v60, %v1049_v61  ;;  %3216 = vmatmul.msk.bf16.gmra.mxu1 %vm601_vm1, %v3511_v59 }
  0xdd   : > { %v723_v62 = vpop.f32.mrf.mxu0  ;;  %v3930_v30 = vpop.f32.mrf.mxu1 }
  0xde   : > { %v1051_v63 = vmul.f32 0.2, %v723_v62 }
  0xe0   : > { %v1179_v1 = vmax.f32 %v723_v62, %v1051_v63 }
  0xe2   : > { %v3890_v2 = vpack.c.bf16 %v1179_v1, %v1177_v0 }
  0xe5   : > { %v726_v4 = vpop.f32.mrf.mxu0  ;;  %v3934_v32 = vpop.f32.mrf.mxu1 }
  0xe6   : > { %v1053_v5 = vmul.f32 0.2, %v726_v4 }
  0xe8   : > { %3185 = vmatmul.msk.bf16.gmra.mxu0 %vm601_vm1, %v3512_v3  ;;  %v1181_v8 = vmax.f32 %v726_v4, %v1053_v5  ;;  %3217 = vmatmul.msk.bf16.gmra.mxu1 %vm601_vm1, %v3512_v3 }
  0xed   : > { %v728_v6 = vpop.f32.mrf.mxu0  ;;  %v3942_v35 = vpop.f32.mrf.mxu1 }
  0xee   : > { %v1055_v7 = vmul.f32 0.2, %v728_v6 }
  0xf0   : > { %v1183_v9 = vmax.f32 %v728_v6, %v1055_v7  ;;  %v3967_v6 = vld [vmem:[%s5861_s1 + $0x88] sm:$0xff] }
  0xf2   : > { %v3897_v10 = vpack.c.bf16 %v1183_v9, %v1181_v8 }
  0xf5   : > { %v731_v12 = vpop.f32.mrf.mxu0  ;;  %v3946_v40 = vpop.f32.mrf.mxu1 }
  0xf6   : > { %v1057_v13 = vmul.f32 0.2, %v731_v12 }
  0xf8   : > { %3186 = vmatmul.msk.bf16.gmra.mxu0 %vm601_vm1, %v3513_v11  ;;  %v1185_v16 = vmax.f32 %v731_v12, %v1057_v13  ;;  %3218 = vmatmul.msk.bf16.gmra.mxu1 %vm601_vm1, %v3513_v11  ;;  %v3241_v11 = vld [vmem:[%s5862_s2] sm:$0xf]  ;;  %v3544_v12 = vld [vmem:[%s5862_s2 + $0xc] sm:$0xf0] }
  0xfd   : > { %v733_v14 = vpop.f32.mrf.mxu0  ;;  %v3954_v54 = vpop.f32.mrf.mxu1 }
  0xfe   : > { %v1059_v15 = vmul.f32 0.2, %v733_v14 }
 0x100   : > { %v1187_v17 = vmax.f32 %v733_v14, %v1059_v15  ;;  %v3981_v15 = vor.u32 %v3544_v12, %v3241_v11  ;;  %v1460_v12 = vld [vmem:[%s5863_s3 + $0xf8] sm:$0xff] }
 0x102   : > { %v3904_v18 = vpack.c.bf16 %v1187_v17, %v1185_v16 }
 0x105   : > { %v736_v20 = vpop.f32.mrf.mxu0  ;;  %v3958_v1 = vpop.f32.mrf.mxu1 }
 0x106   : > { %v1061_v55 = vmul.f32 0.2, %v736_v20 }
 0x108   : > { %3187 = vmatmul.msk.bf16.gmra.mxu0 %vm601_vm1, %v3514_v19  ;;  %v1189_v60 = vmax.f32 %v736_v20, %v1061_v55  ;;  %3219 = vmatmul.msk.bf16.gmra.mxu1 %vm601_vm1, %v3514_v19 }
 0x10d   : > { %v738_v21 = vpop.f32.mrf.mxu0  ;;  %v3969_v8 = vpop.f32.mrf.mxu1 }
 0x10e   : > { %v1063_v51 = vmul.f32 0.2, %v738_v21 }
 0x110   : > { %v1191_v59 = vmax.f32 %v738_v21, %v1063_v51  ;;  %v3257_v21 = vld [vmem:[%s5862_s2 + $0x20] sm:$0xf] }
 0x112   : > { %v1373_v0 = vpack.c.bf16 %v1191_v59, %v1189_v60 }
 0x115   : > { %v741_v24 = vpop.f32.mrf.mxu0  ;;  %v3983_v16 = vpop.f32.mrf.mxu1 }
 0x116   : > { %v1065_v47 = vmul.f32 0.2, %v741_v24 }
 0x118   : > { %3188 = vmatmul.msk.bf16.gmra.mxu0 %vm601_vm1, %v3916_v23  ;;  %v1193_v56 = vmax.f32 %v741_v24, %v1065_v47  ;;  %3220 = vmatmul.msk.bf16.gmra.mxu1 %vm601_vm1, %v3916_v23  ;;  %v3548_v23 = vld [vmem:[%s5862_s2 + $0x2c] sm:$0xf0] }
 0x11d   : > { %v743_v26 = vpop.f32.mrf.mxu0  ;;  %v3996_v20 = vpop.f32.mrf.mxu1 }
 0x11e   : > { %v1067_v44 = vmul.f32 0.2, %v743_v26  ;;  %v1068_v11 = vmul.f32 0.2, %v3996_v20 }
 0x120   : > { %v1195_v53 = vmax.f32 %v743_v26, %v1067_v44 }
 0x122   : > { %v1375_v57 = vpack.c.bf16 %v1195_v53, %v1193_v56 }
 0x125   : > { %v746_v29 = vpop.f32.mrf.mxu0 }
 0x126   : > { %v1069_v41 = vmul.f32 0.2, %v746_v29 }
 0x128   : > { %3189 = vmatmul.msk.bf16.gmra.mxu0 %vm601_vm1, %v3928_v28  ;;  %v1197_v48 = vmax.f32 %v746_v29, %v1069_v41  ;;  %v4006_v29 = vor.u32 %v3548_v23, %v3257_v21  ;;  %3221 = vmatmul.msk.bf16.gmra.mxu1 %vm601_vm1, %v3928_v28  ;;  %v3552_v28 = vld [vmem:[%s5862_s2 + $0x4c] sm:$0xf0]  ;;  %v1064_v21 = vmul.f32 0.2, %v3969_v8  ;;  %v1196_v23 = vmax.f32 %v3996_v20, %v1068_v11 }
 0x12d   : > { %v748_v31 = vpop.f32.mrf.mxu0 }
 0x12e   : > { %v1071_v38 = vmul.f32 0.2, %v748_v31 }
 0x130   : > { %v1199_v46 = vmax.f32 %v748_v31, %v1071_v38  ;;  %v915_v31 = vpop.f32.mrf.mxu1  ;;  %v4016_v38 = vld [vmem:[%s5861_s1 + $0x98] sm:$0xff] }
 0x132   : > { %v1377_v52 = vpack.c.bf16 %v1199_v46, %v1197_v48 }
 0x135   : > { %v751_v34 = vpop.f32.mrf.mxu0 }
 0x136   : > { %v1073_v36 = vmul.f32 0.2, %v751_v34 }
 0x138   : > { %3190 = vmatmul.msk.bf16.gmra.mxu0 %vm601_vm1, %v3940_v33  ;;  %v1201_v42 = vmax.f32 %v751_v34, %v1073_v36  ;;  %v917_v41 = vpop.f32.mrf.mxu1  ;;  %3222 = vmatmul.msk.bf16.gmra.mxu1 %vm601_vm1, %v3940_v33  ;;  %v1459_v33 = vld [vmem:[%s5863_s3 + $0xf0] sm:$0xff] }
 0x139   : > { %1613 = vperm.xlu1 %3649, %v1459_v33  }
 0x13d   : > { %v753_v37 = vpop.f32.mrf.mxu0 }
 0x13e   : > { %v1075_v39 = vmul.f32 0.2, %v753_v37 }
 0x140   : > { %v1203_v43 = vmax.f32 %v753_v37, %v1075_v39  ;;  %v920_v47 = vpop.f32.mrf.mxu1 }
 0x141   : > { %v1074_v53 = vmul.f32 0.2, %v920_v47  ;;  %1618 = vperm.xlu1 %3649, %v1460_v12   ;;  %v3564_v12 = vld [vmem:[%s5862_s2 + $0xac] sm:$0xf0] }
 0x142   : > { %v1379_v45 = vpack.c.bf16 %v1203_v43, %v1201_v42  ;;  %v3273_v43 = vld [vmem:[%s5862_s2 + $0x40] sm:$0xf] }
 0x143   : > { %v4026_v46 = vor.u32 %v3552_v28, %v3273_v43  ;;  %v1202_v59 = vmax.f32 %v920_v47, %v1074_v53  ;;  %v1056_v43 = vmul.f32 0.2, %v3942_v35  ;;  %v1050_v28 = vmul.f32 0.2, %v3922_v27  ;;  %v1443_v53 = vld [vmem:[%s5863_s3 + $0x70] sm:$0xff] }
 0x144   : > { %1941 = vmatpush.bf16.msra.mxu2 %v1379_v45  ;;  %1533 = vperm.xlu0 %3648, %v1443_v53  }
 0x145   : > { %v756_v50 = vpop.f32.mrf.mxu0  ;;  %v1178_v33 = vmax.f32 %v3922_v27, %v1050_v28 }
 0x146   : > { %v1077_v61 = vmul.f32 0.2, %v756_v50 }
 0x148   : > { %3191 = vmatmul.msk.bf16.gmra.mxu0 %vm601_vm1, %v3952_v49  ;;  %1942 = vmatpush.bf16.msra.mxu2 %v1377_v52  ;;  %v1205_v3 = vmax.f32 %v756_v50, %v1077_v61  ;;  %v4036_v52 = vld [vmem:[%s5861_s1 + $0xa0] sm:$0xff]  ;;  %v922_v56 = vpop.f32.mrf.mxu1  ;;  %v1072_v61 = vmul.f32 0.2, %v917_v41 }
 0x149   : > { %v1076_v60 = vmul.f32 0.2, %v922_v56  ;;  %3223 = vmatmul.msk.bf16.gmra.mxu1 %vm601_vm1, %v3952_v49  ;;  %v1192_v49 = vmax.f32 %v3969_v8, %v1064_v21  ;;  %v1435_v21 = vld [vmem:[%s5863_s3 + $0x30] sm:$0xff] }
 0x14c   : > { %1943 = vmatpush.bf16.msra.mxu2 %v1375_v57  ;;  %v1070_v57 = vmul.f32 0.2, %v915_v31 }
 0x14d   : > { %v758_v62 = vpop.f32.mrf.mxu0 }
 0x14e   : > { %v1079_v63 = vmul.f32 0.2, %v758_v62 }
 0x150   : > { %1944 = vmatpush.bf16.msra.mxu2 %v1373_v0  ;;  %v1207_v4 = vmax.f32 %v758_v62, %v1079_v63  ;;  %v1204_v62 = vmax.f32 %v922_v56, %v1076_v60  ;;  %v1066_v63 = vmul.f32 0.2, %v3983_v16  ;;  %v1198_v0 = vmax.f32 %v915_v31, %v1070_v57 }
 0x151   : > { %v1184_v56 = vmax.f32 %v3942_v35, %v1056_v43  ;;  %v1046_v60 = vmul.f32 0.2, %v3910_v22 }
 0x152   : > { %v3961_v5 = vpack.c.bf16 %v1207_v4, %v1205_v3  ;;  %v3289_v3 = vld [vmem:[%s5862_s2 + $0x60] sm:$0xf]  ;;  %v3556_v4 = vld [vmem:[%s5862_s2 + $0x6c] sm:$0xf0] }
 0x154   : > { %1945 = vmatpush.bf16.msra.mxu2 %v3904_v18  ;;  %v3994_v18 = vld [vmem:[%s5861_s1 + $0x90] sm:$0xff] }
 0x155   : > { %v761_v7 = vpop.f32.mrf.mxu0 }
 0x156   : > { %v1081_v9 = vmul.f32 0.2, %v761_v7 }
 0x158   : > { %3192 = vmatmul.msk.bf16.gmra.mxu0 %vm601_vm1, %v3967_v6  ;;  %1946 = vmatpush.bf16.msra.mxu2 %v3897_v10  ;;  %v1209_v17 = vmax.f32 %v761_v7, %v1081_v9  ;;  %v1380_v7 = vpack.c.bf16 %v1204_v62, %v1202_v59  ;;  %v1048_v62 = vmul.f32 0.2, %v3918_v25 }
 0x159   : > { %3224 = vmatmul.msk.bf16.gmra.mxu1 %vm601_vm1, %v3967_v6  ;;  %v1444_v6 = vld [vmem:[%s5863_s3 + $0x78] sm:$0xff] }
 0x15a   : > { %2297 = vmatpush.bf16.msrb.mxu0 %v1380_v7  ;;  %1538 = vperm.xlu0 %3648, %v1444_v6   ;;  %v1432_v6 = vld [vmem:[%s5863_s3 + $0x18] sm:$0xff] }
 0x15c   : > { %1947 = vmatpush.bf16.msra.mxu2 %v3890_v2 }
 0x15d   : > { %v763_v13 = vpop.f32.mrf.mxu0 }
 0x15e   : > { %v1083_v14 = vmul.f32 0.2, %v763_v13 }
 0x160   : > { %1948 = vmatpush.bf16.msra.mxu2 %v3883_v58  ;;  %v1211_v10 = vmax.f32 %v763_v13, %v1083_v14  ;;  %v1200_v13 = vmax.f32 %v917_v41, %v1072_v61  ;;  %v4058_v14 = vor.u32 %v3556_v4, %v3289_v3  ;;  %v1176_v4 = vmax.f32 %v3918_v25, %v1048_v62  ;;  %v3321_v25 = vld [vmem:[%s5862_s2 + $0xa0] sm:$0xf] }
 0x161   : > { %v4214_v62 = vld [vmem:[%s5861_s1 + $0xc0] sm:$0xff] }
 0x162   : > { %v3988_v2 = vpack.c.bf16 %v1211_v10, %v1209_v17  ;;  %v4060_v17 = vpop.f32.mrf.mxu1  ;;  %v1062_v10 = vmul.f32 0.2, %v3958_v1 }
 0x163   : > { %1949 = vmatmul.bf16.vlgmr.msra.gmra.mxu2 %v3981_v15 }
 0x165   : > { %v766_v19 = vpop.f32.mrf.mxu0 }
 0x166   : > { %v1085_v58 = vmul.f32 0.2, %v766_v19 }
 0x168   : > { %3193 = vmatmul.msk.bf16.gmra.mxu0 %vm601_vm1, %v3994_v18  ;;  %v1213_v34 = vmax.f32 %v766_v19, %v1085_v58  ;;  %v1194_v19 = vmax.f32 %v3983_v16, %v1066_v63  ;;  %v1378_v58 = vpack.c.bf16 %v1200_v13, %v1198_v0  ;;  %v4074_v16 = vld [vmem:[%s5861_s1 + $0xa8] sm:$0xff]  ;;  %v1174_v63 = vmax.f32 %v3910_v22, %v1046_v60  ;;  %v4127_v0 = vld [vmem:[%s5861_s1 + $0xb0] sm:$0xff] }
 0x169   : > { %v1442_v22 = vld [vmem:[%s5863_s3 + $0x68] sm:$0xff]  ;;  %3225 = vmatmul.msk.bf16.gmra.mxu1 %vm601_vm1, %v3994_v18  ;;  %v1452_v18 = vld [vmem:[%s5863_s3 + $0xb8] sm:$0xff] }
 0x16a   : > { %2298 = vmatpush.bf16.msrb.mxu0 %v1378_v58  ;;  %v1376_v31 = vpack.c.bf16 %v1196_v23, %v1194_v19  ;;  %v4080_v20 = vpop.f32.mrf.mxu1  ;;  %v1366_v11 = vpack.c.bf16 %v1176_v4, %v1174_v63  ;;  %v1439_v58 = vld [vmem:[%s5863_s3 + $0x50] sm:$0xff]  ;;  %v1457_v23 = vld [vmem:[%s5863_s3 + $0xe0] sm:$0xff] }
 0x16b   : > { %1603 = vperm.xlu0 %3648, %v1457_v23  }
 0x16d   : > { %v768_v24 = vpop.f32.mrf.mxu0 }
 0x16e   : > { %v1087_v26 = vmul.f32 0.2, %v768_v24  ;;  %2299 = vmatpush.bf16.msrb.mxu0 %v1376_v31 }
 0x170   : > { %v1215_v36 = vmax.f32 %v768_v24, %v1087_v26  ;;  %v1058_v24 = vmul.f32 0.2, %v3946_v40  ;;  %v1190_v26 = vmax.f32 %v3958_v1, %v1062_v10  ;;  %v1458_v1 = vld [vmem:[%s5863_s3 + $0xe8] sm:$0xff]  ;;  %v4151_v10 = vor.u32 %v3564_v12, %v3321_v25 }
 0x171   : > { %1608 = vperm.xlu1 %3649, %v1458_v1   ;;  %v3568_v1 = vld [vmem:[%s5862_s2 + $0xcc] sm:$0xf0] }
 0x172   : > { %v4010_v37 = vpack.c.bf16 %v1215_v36, %v1213_v34  ;;  %v1060_v36 = vmul.f32 0.2, %v3954_v54  ;;  %v1186_v41 = vmax.f32 %v3946_v40, %v1058_v24  ;;  %v3305_v40 = vld [vmem:[%s5862_s2 + $0x80] sm:$0xf]  ;;  %v4114_v59 = vpop.f32.mrf.mxu1  ;;  %v4170_v24 = vld [vmem:[%s5861_s1 + $0xb8] sm:$0xff] }
 0x173   : > { %1954 = vmatmul.bf16.gmra.mxu2 %v4006_v29 }
 0x174   : > { %v1188_v8 = vmax.f32 %v3954_v54, %v1060_v36  ;;  %v1441_v54 = vld [vmem:[%s5863_s3 + $0x60] sm:$0xff]  ;;  %v1456_v36 = vld [vmem:[%s5863_s3 + $0xd8] sm:$0xff] }
 0x175   : > { %v771_v39 = vpop.f32.mrf.mxu0  ;;  %1523 = vperm.xlu2 %3650, %v1441_v54   ;;  %v1449_v54 = vld [vmem:[%s5863_s3 + $0xa0] sm:$0xff] }
 0x176   : > { %v1089_v42 = vmul.f32 0.2, %v771_v39  ;;  %v1372_v47 = vpack.c.bf16 %v1188_v8, %v1186_v41  ;;  %v3337_v41 = vld [vmem:[%s5862_s2 + $0xc0] sm:$0xf] }
 0x177   : > { %v4191_v28 = vor.u32 %v3568_v1, %v3337_v41 }
 0x178   : > { %3194 = vmatmul.msk.bf16.gmra.mxu0 %vm601_vm1, %v4016_v38  ;;  %v1217_v48 = vmax.f32 %v771_v39, %v1089_v42  ;;  %v1054_v39 = vmul.f32 0.2, %v3934_v32  ;;  %v1374_v42 = vpack.c.bf16 %v1192_v49, %v1190_v26  ;;  %v1440_v49 = vld [vmem:[%s5863_s3 + $0x58] sm:$0xff] }
 0x179   : > { %1518 = vperm.xlu0 %3648, %v1440_v49   ;;  %3226 = vmatmul.msk.bf16.gmra.mxu1 %vm601_vm1, %v4016_v38  ;;  %v1451_v49 = vld [vmem:[%s5863_s3 + $0xb0] sm:$0xff] }
 0x17a   : > { %2300 = vmatpush.bf16.msrb.mxu0 %v1374_v42  ;;  %v4132_v7 = vpop.f32.mrf.mxu1 }
 0x17d   : > { %v773_v44 = vpop.f32.mrf.mxu0  ;;  %1528 = vperm.xlu2 %3650, %v1442_v22  }
 0x17e   : > { %v1091_v45 = vmul.f32 0.2, %v773_v44  ;;  %2301 = vmatpush.bf16.msrb.mxu0 %v1372_v47 }
 0x180   : > { %v1219_v50 = vmax.f32 %v773_v44, %v1091_v45  ;;  %v1182_v44 = vmax.f32 %v3934_v32, %v1054_v39  ;;  %v3560_v45 = vld [vmem:[%s5862_s2 + $0x8c] sm:$0xf0] }
 0x181   : > { %v1455_v32 = vld [vmem:[%s5863_s3 + $0xd0] sm:$0xff]  ;;  %v4112_v57 = vor.u32 %v3560_v45, %v3305_v40 }
 0x182   : > { %v4030_v51 = vpack.c.bf16 %v1219_v50, %v1217_v48  ;;  %v1052_v50 = vmul.f32 0.2, %v3930_v30  ;;  %v1370_v61 = vpack.c.bf16 %v1184_v56, %v1182_v44  ;;  %1593 = vperm.xlu1 %3649, %v1455_v32   ;;  %v4153_v19 = vpop.f32.mrf.mxu1  ;;  %v1437_v32 = vld [vmem:[%s5863_s3 + $0x40] sm:$0xff] }
 0x183   : > { %1959 = vmatmul.bf16.gmra.mxu2 %v4026_v46  ;;  %1503 = vperm.xlu0 %3648, %v1437_v32  }
 0x184   : > { %2302 = vmatpush.bf16.msrb.mxu0 %v1370_v61  ;;  %v1180_v35 = vmax.f32 %v3930_v30, %v1052_v50  ;;  %v1438_v30 = vld [vmem:[%s5863_s3 + $0x48] sm:$0xff]  ;;  %v1453_v50 = vld [vmem:[%s5863_s3 + $0xc0] sm:$0xff] }
 0x185   : > { %v4038_v55 = vpop.f32.mrf.mxu0  ;;  %1513 = vperm.xlu2 %3650, %v1439_v58   ;;  %v3572_v58 = vld [vmem:[%s5862_s2 + $0xec] sm:$0xf0] }
 0x186   : > { %v1368_v27 = vpack.c.bf16 %v1180_v35, %v1178_v33  ;;  %v1093_v38 = vmul.f32 0.2, %v4038_v55 }
 0x188   : > { %3195 = vmatmul.msk.bf16.gmra.mxu0 %vm601_vm1, %v4036_v52  ;;  %v1221_v25 = vmax.f32 %v4038_v55, %v1093_v38  ;;  %v1429_v55 = vld [vmem:[%s5863_s3] sm:$0xff] }
 0x189   : > { %2303 = vmatpush.bf16.msrb.mxu0 %v1368_v27  ;;  %3227 = vmatmul.msk.bf16.gmra.mxu1 %vm601_vm1, %v4036_v52  ;;  %v1450_v52 = vld [vmem:[%s5863_s3 + $0xa8] sm:$0xff] }
 0x18a   : > { %1508 = vperm.xlu1 %3649, %v1438_v30   ;;  %v4172_v31 = vpop.f32.mrf.mxu1 }
 0x18d   : > { %v4052_v9 = vpop.f32.mrf.mxu0  ;;  %2304 = vmatpush.bf16.msrb.mxu0 %v1366_v11  ;;  %1598 = vperm.xlu2 %3650, %v1456_v36  }
 0x18e   : > { %v1095_v63 = vmul.f32 0.2, %v4052_v9 }
 0x192   : > { %1493 = vperm.xlu1 %3649, %v1435_v21   ;;  %v4193_v44 = vpop.f32.mrf.mxu1 }
 0x193   : > { %1964 = vmatmul.bf16.gmra.mxu2 %v4058_v14 }
 0x195   : > { %v4076_v34 = vpop.f32.mrf.mxu0  ;;  %1583 = vperm.xlu2 %3650, %v1453_v50   ;;  %v3243_v50 = vld [vmem:[%s5862_s2 + $0x10] sm:$0xf0] }
 0x196   : > { %v1097_v33 = vmul.f32 0.2, %v4076_v34 }
 0x198   : > { %3196 = vmatmul.msk.bf16.gmra.mxu0 %vm601_vm1, %v4074_v16  ;;  %v1225_v30 = vmax.f32 %v4076_v34, %v1097_v33  ;;  %v1223_v34 = vmax.f32 %v4052_v9, %v1095_v63  ;;  %v1433_v9 = vld [vmem:[%s5863_s3 + $0x20] sm:$0xff] }
 0x199   : > { %3228 = vmatmul.msk.bf16.gmra.mxu1 %vm601_vm1, %v4074_v16  ;;  %v1430_v16 = vld [vmem:[%s5863_s3 + $0x8] sm:$0xff] }
 0x19a   : > { %1578 = vperm.xlu1 %3649, %v1452_v18   ;;  %v4218_v22 = vpop.f32.mrf.mxu1 }
 0x19d   : > { %v4099_v48 = vpop.f32.mrf.mxu0 }
 0x19e   : > { %v1099_v53 = vmul.f32 0.2, %v4099_v48 }
 0x1a0   : > { %v1227_v4 = vmax.f32 %v4099_v48, %v1099_v53  ;;  %v1454_v48 = vld [vmem:[%s5863_s3 + $0xc8] sm:$0xff]  ;;  %v1447_v53 = vld [vmem:[%s5863_s3 + $0x90] sm:$0xff] }
 0x1a1   : > { %1588 = vperm.xlu0 %3648, %v1454_v48   ;;  %v3546_v48 = vld [vmem:[%s5862_s2 + $0x24] sm:$0xf] }
 0x1a2   : > { %1563 = vperm.xlu1 %3649, %v1449_v54   ;;  %v1391_v11 = vpack.c.bf16 %v1227_v4, %v1225_v30  ;;  %v4249_v18 = vpop.f32.mrf.mxu1  ;;  %v3385_v30 = vld [vmem:[%s5862_s2 + $0x120] sm:$0xf] }
 0x1a3   : > { %1969 = vmatmul.bf16.gmra.mxu2 %v4112_v57 }
 0x1a5   : > { %v4129_v3 = vpop.f32.mrf.mxu0 }
 0x1a6   : > { %v1101_v40 = vmul.f32 0.2, %v4129_v3 }
 0x1a8   : > { %3197 = vmatmul.msk.bf16.gmra.mxu0 %vm601_vm1, %v4127_v0  ;;  %v1229_v61 = vmax.f32 %v4129_v3, %v1101_v40  ;;  %v1436_v3 = vld [vmem:[%s5863_s3 + $0x38] sm:$0xff]  ;;  %v3369_v40 = vld [vmem:[%s5862_s2 + $0x100] sm:$0xf] }
 0x1a9   : > { %1498 = vperm.xlu2 %3650, %v1436_v3   ;;  %1573 = vperm.xlu0 %3648, %v1451_v49   ;;  %v3580_v3 = vld [vmem:[%s5862_s2 + $0x12c] sm:$0xf0] }
 0x1aa   : > { %1478 = vperm.xlu1 %3649, %v1432_v6   ;;  %3229 = vmatmul.msk.bf16.gmra.mxu1 %vm601_vm1, %v4127_v0  ;;  %v3401_v0 = vld [vmem:[%s5862_s2 + $0x140] sm:$0xf] }
 0x1ad   : > { %v788_v13 = vpop.f32.mrf.mxu0 }
 0x1ae   : > { %v1103_v43 = vmul.f32 0.2, %v788_v13 }
 0x1b0   : > { %v1231_v60 = vmax.f32 %v788_v13, %v1103_v43  ;;  %v3353_v13 = vld [vmem:[%s5862_s2 + $0xe0] sm:$0xf] }
 0x1b1   : > { %v4247_v36 = vor.u32 %v3572_v58, %v3353_v13  ;;  %1483 = vperm.xlu2 %3650, %v1433_v9   ;;  %v4336_v13 = vor.u32 %v3580_v3, %v3385_v30 }
 0x1b2   : > { %v1393_v27 = vpack.c.bf16 %v1231_v60, %v1229_v61  ;;  %1463 = vperm.xlu1 %3649, %v1429_v55   ;;  %v4349_v55 = vld [vmem:[%s5861_s1 + $0xd8] sm:$0xff] }
 0x1b3   : > { %1974 = vmatmul.bf16.gmra.mxu2 %v4151_v10  ;;  %5932 = vst [vmem:[#allocation9_spill] sm:$0xff] %v4336_v13 }
 0x1b5   : > { %v791_v26 = vpop.f32.mrf.mxu0 }
 0x1b6   : > { %v1105_v39 = vmul.f32 0.2, %v791_v26 }
 0x1b8   : > { %3198 = vmatmul.msk.bf16.gmra.mxu0 %vm601_vm1, %v4170_v24  ;;  %v1233_v45 = vmax.f32 %v791_v26, %v1105_v39  ;;  %v1389_v26 = vpack.c.bf16 %v1223_v34, %v1221_v25 }
 0x1b9   : > { %1568 = vperm.xlu2 %3650, %v1450_v52  }
 0x1ba   : > { %3230 = vmatmul.msk.bf16.gmra.mxu1 %vm601_vm1, %v4170_v24 }
 0x1bd   : > { %v793_v42 = vpop.f32.mrf.mxu0 }
 0x1be   : > { %v1107_v8 = vmul.f32 0.2, %v793_v42 }
 0x1c0   : > { %v1235_v47 = vmax.f32 %v793_v42, %v1107_v8  ;;  %v4263_v42 = vld [vmem:[%s5861_s1 + $0xc8] sm:$0xff]  ;;  %v4265_v8 = vpop.f32.mrf.mxu1 }
 0x1c1   : > { %1553 = vperm.xlu2 %3650, %v1447_v53  }
 0x1c2   : > { %v1395_v56 = vpack.c.bf16 %v1235_v47, %v1233_v45  ;;  %v3576_v45 = vld [vmem:[%s5862_s2 + $0x10c] sm:$0xf0] }
 0x1c3   : > { %1979 = vmatmul.bf16.gmra.mxu2 %v4191_v28 }
 0x1c4   : > { %2030 = vmatpush.bf16.msra.mxu3 %v1395_v56  ;;  %v4292_v56 = vor.u32 %v3576_v45, %v3369_v40  ;;  %v3275_v40 = vld [vmem:[%s5862_s2 + $0x50] sm:$0xf0] }
 0x1c5   : > { %v796_v35 = vpop.f32.mrf.mxu0 }
 0x1c6   : > { %v1109_v12 = vmul.f32 0.2, %v796_v35 }
 0x1c8   : > { %3199 = vmatmul.msk.bf16.gmra.mxu0 %vm601_vm1, %v4214_v62  ;;  %2031 = vmatpush.bf16.msra.mxu3 %v1393_v27  ;;  %v1237_v39 = vmax.f32 %v796_v35, %v1109_v12  ;;  %v4296_v33 = vpop.f32.mrf.mxu1  ;;  %v4311_v27 = vld [vmem:[%s5861_s1 + $0xd0] sm:$0xff] }
 0x1c9   : > { %1468 = vperm.xlu2 %3650, %v1430_v16  }
 0x1ca   : > { %3231 = vmatmul.msk.bf16.gmra.mxu1 %vm601_vm1, %v4214_v62  ;;  %v1092_v62 = vmul.f32 0.2, %v4218_v22 }
 0x1cc   : > { %2032 = vmatpush.bf16.msra.mxu3 %v1391_v11  ;;  %v3259_v11 = vld [vmem:[%s5862_s2 + $0x30] sm:$0xf0] }
 0x1cd   : > { %v798_v21 = vpop.f32.mrf.mxu0  ;;  %v4338_v58 = vor.u32 %v3546_v48, %v3259_v11 }
 0x1ce   : > { %v1111_v23 = vmul.f32 0.2, %v798_v21 }
 0x1d0   : > { %2033 = vmatpush.bf16.msra.mxu3 %v1389_v26  ;;  %v1239_v41 = vmax.f32 %v798_v21, %v1111_v23 }
 0x1d2   : > { %v4256_v1 = vpack.c.bf16 %v1239_v41, %v1237_v39 }
 0x1d3   : > { %1984 = vmatmul.bf16.gmra.mxu2 %v4247_v36 }
 0x1d4   : > { %2034 = vmatpush.bf16.msra.mxu3 %v4030_v51  ;;  %v1434_v51 = vld [vmem:[%s5863_s3 + $0x28] sm:$0xff] }
 0x1d5   : > { %v801_v43 = vpop.f32.mrf.mxu0  ;;  %1488 = vperm.xlu0 %3648, %v1434_v51   ;;  %v3550_v51 = vld [vmem:[%s5862_s2 + $0x44] sm:$0xf] }
 0x1d6   : > { %v1113_v47 = vmul.f32 0.2, %v801_v43 }
 0x1d8   : > { %3200 = vmatmul.msk.bf16.gmra.mxu0 %vm601_vm1, %v4263_v42  ;;  %2035 = vmatpush.bf16.msra.mxu3 %v4010_v37  ;;  %v3542_v37 = vld [vmem:[%s5862_s2 + $0x4] sm:$0xf]  ;;  %v1241_v61 = vmax.f32 %v801_v43, %v1113_v47  ;;  %v3584_v43 = vld [vmem:[%s5862_s2 + $0x14c] sm:$0xf0] }
 0x1d9   : > { %v4294_v60 = vor.u32 %v3542_v37, %v3243_v50  ;;  %v4369_v50 = vor.u32 %v3584_v43, %v3401_v0  ;;  %v3554_v0 = vld [vmem:[%s5862_s2 + $0x64] sm:$0xf]  ;;  %v3291_v43 = vld [vmem:[%s5862_s2 + $0x70] sm:$0xf0] }
 0x1db   : > { %5934 = vst [vmem:[#allocation11_spill] sm:$0xff] %v4369_v50 }
 0x1dc   : > { %2036 = vmatpush.bf16.msra.mxu3 %v3988_v2  ;;  %v1431_v2 = vld [vmem:[%s5863_s3 + $0x10] sm:$0xff] }
 0x1dd   : > { %v803_v54 = vpop.f32.mrf.mxu0  ;;  %1473 = vperm.xlu0 %3648, %v1431_v2  }
 0x1de   : > { %v1115_v32 = vmul.f32 0.2, %v803_v54 }
 0x1e0   : > { %2037 = vmatpush.bf16.msra.mxu3 %v3961_v5  ;;  %v1243_v35 = vmax.f32 %v803_v54, %v1115_v32  ;;  %v4315_v5 = vpop.f32.mrf.mxu1  ;;  %v4371_v54 = vor.u32 %v3550_v51, %v3275_v40  ;;  %3232 = vmatmul.msk.bf16.gmra.mxu1 %vm601_vm1, %v4263_v42 }
 0x1e1   : > { %v1100_v40 = vmul.f32 0.2, %v4315_v5 }
 0x1e2   : > { %v4304_v63 = vpack.c.bf16 %v1243_v35, %v1241_v61  ;;  %v4382_v35 = vld [vmem:[%s5861_s1 + $0xe0] sm:$0xff] }
 0x1e3   : > { %1989 = vmatmul.bf16.gmra.mxu2 %v4292_v56  ;;  %2038 = vmatmul.bf16.vlgmr.msra.gmra.mxu3 %v4294_v60 }
 0x1e5   : > { %v806_v4 = vpop.f32.mrf.mxu0 }
 0x1e6   : > { %v4313_v38 = vpop.f32.mrf.mxu2  ;;  %v1117_v6 = vmul.f32 0.2, %v806_v4 }
 0x1e7   : > { %5930 = vst [vmem:[#allocation7_spill] sm:$0xff] %v4313_v38 }
 0x1e8   : > { %3201 = vmatmul.msk.bf16.gmra.mxu0 %vm601_vm1, %v4311_v27  ;;  %v955_v21 = vpop.f32.mrf.mxu1  ;;  %v1245_v23 = vmax.f32 %v806_v4, %v1117_v6 }
 0x1e9   : > { %v1102_v24 = vmul.f32 0.2, %v955_v21 }
 0x1ed   : > { %v808_v34 = vpop.f32.mrf.mxu0 }
 0x1ee   : > { %v1119_v25 = vmul.f32 0.2, %v808_v34  ;;  %v4334_v12 = vpop.f32.mrf.mxu2 }
 0x1ef   : > { %5931 = vst [vmem:[#allocation8_spill] sm:$0xff] %v4334_v12 }
 0x1f0   : > { %v1247_v26 = vmax.f32 %v808_v34, %v1119_v25  ;;  %v957_v41 = vpop.f32.mrf.mxu1  ;;  %v1098_v25 = vmul.f32 0.2, %v4296_v33  ;;  %3233 = vmatmul.msk.bf16.gmra.mxu1 %vm601_vm1, %v4311_v27  ;;  %v3465_v27 = vld [vmem:[%s5862_s2 + $0x1c0] sm:$0xf] }
 0x1f1   : > { %v1104_v11 = vmul.f32 0.2, %v957_v41 }
 0x1f2   : > { %v4342_v9 = vpack.c.bf16 %v1247_v26, %v1245_v23  ;;  %v3417_v23 = vld [vmem:[%s5862_s2 + $0x160] sm:$0xf]  ;;  %v1230_v26 = vmax.f32 %v955_v21, %v1102_v24  ;;  %v1096_v24 = vmul.f32 0.2, %v4265_v8 }
 0x1f3   : > { %1994 = vmatmul.bf16.gmra.mxu2 %v4336_v13  ;;  %2043 = vmatmul.bf16.gmra.mxu3 %v4338_v58  ;;  %v1232_v21 = vmax.f32 %v957_v41, %v1104_v11  ;;  %v1090_v41 = vmul.f32 0.2, %v4193_v44 }
 0x1f5   : > { %v811_v49 = vpop.f32.mrf.mxu0 }
 0x1f6   : > { %v4351_v39 = vpop.f32.mrf.mxu2  ;;  %v1121_v52 = vmul.f32 0.2, %v811_v49 }
 0x1f7   : > { %5933 = vst [vmem:[#allocation10_spill] sm:$0xff] %v4351_v39 }
 0x1f8   : > { %3202 = vmatmul.msk.bf16.gmra.mxu0 %vm601_vm1, %v4349_v55  ;;  %v960_v32 = vpop.f32.mrf.mxu1  ;;  %v1249_v53 = vmax.f32 %v811_v49, %v1121_v52  ;;  %v3588_v49 = vld [vmem:[%s5862_s2 + $0x16c] sm:$0xf0] }
 0x1f9   : > { %v1106_v4 = vmul.f32 0.2, %v960_v32 }
 0x1fb   : > { %v1234_v6 = vmax.f32 %v960_v32, %v1106_v4  ;;  %v4410_v32 = vor.u32 %v3554_v0, %v3291_v43  ;;  %v1226_v4 = vmax.f32 %v4296_v33, %v1098_v25  ;;  %v4427_v33 = vld [vmem:[%s5861_s1 + $0xe8] sm:$0xff]  ;;  %v1224_v25 = vmax.f32 %v4265_v8, %v1096_v24  ;;  %v3433_v8 = vld [vmem:[%s5862_s2 + $0x180] sm:$0xf] }
 0x1fc   : > { %v1088_v0 = vmul.f32 0.2, %v4172_v31  ;;  %v1220_v43 = vmax.f32 %v4218_v22, %v1092_v62  ;;  %v3307_v22 = vld [vmem:[%s5862_s2 + $0x90] sm:$0xf0] }
 0x1fd   : > { %v813_v45 = vpop.f32.mrf.mxu0 }
 0x1fe   : > { %v1123_v47 = vmul.f32 0.2, %v813_v45  ;;  %v4367_v37 = vpop.f32.mrf.mxu2 }
 0x200   : > { %v1251_v2 = vmax.f32 %v813_v45, %v1123_v47  ;;  %v962_v3 = vpop.f32.mrf.mxu1  ;;  %v4408_v47 = vor.u32 %v3588_v49, %v3417_v23  ;;  %3234 = vmatmul.msk.bf16.gmra.mxu1 %vm601_vm1, %v4349_v55 }
 0x201   : > { %v1108_v48 = vmul.f32 0.2, %v962_v3 }
 0x202   : > { %v4375_v61 = vpack.c.bf16 %v1251_v2, %v1249_v53  ;;  %5935 = vst [vmem:[#allocation12_spill] sm:$0xff] %v4408_v47  ;;  %v1094_v2 = vmul.f32 0.2, %v4249_v18 }
 0x203   : > { %1999 = vmatmul.bf16.gmra.mxu2 %v4369_v50  ;;  %2048 = vmatmul.bf16.gmra.mxu3 %v4371_v54  ;;  %v1236_v34 = vmax.f32 %v962_v3, %v1108_v48  ;;  %v1394_v3 = vpack.c.bf16 %v1232_v21, %v1230_v26  ;;  %v1086_v26 = vmul.f32 0.2, %v4153_v19  ;;  %v3558_v21 = vld [vmem:[%s5862_s2 + $0x84] sm:$0xf] }
 0x204   : > { %v1222_v48 = vmax.f32 %v4249_v18, %v1094_v2  ;;  %v1218_v18 = vmax.f32 %v4193_v44, %v1090_v41  ;;  %v3592_v44 = vld [vmem:[%s5862_s2 + $0x18c] sm:$0xf0]  ;;  %v4465_v41 = vor.u32 %v3558_v21, %v3307_v22 }
 0x205   : > { %v4384_v16 = vpop.f32.mrf.mxu0  ;;  %v1396_v52 = vpack.c.bf16 %v1236_v34, %v1234_v6  ;;  %v1228_v6 = vmax.f32 %v4315_v5, %v1100_v40  ;;  %v1214_v40 = vmax.f32 %v4153_v19, %v1086_v26  ;;  %v1216_v19 = vmax.f32 %v4172_v31, %v1088_v0 }
 0x206   : > { %v4386_v30 = vpop.f32.mrf.mxu2  ;;  %v1390_v49 = vpack.c.bf16 %v1224_v25, %v1222_v48  ;;  %v1388_v2 = vpack.c.bf16 %v1220_v43, %v1218_v18  ;;  %v1080_v26 = vmul.f32 0.2, %v4080_v20 }
 0x207   : > { %2386 = vmatpush.bf16.msrb.mxu1 %v1396_v52  ;;  %v1392_v11 = vpack.c.bf16 %v1228_v6, %v1226_v4  ;;  %v1082_v52 = vmul.f32 0.2, %v4114_v59  ;;  %v4463_v6 = vor.u32 %v3592_v44, %v3433_v8  ;;  %v1386_v25 = vpack.c.bf16 %v1216_v19, %v1214_v40  ;;  %v4493_v8 = vpop.permute.xlu1 %1613  ;;  %v3596_v40 = vld [vmem:[%s5862_s2 + $0x1ac] sm:$0xf0]  ;;  %v3323_v44 = vld [vmem:[%s5862_s2 + $0xb0] sm:$0xf0] }
 0x208   : > { %3203 = vmatmul.msk.bf16.gmra.mxu0 %vm601_vm1, %v4382_v35  ;;  %v4412_v53 = vpop.f32.mrf.mxu1  ;;  %v1208_v42 = vmax.f32 %v4080_v20, %v1080_v26  ;;  %5937 = vst [vmem:[#allocation14_spill] sm:$0xff] %v4493_v8  ;;  %v3562_v20 = vld [vmem:[%s5862_s2 + $0xa4] sm:$0xf] }
 0x209   : > { %5936 = vst [vmem:[#allocation13_spill] sm:$0xff] %v4463_v6  ;;  %v1210_v62 = vmax.f32 %v4114_v59, %v1082_v52 }
 0x20b   : > { %2387 = vmatpush.bf16.msrb.mxu1 %v1394_v3  ;;  %v1084_v3 = vmul.f32 0.2, %v4132_v7 }
 0x20d   : > { %v4403_v51 = vpop.f32.mrf.mxu0  ;;  %v1212_v18 = vmax.f32 %v4132_v7, %v1084_v3  ;;  %v4508_v3 = vor.u32 %v3562_v20, %v3323_v44 }
 0x20e   : > { %v4406_v45 = vpop.f32.mrf.mxu2 }
 0x20f   : > { %2388 = vmatpush.bf16.msrb.mxu1 %v1392_v11  ;;  %v1078_v11 = vmul.f32 0.2, %v4060_v17  ;;  %v1384_v59 = vpack.c.bf16 %v1212_v18, %v1210_v62  ;;  %5939 = vst [vmem:[#allocation16_spill] sm:$0xff] %v4508_v3 }
 0x210   : > { %v4435_v23 = vpop.f32.mrf.mxu1  ;;  %3235 = vmatmul.msk.bf16.gmra.mxu1 %vm601_vm1, %v4382_v35 }
 0x211   : > { %v1206_v31 = vmax.f32 %v4060_v17, %v1078_v11  ;;  %v3449_v17 = vld [vmem:[%s5862_s2 + $0x1a0] sm:$0xf]  ;;  %v4519_v11 = vld [vmem:[%s5861_s1 + $0xf8] sm:$0xff] }
 0x213   : > { %2004 = vmatmul.bf16.gmra.mxu2 %v4408_v47  ;;  %2053 = vmatmul.bf16.gmra.mxu3 %v4410_v32  ;;  %v1382_v7 = vpack.c.bf16 %v1208_v42, %v1206_v31  ;;  %v3600_v31 = vld [vmem:[%s5862_s2 + $0x1cc] sm:$0xf0]  ;;  %v3566_v42 = vld [vmem:[%s5862_s2 + $0xc4] sm:$0xf] }
 0x214   : > { %2389 = vmatpush.bf16.msrb.mxu1 %v1390_v49  ;;  %v4481_v49 = vld [vmem:[%s5861_s1 + $0xf0] sm:$0xff] }
 0x215   : > { %v4429_v34 = vpop.f32.mrf.mxu0 }
 0x216   : > { %v4432_v5 = vpop.f32.mrf.mxu2 }
 0x218   : > { %3204 = vmatmul.msk.bf16.gmra.mxu0 %vm601_vm1, %v4427_v33  ;;  %v4467_v48 = vpop.f32.mrf.mxu1  ;;  %2390 = vmatpush.bf16.msrb.mxu1 %v1388_v2  ;;  %v4506_v2 = vor.u32 %v3596_v40, %v3449_v17 }
 0x21a   : > { %5938 = vst [vmem:[#allocation15_spill] sm:$0xff] %v4506_v2 }
 0x21c   : > { %2391 = vmatpush.bf16.msrb.mxu1 %v1386_v25  ;;  %v4521_v25 = vpop.permute.xlu1 %1618 }
 0x21d   : > { %v4457_v4 = vpop.f32.mrf.mxu0  ;;  %5940 = vst [vmem:[#allocation17_spill] sm:$0xff] %v4521_v25 }
 0x21e   : > { %v4460_v24 = vpop.f32.mrf.mxu2  ;;  %v1131_v50 = vmul.f32 0.2, %v4457_v4 }
 0x220   : > { %v4486_v52 = vpop.f32.mrf.mxu1  ;;  %2392 = vmatpush.bf16.msrb.mxu1 %v1384_v59  ;;  %v1259_v55 = vmax.f32 %v4457_v4, %v1131_v50  ;;  %v3481_v50 = vld [vmem:[%s5862_s2 + $0x1e0] sm:$0xf] }
 0x221   : > { %3236 = vmatmul.msk.bf16.gmra.mxu1 %vm601_vm1, %v4427_v33  ;;  %v3578_v33 = vld [vmem:[%s5862_s2 + $0x124] sm:$0xf] }
 0x223   : > { %2009 = vmatmul.bf16.gmra.mxu2 %v4463_v6  ;;  %2058 = vmatmul.bf16.gmra.mxu3 %v4465_v41 }
 0x224   : > { %2393 = vmatpush.bf16.msrb.mxu1 %v1382_v7  ;;  %v3339_v7 = vld [vmem:[%s5862_s2 + $0xd0] sm:$0xf0]  ;;  %v4549_v47 = vpop.permute.xlu1 %1608 }
 0x225   : > { %v826_v0 = vpop.f32.mrf.mxu0  ;;  %v4545_v6 = vor.u32 %v3566_v42, %v3339_v7  ;;  %5943 = vst [vmem:[#allocation20_spill] sm:$0xff] %v4549_v47  ;;  %v4559_v7 = vpop.permute.xlu0 %1533 }
 0x226   : > { %v4483_v43 = vpop.f32.mrf.mxu2  ;;  %v1133_v8 = vmul.f32 0.2, %v826_v0  ;;  %5945 = vst [vmem:[#allocation22_spill] sm:$0xff] %v4559_v7 }
 0x227   : > { %5942 = vst [vmem:[#allocation19_spill] sm:$0xff] %v4545_v6 }
 0x228   : > { %3205 = vmatmul.msk.bf16.gmra.mxu0 %vm601_vm1, %v4481_v49  ;;  %v4510_v19 = vpop.f32.mrf.mxu1  ;;  %v1261_v42 = vmax.f32 %v826_v0, %v1133_v8  ;;  %v1448_v0 = vld [vmem:[%s5863_s3 + $0x98] sm:$0xff] }
 0x229   : > { %1558 = vperm.xlu0 %3648, %v1448_v0  }
 0x22c   : > { %v4573_v8 = vpop.permute.xlu1 %1593 }
 0x22d   : > { %v828_v21 = vpop.f32.mrf.mxu0  ;;  %5946 = vst [vmem:[#allocation23_spill] sm:$0xff] %v4573_v8 }
 0x22e   : > { %v4504_v22 = vpop.f32.mrf.mxu2  ;;  %v1135_v40 = vmul.f32 0.2, %v828_v21 }
 0x230   : > { %v4525_v18 = vpop.f32.mrf.mxu1  ;;  %v1263_v38 = vmax.f32 %v828_v21, %v1135_v40 }
 0x231   : > { %3237 = vmatmul.msk.bf16.gmra.mxu1 %vm601_vm1, %v4481_v49  ;;  %v3582_v49 = vld [vmem:[%s5862_s2 + $0x144] sm:$0xf] }
 0x233   : > { %2014 = vmatmul.bf16.gmra.mxu2 %v4506_v2  ;;  %2063 = vmatmul.bf16.gmra.mxu3 %v4508_v3  ;;  %v4543_v2 = vor.u32 %v3600_v31, %v3465_v27  ;;  %v1129_v27 = vmul.f32 0.2, %v4429_v34  ;;  %v4557_v31 = vpop.permute.xlu2 %1523 }
 0x234   : > { %5944 = vst [vmem:[#allocation21_spill] sm:$0xff] %v4557_v31 }
 0x235   : > { %v831_v62 = vpop.f32.mrf.mxu0  ;;  %5941 = vst [vmem:[#allocation18_spill] sm:$0xff] %v4543_v2  ;;  %v1257_v40 = vmax.f32 %v4429_v34, %v1129_v27  ;;  %v3604_v34 = vld [vmem:[%s5862_s2 + $0x1ec] sm:$0xf0] }
 0x236   : > { %v4523_v26 = vpop.f32.mrf.mxu2  ;;  %v1137_v59 = vmul.f32 0.2, %v831_v62 }
 0x238   : > { %3206 = vmatmul.msk.bf16.gmra.mxu0 %vm601_vm1, %v4519_v11  ;;  %v4547_v25 = vpop.f32.mrf.mxu1  ;;  %v1265_v39 = vmax.f32 %v831_v62, %v1137_v59  ;;  %v1127_v59 = vmul.f32 0.2, %v4403_v51 }
 0x23d   : > { %v833_v17 = vpop.f32.mrf.mxu0 }
 0x23e   : > { %v1139_v20 = vmul.f32 0.2, %v833_v17  ;;  %v4541_v44 = vpop.f32.mrf.mxu2 }
 0x240   : > { %v1267_v12 = vmax.f32 %v833_v17, %v1139_v20  ;;  %v4565_v21 = vpop.f32.mrf.mxu1  ;;  %v1125_v17 = vmul.f32 0.2, %v4384_v16 }
 0x241   : > { %3238 = vmatmul.msk.bf16.gmra.mxu1 %vm601_vm1, %v4519_v11 }
 0x242   : > { %v1411_v3 = vpack.c.bf16 %v1267_v12, %v1265_v39  ;;  %v1409_v39 = vpack.c.bf16 %v1263_v38, %v1261_v42  ;;  %v1255_v38 = vmax.f32 %v4403_v51, %v1127_v59  ;;  %v1253_v4 = vmax.f32 %v4384_v16, %v1125_v17  ;;  %v3355_v51 = vld [vmem:[%s5862_s2 + $0xf0] sm:$0xf0]  ;;  %v4589_v42 = vpop.permute.xlu2 %1528 }
 0x243   : > { %2019 = vmatmul.bf16.gmra.mxu2 %v4543_v2  ;;  %2068 = vmatmul.bf16.gmra.mxu3 %v4545_v6  ;;  %5947 = vst [vmem:[#allocation24_spill] sm:$0xff] %v4589_v42  ;;  %v4595_v16 = vor.u32 %v3604_v34, %v3481_v50  ;;  %v1445_v2 = vld [vmem:[%s5863_s3 + $0x80] sm:$0xff]  ;;  %v4613_v34 = vpop.permute.xlu1 %1508 }
 0x244   : > { %2119 = vmatpush.bf16.msrb.mxu2 %v1411_v3  ;;  %v1407_v3 = vpack.c.bf16 %v1259_v55, %v1257_v40  ;;  %v1405_v55 = vpack.c.bf16 %v1255_v38, %v1253_v4  ;;  %v4593_v40 = vpop.permute.xlu0 %1538  ;;  %1543 = vperm.xlu0 %3648, %v1445_v2   ;;  %5952 = vst [vmem:[#allocation29_spill] sm:$0xff] %v4613_v34 }
 0x245   : > { %v836_v62 = vpop.f32.mrf.mxu0  ;;  %5948 = vst [vmem:[#allocation25_spill] sm:$0xff] %v4593_v40 }
 0x246   : > { %v4562_v12 = vpop.f32.mrf.mxu2  ;;  %v1141_v20 = vmul.f32 0.2, %v836_v62  ;;  %5949 = vst [vmem:[#allocation26_spill] sm:$0xff] %v4595_v16 }
 0x248   : > { %2120 = vmatpush.bf16.msrb.mxu2 %v1409_v39  ;;  %2305 = vmatmul.bf16.vlgmr.msrb.gmra.mxu0 %v3981_v15  ;;  %v3570_v15 = vld [vmem:[%s5862_s2 + $0xe4] sm:$0xf]  ;;  %v4599_v0 = vpop.f32.mrf.mxu1  ;;  %v1269_v47 = vmax.f32 %v836_v62, %v1141_v20 }
 0x249   : > { %v4597_v17 = vor.u32 %v3570_v15, %v3355_v51  ;;  %v3249_v51 = vld [vmem:[%s5862_s2 + $0x8] sm:$0xf] }
 0x24a   : > { %v4620_v20 = vpop.permute.xlu2 %1513 }
 0x24b   : > { %5950 = vst [vmem:[#allocation27_spill] sm:$0xff] %v4597_v17 }
 0x24c   : > { %2121 = vmatpush.bf16.msrb.mxu2 %v1407_v3  ;;  %v1446_v3 = vld [vmem:[%s5863_s3 + $0x88] sm:$0xff]  ;;  %5954 = vst [vmem:[#allocation31_spill] sm:$0xff] %v4620_v20  ;;  %v4624_v35 = vpop.permute.xlu0 %1603 }
 0x24d   : > { %v838_v27 = vpop.f32.mrf.mxu0  ;;  %1548 = vperm.xlu1 %3649, %v1446_v3   ;;  %5955 = vst [vmem:[#allocation32_spill] sm:$0xff] %v4624_v35 }
 0x24e   : > { %v1143_v59 = vmul.f32 0.2, %v838_v27  ;;  %v4591_v39 = vpop.f32.mrf.mxu2 }
 0x250   : > { %2122 = vmatpush.bf16.msrb.mxu2 %v1405_v55  ;;  %v1271_v38 = vmax.f32 %v838_v27, %v1143_v59  ;;  %v4618_v62 = vpop.f32.mrf.mxu1  ;;  %v4639_v27 = vpop.permute.xlu1 %1493 }
 0x251   : > { %5956 = vst [vmem:[#allocation33_spill] sm:$0xff] %v4639_v27  ;;  %2394 = vmatmul.bf16.vlgmr.msrb.gmra.mxu1 %v4294_v60 }
 0x252   : > { %v4609_v50 = vpack.c.bf16 %v1271_v38, %v1269_v47  ;;  %v3574_v47 = vld [vmem:[%s5862_s2 + $0x104] sm:$0xf]  ;;  %v4650_v8 = vpop.permute.xlu2 %1598 }
 0x253   : > { %2024 = vmatmul.bf16.gmra.mxu2 %v4595_v16  ;;  %2073 = vmatmul.bf16.gmra.mxu3 %v4597_v17  ;;  %5960 = vst [vmem:[#allocation37_spill] sm:$0xff] %v4650_v8 }
 0x254   : > { %5951 = vst [vmem:[#allocation28_spill] sm:$0xff] %v4609_v50  ;;  %2123 = vmatpush.bf16.msrb.mxu2 %v4375_v61  ;;  %v3371_v61 = vld [vmem:[%s5862_s2 + $0x110] sm:$0xf0]  ;;  %v4656_v6 = vpop.permute.xlu0 %1518 }
 0x255   : > { %v841_v4 = vpop.f32.mrf.mxu0  ;;  %v4643_v3 = vor.u32 %v3574_v47, %v3371_v61  ;;  %5962 = vst [vmem:[#allocation39_spill] sm:$0xff] %v4656_v6 }
 0x256   : > { %v4616_v15 = vpop.f32.mrf.mxu2  ;;  %v1145_v2 = vmul.f32 0.2, %v841_v4 }
 0x257   : > { %5953 = vst [vmem:[#allocation30_spill] sm:$0xff] %v4616_v15 }
 0x258   : > { %2124 = vmatpush.bf16.msrb.mxu2 %v4342_v9  ;;  %2310 = vmatmul.bf16.gmra.mxu0 %v4006_v29  ;;  %v3545_v29 = vld [vmem:[%s5862_s2 + $0x14] sm:$0xf0]  ;;  %5958 = vst [vmem:[#allocation35_spill] sm:$0xff] %v4643_v3  ;;  %v4647_v16 = vpop.f32.mrf.mxu1 }
 0x259   : > { %v4645_v38 = vor.u32 %v3545_v29, %v3249_v51 }
 0x25a   : > { %v4675_v51 = vpop.permute.xlu2 %1583 }
 0x25b   : > { %5959 = vst [vmem:[#allocation36_spill] sm:$0xff] %v4645_v38 }
 0x25c   : > { %2125 = vmatpush.bf16.msrb.mxu2 %v4304_v63  ;;  %v1273_v63 = vmax.f32 %v841_v4, %v1145_v2  ;;  %v4666_v2 = vpop.permute.xlu1 %1578  ;;  %5966 = vst [vmem:[#allocation43_spill] sm:$0xff] %v4675_v51 }
 0x25d   : > { %v843_v9 = vpop.f32.mrf.mxu0  ;;  %5965 = vst [vmem:[#allocation42_spill] sm:$0xff] %v4666_v2 }
 0x25e   : > { %v1147_v59 = vmul.f32 0.2, %v843_v9  ;;  %v4641_v55 = vpop.f32.mrf.mxu2 }
 0x25f   : > { %5957 = vst [vmem:[#allocation34_spill] sm:$0xff] %v4641_v55 }
 0x260   : > { %2126 = vmatpush.bf16.msrb.mxu2 %v4256_v1  ;;  %v1275_v35 = vmax.f32 %v843_v9, %v1147_v59  ;;  %v4664_v1 = vpop.f32.mrf.mxu1  ;;  %v3265_v9 = vld [vmem:[%s5862_s2 + $0x28] sm:$0xf]  ;;  %v3549_v59 = vld [vmem:[%s5862_s2 + $0x34] sm:$0xf0] }
 0x261   : > { %v4691_v51 = vor.u32 %v3549_v59, %v3265_v9  ;;  %2399 = vmatmul.bf16.gmra.mxu1 %v4338_v58 }
 0x262   : > { %v4654_v17 = vpack.c.bf16 %v1275_v35, %v1273_v63  ;;  %v3387_v35 = vld [vmem:[%s5862_s2 + $0x130] sm:$0xf0]  ;;  %v4707_v59 = vpop.permute.xlu2 %1498 }
 0x263   : > { %2078 = vmatmul.bf16.gmra.mxu3 %v4643_v3  ;;  %2127 = vmatmul.bf16.vlgmr.msrb.gmra.mxu2 %v4645_v38  ;;  %v4689_v2 = vor.u32 %v3578_v33, %v3387_v35  ;;  %5971 = vst [vmem:[#allocation48_spill] sm:$0xff] %v4691_v51 }
 0x264   : > { %5961 = vst [vmem:[#allocation38_spill] sm:$0xff] %v4654_v17  ;;  %v4695_v55 = vpop.permute.xlu1 %1563 }
 0x265   : > { %v846_v47 = vpop.f32.mrf.mxu0  ;;  %5970 = vst [vmem:[#allocation47_spill] sm:$0xff] %v4689_v2 }
 0x266   : > { %v4660_v61 = vpop.f32.mrf.mxu2  ;;  %v4662_v4 = vpop.f32.mrf.mxu3  ;;  %v1149_v29 = vmul.f32 0.2, %v846_v47  ;;  %5972 = vst [vmem:[#allocation49_spill] sm:$0xff] %v4695_v55 }
 0x267   : > { %5963 = vst [vmem:[#allocation40_spill] sm:$0xff] %v4660_v61 }
 0x268   : > { %5964 = vst [vmem:[#allocation41_spill] sm:$0xff] %v4662_v4  ;;  %2315 = vmatmul.bf16.gmra.mxu0 %v4026_v46  ;;  %v4683_v46 = vpop.permute.xlu0 %1503  ;;  %v4693_v3 = vpop.f32.mrf.mxu1  ;;  %v1277_v4 = vmax.f32 %v846_v47, %v1149_v29  ;;  %v3281_v29 = vld [vmem:[%s5862_s2 + $0x48] sm:$0xf] }
 0x269   : > { %5967 = vst [vmem:[#allocation44_spill] sm:$0xff] %v4683_v46 }
 0x26a   : > { %5976 = vst [vmem:[#allocation53_spill] sm:$0xff] %v4707_v59  ;;  %v4736_v15 = vpop.permute.xlu2 %1483 }
 0x26b   : > { %5981 = vst [vmem:[#allocation58_spill] sm:$0xff] %v4736_v15 }
 0x26c   : > { %v4718_v47 = vpop.permute.xlu1 %1478 }
 0x26d   : > { %v848_v63 = vpop.f32.mrf.mxu0  ;;  %5978 = vst [vmem:[#allocation55_spill] sm:$0xff] %v4718_v47 }
 0x26e   : > { %v1151_v38 = vmul.f32 0.2, %v848_v63  ;;  %v4685_v61 = vpop.f32.mrf.mxu2  ;;  %v4687_v8 = vpop.f32.mrf.mxu3 }
 0x26f   : > { %5968 = vst [vmem:[#allocation45_spill] sm:$0xff] %v4685_v61 }
 0x270   : > { %5969 = vst [vmem:[#allocation46_spill] sm:$0xff] %v4687_v8  ;;  %v1279_v50 = vmax.f32 %v848_v63, %v1151_v38  ;;  %v997_v9 = vpop.f32.mrf.mxu1  ;;  %v4709_v38 = vpop.permute.xlu0 %1588  ;;  %v3553_v63 = vld [vmem:[%s5862_s2 + $0x54] sm:$0xf0] }
 0x271   : > { %5977 = vst [vmem:[#allocation54_spill] sm:$0xff] %v4709_v38  ;;  %v4734_v8 = vor.u32 %v3553_v63, %v3281_v29  ;;  %v1136_v11 = vmul.f32 0.2, %v997_v9  ;;  %v1130_v63 = vmul.f32 0.2, %v4647_v16  ;;  %2404 = vmatmul.bf16.gmra.mxu1 %v4371_v54 }
 0x272   : > { %v4699_v40 = vpack.c.bf16 %v1279_v50, %v1277_v4  ;;  %v3403_v50 = vld [vmem:[%s5862_s2 + $0x150] sm:$0xf0]  ;;  %v3598_v54 = vld [vmem:[%s5862_s2 + $0x1c4] sm:$0xf] }
 0x273   : > { %2083 = vmatmul.bf16.gmra.mxu3 %v4689_v2  ;;  %2132 = vmatmul.bf16.gmra.mxu2 %v4691_v51  ;;  %5980 = vst [vmem:[#allocation57_spill] sm:$0xff] %v4734_v8 }
 0x274   : > { %5973 = vst [vmem:[#allocation50_spill] sm:$0xff] %v4699_v40 }
 0x275   : > { %v851_v61 = vpop.f32.mrf.mxu0 }
 0x276   : > { %v4703_v33 = vpop.f32.mrf.mxu2  ;;  %v4705_v35 = vpop.f32.mrf.mxu3  ;;  %v1153_v4 = vmul.f32 0.2, %v851_v61 }
 0x277   : > { %5974 = vst [vmem:[#allocation51_spill] sm:$0xff] %v4703_v33  ;;  %v4732_v33 = vor.u32 %v3582_v49, %v3403_v50 }
 0x278   : > { %5975 = vst [vmem:[#allocation52_spill] sm:$0xff] %v4705_v35  ;;  %2320 = vmatmul.bf16.gmra.mxu0 %v4058_v14  ;;  %v1958_v14 = vadd.f32 %v4367_v37, %v4718_v47  ;;  %v1000_v17 = vpop.f32.mrf.mxu1  ;;  %v1281_v13 = vmax.f32 %v851_v61, %v1153_v4  ;;  %v4738_v7 = vpop.permute.xlu0 %1573  ;;  %v1134_v4 = vmul.f32 0.2, %v4693_v3 }
 0x279   : > { %5979 = vst [vmem:[#allocation56_spill] sm:$0xff] %v4732_v33  ;;  %v1138_v49 = vmul.f32 0.2, %v1000_v17 }
 0x27a   : > { %5982 = vst [vmem:[#allocation59_spill] sm:$0xff] %v4738_v7 }
 0x27d   : > { %v853_v51 = vpop.f32.mrf.mxu0 }
 0x27e   : > { %v1155_v38 = vmul.f32 0.2, %v853_v51  ;;  %v4728_v2 = vpop.f32.mrf.mxu2  ;;  %v2046_v55 = vpop.f32.mrf.mxu3 }
 0x27f   : > { %v4730_v35 = vadd.f32 %v2046_v55, %v1958_v14  ;;  %v1961_v55 = vadd.f32 %v4386_v30, %v4736_v15  ;;  %v1132_v14 = vmul.f32 0.2, %v4664_v1  ;;  %v1262_v15 = vmax.f32 %v4693_v3, %v1134_v4 }
 0x280   : > { %v1283_v40 = vmax.f32 %v853_v51, %v1155_v38  ;;  %v4762_v47 = vpop.permute.xlu0 %1488 }
 0x281   : > { %5984 = vst [vmem:[#allocation61_spill] sm:$0xff] %v4762_v47  ;;  %v1963_v4 = vadd.f32 %v4406_v45, %v4762_v47  ;;  %v1258_v45 = vmax.f32 %v4647_v16, %v1130_v63  ;;  %v1260_v47 = vmax.f32 %v4664_v1, %v1132_v14  ;;  %v1120_v14 = vmul.f32 0.2, %v4525_v18 }
 0x282   : > { %v4742_v37 = vpack.c.bf16 %v1283_v40, %v1281_v13  ;;  %v1002_v13 = vpop.f32.mrf.mxu1  ;;  %v1266_v40 = vmax.f32 %v1000_v17, %v1138_v49  ;;  %v3419_v17 = vld [vmem:[%s5862_s2 + $0x170] sm:$0xf0]  ;;  %v3557_v49 = vld [vmem:[%s5862_s2 + $0x74] sm:$0xf0]  ;;  %2409 = vmatmul.bf16.gmra.mxu1 %v4410_v32 }
 0x283   : > { %2088 = vmatmul.bf16.gmra.mxu3 %v4732_v33  ;;  %2137 = vmatmul.bf16.gmra.mxu2 %v4734_v8  ;;  %v1140_v29 = vmul.f32 0.2, %v1002_v13  ;;  %v1408_v63 = vpack.c.bf16 %v1260_v47, %v1258_v45  ;;  %v1114_v47 = vmul.f32 0.2, %v4467_v48 }
 0x285   : > { %v4748_v50 = vpop.f32.mrf.mxu0  ;;  %v1268_v30 = vmax.f32 %v1002_v13, %v1140_v29 }
 0x286   : > { %v4750_v61 = vpop.f32.mrf.mxu2  ;;  %v2049_v51 = vpop.f32.mrf.mxu3 }
 0x287   : > { %v4752_v38 = vadd.f32 %v2049_v51, %v1961_v55  ;;  %v3586_v55 = vld [vmem:[%s5862_s2 + $0x164] sm:$0xf]  ;;  %v1264_v51 = vmax.f32 %v997_v9, %v1136_v11  ;;  %v1412_v3 = vpack.c.bf16 %v1268_v30, %v1266_v40  ;;  %v1126_v40 = vmul.f32 0.2, %v4599_v0 }
 0x288   : > { %2325 = vmatmul.bf16.gmra.mxu0 %v4112_v57  ;;  %v3297_v57 = vld [vmem:[%s5862_s2 + $0x68] sm:$0xf]  ;;  %v4781_v8 = vor.u32 %v3586_v55, %v3419_v17  ;;  %v1128_v30 = vmul.f32 0.2, %v4618_v62  ;;  %v1966_v55 = vadd.f32 %v4432_v5, %v4639_v27  ;;  %v1122_v17 = vmul.f32 0.2, %v4547_v25  ;;  %v5045_v27 = vpop.permute.xlu0 %1473 }
 0x289   : > { %5983 = vst [vmem:[#allocation60_spill] sm:$0xff] %v4752_v38  ;;  %2475 = vmatpush.bf16.msra.mxu2 %v1412_v3  ;;  %v4783_v33 = vor.u32 %v3557_v49, %v3297_v57  ;;  %v1410_v38 = vpack.c.bf16 %v1264_v51, %v1262_v15  ;;  %v1124_v15 = vmul.f32 0.2, %v4565_v21  ;;  %v1254_v51 = vmax.f32 %v4599_v0, %v1126_v40 }
 0x28a   : > { %v4785_v7 = vpop.f32.mrf.mxu1  ;;  %v1256_v16 = vmax.f32 %v4618_v62, %v1128_v30  ;;  %v1118_v5 = vmul.f32 0.2, %v4510_v19  ;;  %v1250_v3 = vmax.f32 %v4547_v25, %v1122_v17  ;;  %v1248_v40 = vmax.f32 %v4525_v18, %v1120_v14  ;;  %v3590_v30 = vld [vmem:[%s5862_s2 + $0x184] sm:$0xf]  ;;  %v3435_v25 = vld [vmem:[%s5862_s2 + $0x190] sm:$0xf0] }
 0x28b   : > { %5985 = vst [vmem:[#allocation62_spill] sm:$0xff] %v4783_v33  ;;  %v1252_v0 = vmax.f32 %v4565_v21, %v1124_v15  ;;  %v3561_v21 = vld [vmem:[%s5862_s2 + $0x94] sm:$0xf0]  ;;  %v1112_v14 = vmul.f32 0.2, %v4435_v23 }
 0x28c   : > { %v1406_v62 = vpack.c.bf16 %v1256_v16, %v1254_v51  ;;  %v4837_v51 = vor.u32 %v3590_v30, %v3435_v25  ;;  %v3565_v25 = vld [vmem:[%s5862_s2 + $0xb4] sm:$0xf0] }
 0x28d   : > { %v4775_v13 = vpop.f32.mrf.mxu0  ;;  %2476 = vmatpush.bf16.msra.mxu2 %v1410_v38  ;;  %v1404_v45 = vpack.c.bf16 %v1252_v0, %v1250_v3  ;;  %v1971_v0 = vadd.f32 %v4483_v43, %v4683_v46 }
 0x28e   : > { %v4777_v9 = vpop.f32.mrf.mxu2  ;;  %v2051_v11 = vpop.f32.mrf.mxu3  ;;  %5986 = vst [vmem:[#allocation63_spill] sm:$0xff] %v4837_v51 }
 0x28f   : > { %v4779_v29 = vadd.f32 %v2051_v11, %v1963_v4  ;;  %v1116_v4 = vmul.f32 0.2, %v4486_v52  ;;  %v1246_v11 = vmax.f32 %v4510_v19, %v1118_v5  ;;  %v1968_v19 = vadd.f32 %v4460_v24, %v4707_v59 }
 0x290   : > { %v1110_v5 = vmul.f32 0.2, %v4412_v53  ;;  %v1242_v24 = vmax.f32 %v4467_v48, %v1114_v47 }
 0x291   : > { %2477 = vmatpush.bf16.msra.mxu2 %v1408_v63  ;;  %v1244_v3 = vmax.f32 %v4486_v52, %v1116_v4  ;;  %v3329_v4 = vld [vmem:[%s5862_s2 + $0xa8] sm:$0xf] }
 0x292   : > { %v4808_v49 = vpop.f32.mrf.mxu1  ;;  %2414 = vmatmul.bf16.gmra.mxu1 %v4465_v41  ;;  %v5998_v41 = vld [vmem:[#allocation9_spill] sm:$0xff] }
 0x293   : > { %2093 = vmatmul.bf16.gmra.mxu3 %v4781_v8  ;;  %2142 = vmatmul.bf16.gmra.mxu2 %v4783_v33 }
 0x295   : > { %v4800_v1 = vpop.f32.mrf.mxu0  ;;  %2478 = vmatpush.bf16.msra.mxu2 %v1406_v62  ;;  %v1238_v62 = vmax.f32 %v4412_v53, %v1110_v5  ;;  %v3594_v53 = vld [vmem:[%s5862_s2 + $0x1a4] sm:$0xf] }
 0x296   : > { %v4802_v38 = vpop.f32.mrf.mxu2  ;;  %v2054_v60 = vpop.f32.mrf.mxu3 }
 0x297   : > { %v4806_v57 = vadd.f32 %v2054_v60, %v1966_v55  ;;  %v1402_v60 = vpack.c.bf16 %v1248_v40, %v1246_v11  ;;  %v1240_v11 = vmax.f32 %v4435_v23, %v1112_v14  ;;  %v1400_v40 = vpack.c.bf16 %v1244_v3, %v1242_v24  ;;  %v3451_v23 = vld [vmem:[%s5862_s2 + $0x1b0] sm:$0xf0] }
 0x298   : > { %2330 = vmatmul.bf16.gmra.mxu0 %v4151_v10  ;;  %v3313_v10 = vld [vmem:[%s5862_s2 + $0x88] sm:$0xf]  ;;  %v1976_v14 = vadd.f32 %v4523_v26, %v4620_v20  ;;  %v3467_v26 = vld [vmem:[%s5862_s2 + $0x1d0] sm:$0xf0] }
 0x299   : > { %2479 = vmatpush.bf16.msra.mxu2 %v1404_v45  ;;  %v4839_v16 = vor.u32 %v3561_v21, %v3313_v10  ;;  %v1398_v43 = vpack.c.bf16 %v1240_v11, %v1238_v62 }
 0x29a   : > { %v4841_v63 = vpop.f32.mrf.mxu1 }
 0x29b   : > { %5987 = vst [vmem:[#allocation64_spill] sm:$0xff] %v4839_v16 }
 0x29d   : > { %v4831_v18 = vpop.f32.mrf.mxu0  ;;  %2480 = vmatpush.bf16.msra.mxu2 %v1402_v60  ;;  %v4883_v60 = vor.u32 %v3565_v25, %v3329_v4 }
 0x29e   : > { %v4833_v55 = vpop.f32.mrf.mxu2  ;;  %v2056_v17 = vpop.f32.mrf.mxu3 }
 0x29f   : > { %v4835_v15 = vadd.f32 %v2056_v17, %v1968_v19  ;;  %v4881_v17 = vor.u32 %v3594_v53, %v3451_v23  ;;  %5989 = vst [vmem:[#allocation66_spill] sm:$0xff] %v4883_v60 }
 0x2a1   : > { %2481 = vmatpush.bf16.msra.mxu2 %v1400_v40  ;;  %5988 = vst [vmem:[#allocation65_spill] sm:$0xff] %v4881_v17  ;;  %v3345_v40 = vld [vmem:[%s5862_s2 + $0xc8] sm:$0xf] }
 0x2a2   : > { %v4860_v58 = vpop.f32.mrf.mxu1 }
 0x2a3   : > { %2098 = vmatmul.bf16.gmra.mxu3 %v4837_v51  ;;  %2147 = vmatmul.bf16.gmra.mxu2 %v4839_v16  ;;  %v6017_v51 = vld [vmem:[#allocation10_spill] sm:$0xff] }
 0x2a5   : > { %v4854_v30 = vpop.f32.mrf.mxu0  ;;  %2482 = vmatpush.bf16.msra.mxu2 %v1398_v43 }
 0x2a6   : > { %v4856_v48 = vpop.f32.mrf.mxu2  ;;  %v2059_v52 = vpop.f32.mrf.mxu3  ;;  %v1165_v20 = vmul.f32 0.2, %v4854_v30 }
 0x2a7   : > { %v4858_v47 = vadd.f32 %v2059_v52, %v1971_v0  ;;  %v3569_v52 = vld [vmem:[%s5862_s2 + $0xd4] sm:$0xf0] }
 0x2a8   : > { %2335 = vmatmul.bf16.gmra.mxu0 %v4191_v28  ;;  %v1973_v28 = vadd.f32 %v4504_v22, %v4613_v34 }
 0x2aa   : > { %v4885_v5 = vpop.f32.mrf.mxu1 }
 0x2ad   : > { %v868_v10 = vpop.f32.mrf.mxu0 }
 0x2ae   : > { %v4877_v21 = vpop.f32.mrf.mxu2  ;;  %v2061_v45 = vpop.f32.mrf.mxu3  ;;  %v1167_v53 = vmul.f32 0.2, %v868_v10 }
 0x2af   : > { %v4879_v19 = vadd.f32 %v2061_v45, %v1973_v28  ;;  %v4917_v45 = vor.u32 %v3598_v54, %v3467_v26  ;;  %v1161_v54 = vmul.f32 0.2, %v4800_v1  ;;  %v1293_v26 = vmax.f32 %v4854_v30, %v1165_v20  ;;  %v3483_v30 = vld [vmem:[%s5862_s2 + $0x1f0] sm:$0xf0] }
 0x2b0   : > { %v1295_v59 = vmax.f32 %v868_v10, %v1167_v53 }
 0x2b1   : > { %5990 = vst [vmem:[#allocation67_spill] sm:$0xff] %v4917_v45 }
 0x2b2   : > { %v4896_v62 = vpop.f32.mrf.mxu1 }
 0x2b3   : > { %2103 = vmatmul.bf16.gmra.mxu3 %v4881_v17  ;;  %2152 = vmatmul.bf16.gmra.mxu2 %v4883_v60  ;;  %v6027_v60 = vld [vmem:[#allocation49_spill] sm:$0xff] }
 0x2b4   : > { %v2001_v16 = vadd.f32 %v4750_v61, %v6027_v60 }
 0x2b5   : > { %v871_v22 = vpop.f32.mrf.mxu0 }
 0x2b6   : > { %v4892_v24 = vpop.f32.mrf.mxu2  ;;  %v2064_v3 = vpop.f32.mrf.mxu3  ;;  %v1169_v11 = vmul.f32 0.2, %v871_v22 }
 0x2b7   : > { %v4894_v0 = vadd.f32 %v2064_v3, %v1976_v14  ;;  %v4919_v14 = vor.u32 %v3569_v52, %v3345_v40  ;;  %v1157_v40 = vmul.f32 0.2, %v4748_v50  ;;  %v1289_v52 = vmax.f32 %v4800_v1, %v1161_v54  ;;  %v3361_v1 = vld [vmem:[%s5862_s2 + $0xe8] sm:$0xf]  ;;  %v4970_v54 = vpop.permute.xlu2 %1568 }
 0x2b8   : > { %2340 = vmatmul.bf16.gmra.mxu0 %v4247_v36  ;;  %v1978_v36 = vadd.f32 %v4541_v44, %v4656_v6  ;;  %v1297_v34 = vmax.f32 %v871_v22, %v1169_v11  ;;  %v1163_v44 = vmul.f32 0.2, %v4831_v18  ;;  %v1159_v22 = vmul.f32 0.2, %v4775_v13  ;;  %5994 = vst [vmem:[#allocation71_spill] sm:$0xff] %v4970_v54 }
 0x2b9   : > { %5991 = vst [vmem:[#allocation68_spill] sm:$0xff] %v4919_v14 }
 0x2ba   : > { %v4921_v3 = vpop.f32.mrf.mxu1  ;;  %v1291_v32 = vmax.f32 %v4831_v18, %v1163_v44  ;;  %v1287_v20 = vmax.f32 %v4775_v13, %v1159_v22  ;;  %v1285_v18 = vmax.f32 %v4748_v50, %v1157_v40  ;;  %v1983_v13 = vadd.f32 %v4591_v39, %v4589_v42  ;;  %v5996_v22 = vld [vmem:[#allocation30_spill] sm:$0xff] }
 0x2bc   : > { %v1421_v50 = vpack.c.bf16 %v1287_v20, %v1285_v18  ;;  %v5999_v20 = vld [vmem:[#allocation38_spill] sm:$0xff] }
 0x2bd   : > { %v873_v43 = vpop.f32.mrf.mxu0  ;;  %v3251_v18 = vld [vmem:[%s5862_s2 + $0x18] sm:$0xf0] }
 0x2be   : > { %v1171_v23 = vmul.f32 0.2, %v873_v43  ;;  %v4913_v4 = vpop.f32.mrf.mxu2  ;;  %v2066_v25 = vpop.f32.mrf.mxu3 }
 0x2bf   : > { %v4915_v28 = vadd.f32 %v2066_v25, %v1978_v36  ;;  %v1981_v36 = vadd.f32 %v4562_v12, %v4557_v31  ;;  %v6008_v31 = vld [vmem:[#allocation16_spill] sm:$0xff] }
 0x2c0   : > { %v1299_v46 = vmax.f32 %v873_v43, %v1171_v23  ;;  %2419 = vmatmul.bf16.gmra.mxu1 %v6008_v31 }
 0x2c2   : > { %v1427_v6 = vpack.c.bf16 %v1299_v46, %v1297_v34  ;;  %v1425_v46 = vpack.c.bf16 %v1295_v59, %v1293_v26  ;;  %v4938_v12 = vpop.f32.mrf.mxu1  ;;  %v3602_v59 = vld [vmem:[%s5862_s2 + $0x1e4] sm:$0xf]  ;;  %v5995_v26 = vld [vmem:[#allocation22_spill] sm:$0xff] }
 0x2c3   : > { %2108 = vmatmul.bf16.gmra.mxu3 %v4917_v45  ;;  %2157 = vmatmul.bf16.gmra.mxu2 %v4919_v14  ;;  %v4963_v25 = vor.u32 %v3602_v59, %v3483_v30  ;;  %v1986_v39 = vadd.f32 %v5996_v22, %v5995_v26  ;;  %v3543_v59 = vld [vmem:[%s5862_s2 + $0xc] sm:$0xf]  ;;  %v4998_v30 = vpop.permute.xlu2 %1553  ;;  %v6007_v26 = vld [vmem:[#allocation7_spill] sm:$0xff] }
 0x2c4   : > { %2208 = vmatpush.bf16.msrb.mxu3 %v1427_v6  ;;  %v1423_v6 = vpack.c.bf16 %v1291_v32, %v1289_v52  ;;  %v5997_v52 = vld [vmem:[#allocation50_spill] sm:$0xff]  ;;  %6000 = vst [vmem:[#allocation30_spill] sm:$0xff] %v4998_v30  ;;  %v6021_v14 = vld [vmem:[#allocation12_spill] sm:$0xff] }
 0x2c5   : > { %5992 = vst [vmem:[#allocation69_spill] sm:$0xff] %v4963_v25 }
 0x2c6   : > { %v4933_v11 = vpop.f32.mrf.mxu2  ;;  %v2069_v34 = vpop.f32.mrf.mxu3 }
 0x2c7   : > { %v4936_v10 = vadd.f32 %v2069_v34, %v1981_v36 }
 0x2c8   : > { %2209 = vmatpush.bf16.msrb.mxu3 %v1425_v46  ;;  %2345 = vmatmul.bf16.gmra.mxu0 %v4292_v56  ;;  %v3573_v56 = vld [vmem:[%s5862_s2 + $0xf4] sm:$0xf0] }
 0x2c9   : > { %v4965_v44 = vor.u32 %v3573_v56, %v3361_v1  ;;  %v6001_v1 = vld [vmem:[#allocation25_spill] sm:$0xff]  ;;  %v6002_v56 = vld [vmem:[#allocation34_spill] sm:$0xff] }
 0x2ca   : > { %v4967_v36 = vpop.f32.mrf.mxu1 }
 0x2cb   : > { %5993 = vst [vmem:[#allocation70_spill] sm:$0xff] %v4965_v44 }
 0x2cc   : > { %2210 = vmatpush.bf16.msrb.mxu3 %v1423_v6  ;;  %v3377_v6 = vld [vmem:[%s5862_s2 + $0x108] sm:$0xf] }
 0x2ce   : > { %v4959_v43 = vpop.f32.mrf.mxu2  ;;  %v2071_v53 = vpop.f32.mrf.mxu3 }
 0x2cf   : > { %v4961_v23 = vadd.f32 %v2071_v53, %v1983_v13  ;;  %v1988_v13 = vadd.f32 %v6002_v56, %v6001_v1  ;;  %v5002_v53 = vpop.permute.xlu1 %1463  ;;  %v6009_v56 = vld [vmem:[#allocation41_spill] sm:$0xff]  ;;  %v3393_v1 = vld [vmem:[%s5862_s2 + $0x128] sm:$0xf] }
 0x2d0   : > { %2211 = vmatpush.bf16.msrb.mxu3 %v1421_v50  ;;  %6003 = vst [vmem:[#allocation50_spill] sm:$0xff] %v5002_v53  ;;  %v1951_v42 = vadd.f32 %v6007_v26, %v5002_v53  ;;  %v6012_v26 = vld [vmem:[#allocation8_spill] sm:$0xff] }
 0x2d2   : > { %v4981_v40 = vpop.f32.mrf.mxu1 }
 0x2d3   : > { %2113 = vmatmul.bf16.gmra.mxu3 %v4963_v25  ;;  %2162 = vmatmul.bf16.gmra.mxu2 %v4965_v44  ;;  %v6019_v44 = vld [vmem:[#allocation51_spill] sm:$0xff] }
 0x2d4   : > { %2212 = vmatpush.bf16.msrb.mxu3 %v4742_v37  ;;  %v3577_v37 = vld [vmem:[%s5862_s2 + $0x114] sm:$0xf0] }
 0x2d6   : > { %v4977_v34 = vpop.f32.mrf.mxu2  ;;  %v2074_v46 = vpop.f32.mrf.mxu3 }
 0x2d7   : > { %v4979_v32 = vadd.f32 %v2074_v46, %v1986_v39  ;;  %v5008_v46 = vor.u32 %v3577_v37, %v3377_v6 }
 0x2d8   : > { %2213 = vmatpush.bf16.msrb.mxu3 %v5997_v52  ;;  %2350 = vmatmul.bf16.gmra.mxu0 %v5998_v41  ;;  %v5010_v52 = vor.u32 %v3543_v59, %v3251_v18  ;;  %v5027_v18 = vpop.permute.xlu2 %1468 }
 0x2d9   : > { %6004 = vst [vmem:[#allocation9_spill] sm:$0xff] %v5008_v46  ;;  %v1953_v31 = vadd.f32 %v6012_v26, %v5027_v18 }
 0x2da   : > { %6005 = vst [vmem:[#allocation38_spill] sm:$0xff] %v5010_v52  ;;  %v5012_v41 = vpop.f32.mrf.mxu1 }
 0x2db   : > { %6010 = vst [vmem:[#allocation34_spill] sm:$0xff] %v5027_v18  ;;  %v1162_v61 = vmul.f32 0.2, %v5012_v41 }
 0x2dc   : > { %2214 = vmatpush.bf16.msrb.mxu3 %v5999_v20  ;;  %v6006_v20 = vld [vmem:[#allocation28_spill] sm:$0xff] }
 0x2dd   : > { %6014 = vst [vmem:[#allocation28_spill] sm:$0xff] %v5045_v27 }
 0x2de   : > { %v5004_v50 = vpop.f32.mrf.mxu2  ;;  %v2076_v22 = vpop.f32.mrf.mxu3 }
 0x2df   : > { %v5006_v39 = vadd.f32 %v2076_v22, %v1988_v13  ;;  %v2040_v13 = vadd.f32 %v6009_v56, %v1951_v42  ;;  %v3581_v42 = vld [vmem:[%s5862_s2 + $0x134] sm:$0xf0]  ;;  %v3547_v56 = vld [vmem:[%s5862_s2 + $0x2c] sm:$0xf] }
 0x2e0   : > { %2215 = vmatpush.bf16.msrb.mxu3 %v6006_v20  ;;  %v6011_v20 = vld [vmem:[#allocation11_spill] sm:$0xff]  ;;  %v5051_v25 = vor.u32 %v3581_v42, %v3393_v1 }
 0x2e2   : > { %v5025_v59 = vpop.f32.mrf.mxu1  ;;  %6015 = vst [vmem:[#allocation7_spill] sm:$0xff] %v5051_v25 }
 0x2e3   : > { %2167 = vmatmul.bf16.gmra.mxu2 %v5008_v46  ;;  %2216 = vmatmul.bf16.vlgmr.msrb.gmra.mxu3 %v5010_v52  ;;  %v1956_v46 = vadd.f32 %v6017_v51, %v5045_v27  ;;  %v6018_v52 = vld [vmem:[#allocation19_spill] sm:$0xff]  ;;  %v3409_v51 = vld [vmem:[%s5862_s2 + $0x148] sm:$0xf] }
 0x2e4   : > { %2424 = vmatmul.bf16.gmra.mxu1 %v6018_v52  ;;  %v3585_v52 = vld [vmem:[%s5862_s2 + $0x154] sm:$0xf0] }
 0x2e6   : > { %v5021_v22 = vpop.f32.mrf.mxu3  ;;  %v2128_v6 = vpop.f32.mrf.mxu2 }
 0x2e7   : > { %v5023_v37 = vadd.f32 %v2128_v6, %v2040_v13  ;;  %v3267_v13 = vld [vmem:[%s5862_s2 + $0x38] sm:$0xf0] }
 0x2e8   : > { %2355 = vmatmul.bf16.gmra.mxu0 %v6011_v20  ;;  %v6013_v6 = vld [vmem:[#allocation46_spill] sm:$0xff]  ;;  %v5053_v45 = vor.u32 %v3547_v56, %v3267_v13 }
 0x2e9   : > { %v2042_v20 = vadd.f32 %v6013_v6, %v1953_v31  ;;  %v1996_v31 = vadd.f32 %v6019_v44, %v4998_v30  ;;  %v6020_v6 = vld [vmem:[#allocation52_spill] sm:$0xff]  ;;  %v5071_v44 = vpop.permute.xlu0 %1558  ;;  %v5089_v30 = vor.u32 %v3585_v52, %v3409_v51 }
 0x2ea   : > { %6016 = vst [vmem:[#allocation16_spill] sm:$0xff] %v5053_v45  ;;  %v1035_v17 = vpop.f32.mrf.mxu1 }
 0x2eb   : > { %6022 = vst [vmem:[#allocation41_spill] sm:$0xff] %v5071_v44  ;;  %v1166_v52 = vmul.f32 0.2, %v1035_v17 }
 0x2ec   : > { %6024 = vst [vmem:[#allocation8_spill] sm:$0xff] %v5089_v30 }
 0x2ed   : > { %v1294_v60 = vmax.f32 %v1035_v17, %v1166_v52  ;;  %v1158_v52 = vmul.f32 0.2, %v4967_v36 }
 0x2ee   : > { %v5047_v26 = vpop.f32.mrf.mxu3  ;;  %v2130_v18 = vpop.f32.mrf.mxu2 }
 0x2ef   : > { %v5049_v53 = vadd.f32 %v2130_v18, %v2042_v20  ;;  %v2045_v18 = vadd.f32 %v6020_v6, %v1956_v46  ;;  %v3551_v46 = vld [vmem:[%s5862_s2 + $0x4c] sm:$0xf] }
 0x2f2   : > { %v1037_v13 = vpop.f32.mrf.mxu1 }
 0x2f3   : > { %2172 = vmatmul.bf16.gmra.mxu2 %v5051_v25  ;;  %2221 = vmatmul.bf16.gmra.mxu3 %v5053_v45  ;;  %v6026_v45 = vld [vmem:[#allocation27_spill] sm:$0xff] }
 0x2f4   : > { %2429 = vmatmul.bf16.gmra.mxu1 %v6026_v45 }
 0x2f6   : > { %v2084_v20 = vpop.f32.mrf.mxu3  ;;  %v2133_v1 = vpop.f32.mrf.mxu2 }
 0x2f7   : > { %v5063_v42 = vadd.f32 %v2084_v20, %v1996_v31  ;;  %v5065_v56 = vadd.f32 %v2133_v1, %v2045_v18  ;;  %v3283_v31 = vld [vmem:[%s5862_s2 + $0x58] sm:$0xf0] }
 0x2f8   : > { %2360 = vmatmul.bf16.gmra.mxu0 %v6021_v14  ;;  %v1998_v14 = vadd.f32 %v4728_v2, %v5071_v44  ;;  %v5091_v27 = vor.u32 %v3551_v46, %v3283_v31  ;;  %v1168_v46 = vmul.f32 0.2, %v1037_v13 }
 0x2fa   : > { %6025 = vst [vmem:[#allocation46_spill] sm:$0xff] %v5091_v27  ;;  %v1040_v25 = vpop.f32.mrf.mxu1 }
 0x2fb   : > { %v1170_v2 = vmul.f32 0.2, %v1040_v25 }
 0x2fe   : > { %v2086_v6 = vpop.f32.mrf.mxu3  ;;  %v2135_v18 = vpop.f32.mrf.mxu2 }
 0x2ff   : > { %v5084_v20 = vadd.f32 %v2086_v6, %v1998_v14  ;;  %v5087_v1 = vadd.f32 %v2135_v18, %v4730_v35  ;;  %v6029_v35 = vld [vmem:[#allocation60_spill] sm:$0xff]  ;;  %v1298_v18 = vmax.f32 %v1040_v25, %v1170_v2  ;;  %v3299_v2 = vld [vmem:[%s5862_s2 + $0x78] sm:$0xf0] }
 0x300   : > { %v3555_v25 = vld [vmem:[%s5862_s2 + $0x6c] sm:$0xf] }
 0x301   : > { %6023 = vst [vmem:[#allocation11_spill] sm:$0xff] %v5087_v1  ;;  %v6032_v1 = vld [vmem:[#allocation59_spill] sm:$0xff] }
 0x302   : > { %v1042_v31 = vpop.f32.mrf.mxu1 }
 0x303   : > { %2177 = vmatmul.bf16.gmra.mxu2 %v5089_v30  ;;  %2226 = vmatmul.bf16.gmra.mxu3 %v5091_v27  ;;  %v1172_v45 = vmul.f32 0.2, %v1042_v31  ;;  %v3425_v30 = vld [vmem:[%s5862_s2 + $0x168] sm:$0xf] }
 0x305   : > { %v1300_v33 = vmax.f32 %v1042_v31, %v1172_v45  ;;  %v1160_v31 = vmul.f32 0.2, %v4981_v40 }
 0x306   : > { %v2089_v14 = vpop.f32.mrf.mxu3  ;;  %v2138_v6 = vpop.f32.mrf.mxu2 }
 0x307   : > { %v5098_v44 = vadd.f32 %v2089_v14, %v2001_v16  ;;  %v5101_v51 = vadd.f32 %v2138_v6, %v6029_v35  ;;  %v3589_v16 = vld [vmem:[%s5862_s2 + $0x174] sm:$0xf0]  ;;  %v1296_v14 = vmax.f32 %v1037_v13, %v1168_v46  ;;  %v1164_v6 = vmul.f32 0.2, %v5025_v59 }
 0x308   : > { %v1428_v17 = vpack.c.bf16 %v1300_v33, %v1298_v18  ;;  %v2003_v35 = vadd.f32 %v4777_v9, %v4970_v54  ;;  %v5121_v46 = vor.u32 %v3589_v16, %v3425_v30  ;;  %v1290_v18 = vmax.f32 %v5012_v41, %v1162_v61  ;;  %v6031_v54 = vld [vmem:[#allocation35_spill] sm:$0xff] }
 0x309   : > { %6028 = vst [vmem:[#allocation10_spill] sm:$0xff] %v5098_v44  ;;  %v5128_v44 = vor.u32 %v3555_v25, %v3299_v2  ;;  %v1426_v33 = vpack.c.bf16 %v1296_v14, %v1294_v60  ;;  %v1292_v9 = vmax.f32 %v5025_v59, %v1164_v6  ;;  %2434 = vmatmul.bf16.gmra.mxu1 %v6031_v54  ;;  %v1156_v60 = vmul.f32 0.2, %v4938_v12 }
 0x30a   : > { %6030 = vst [vmem:[#allocation19_spill] sm:$0xff] %v5101_v51  ;;  %2564 = vmatpush.bf16.msra.mxu3 %v1428_v17  ;;  %v2006_v30 = vadd.f32 %v4802_v38, %v6032_v1  ;;  %v1286_v16 = vmax.f32 %v4967_v36, %v1158_v52  ;;  %v1288_v17 = vmax.f32 %v4981_v40, %v1160_v31  ;;  %v1150_v59 = vmul.f32 0.2, %v4885_v5  ;;  %v3441_v31 = vld [vmem:[%s5862_s2 + $0x188] sm:$0xf] }
 0x30b   : > { %v1424_v41 = vpack.c.bf16 %v1292_v9, %v1290_v18  ;;  %v1152_v38 = vmul.f32 0.2, %v4896_v62  ;;  %v1284_v25 = vmax.f32 %v4938_v12, %v1156_v60  ;;  %v1146_v2 = vmul.f32 0.2, %v4841_v63 }
 0x30c   : > { %v1422_v40 = vpack.c.bf16 %v1288_v17, %v1286_v16  ;;  %v1144_v18 = vmul.f32 0.2, %v4808_v49 }
 0x30d   : > { %v1280_v52 = vmax.f32 %v4896_v62, %v1152_v38  ;;  %v6033_v62 = vld [vmem:[#allocation42_spill] sm:$0xff] }
 0x30e   : > { %v2091_v45 = vpop.f32.mrf.mxu3  ;;  %v2140_v13 = vpop.f32.mrf.mxu2  ;;  %2565 = vmatpush.bf16.msra.mxu3 %v1426_v33  ;;  %v1142_v33 = vmul.f32 0.2, %v4785_v7 }
 0x30f   : > { %v5123_v27 = vadd.f32 %v2091_v45, %v2003_v35  ;;  %v5126_v51 = vadd.f32 %v2140_v13, %v4779_v29  ;;  %v1154_v29 = vmul.f32 0.2, %v4921_v3  ;;  %v1278_v35 = vmax.f32 %v4885_v5, %v1150_v59  ;;  %v3315_v5 = vld [vmem:[%s5862_s2 + $0x98] sm:$0xf0] }
 0x310   : > { %v1148_v45 = vmul.f32 0.2, %v4860_v58  ;;  %v2008_v13 = vadd.f32 %v4833_v55, %v6033_v62  ;;  %v1274_v59 = vmax.f32 %v4841_v63, %v1146_v2 }
 0x311   : > { %v1282_v6 = vmax.f32 %v4921_v3, %v1154_v29  ;;  %v3559_v3 = vld [vmem:[%s5862_s2 + $0x8c] sm:$0xf] }
 0x312   : > { %2566 = vmatpush.bf16.msra.mxu3 %v1424_v41  ;;  %v5177_v60 = vor.u32 %v3559_v3, %v3315_v5  ;;  %v1418_v41 = vpack.c.bf16 %v1280_v52, %v1278_v35  ;;  %v1276_v55 = vmax.f32 %v4860_v58, %v1148_v45  ;;  %v3331_v52 = vld [vmem:[%s5862_s2 + $0xb8] sm:$0xf0] }
 0x313   : > { %2182 = vmatmul.bf16.gmra.mxu2 %v5121_v46  ;;  %2231 = vmatmul.bf16.gmra.mxu3 %v5128_v44  ;;  %v1420_v12 = vpack.c.bf16 %v1284_v25, %v1282_v6  ;;  %v1272_v6 = vmax.f32 %v4808_v49, %v1144_v18  ;;  %v3597_v49 = vld [vmem:[%s5862_s2 + $0x1b4] sm:$0xf0]  ;;  %v6038_v18 = vld [vmem:[#allocation23_spill] sm:$0xff] }
 0x316   : > { %v2094_v61 = vpop.f32.mrf.mxu3  ;;  %v2143_v54 = vpop.f32.mrf.mxu2  ;;  %2567 = vmatpush.bf16.msra.mxu3 %v1422_v40  ;;  %v1270_v40 = vmax.f32 %v4785_v7, %v1142_v33  ;;  %v3457_v7 = vld [vmem:[%s5862_s2 + $0x1a8] sm:$0xf] }
 0x317   : > { %v5143_v14 = vadd.f32 %v2094_v61, %v2006_v30  ;;  %v5146_v36 = vadd.f32 %v2143_v54, %v4806_v57  ;;  %v3593_v57 = vld [vmem:[%s5862_s2 + $0x194] sm:$0xf0]  ;;  %v6034_v61 = vld [vmem:[#allocation47_spill] sm:$0xff]  ;;  %v6037_v33 = vld [vmem:[#allocation56_spill] sm:$0xff] }
 0x318   : > { %v5170_v16 = vor.u32 %v3593_v57, %v3441_v31  ;;  %v6035_v54 = vld [vmem:[#allocation43_spill] sm:$0xff]  ;;  %v1414_v2 = vpack.c.bf16 %v1272_v6, %v1270_v40 }
 0x319   : > { %2439 = vmatmul.bf16.gmra.mxu1 %v6034_v61  ;;  %v2011_v38 = vadd.f32 %v4856_v48, %v6035_v54  ;;  %v3563_v48 = vld [vmem:[%s5862_s2 + $0xac] sm:$0xf]  ;;  %v3347_v61 = vld [vmem:[%s5862_s2 + $0xd8] sm:$0xf0] }
 0x31a   : > { %2568 = vmatpush.bf16.msra.mxu3 %v1420_v12  ;;  %v5212_v12 = vor.u32 %v3597_v49, %v3457_v7  ;;  %v6040_v7 = vld [vmem:[#allocation32_spill] sm:$0xff] }
 0x31b   : > { %v2021_v49 = vadd.f32 %v4933_v11, %v6040_v7  ;;  %v3571_v11 = vld [vmem:[%s5862_s2 + $0xec] sm:$0xf]  ;;  %v6050_v7 = vld [vmem:[#allocation10_spill] sm:$0xff] }
 0x31e   : > { %v2096_v9 = vpop.f32.mrf.mxu3  ;;  %v2145_v30 = vpop.f32.mrf.mxu2  ;;  %2569 = vmatpush.bf16.msra.mxu3 %v1418_v41 }
 0x31f   : > { %v5172_v17 = vadd.f32 %v2096_v9, %v2008_v13  ;;  %v5175_v29 = vadd.f32 %v2145_v30, %v4835_v15  ;;  %v1416_v15 = vpack.c.bf16 %v1276_v55, %v1274_v59  ;;  %v5214_v13 = vor.u32 %v3563_v48, %v3331_v52  ;;  %v3473_v59 = vld [vmem:[%s5862_s2 + $0x1c8] sm:$0xf]  ;;  %v3601_v55 = vld [vmem:[%s5862_s2 + $0x1d4] sm:$0xf0] }
 0x320   : > { %v2016_v9 = vadd.f32 %v4892_v24, %v6038_v18  ;;  %v3567_v24 = vld [vmem:[%s5862_s2 + $0xcc] sm:$0xf] }
 0x322   : > { %2570 = vmatpush.bf16.msra.mxu3 %v1416_v15 }
 0x323   : > { %2187 = vmatmul.bf16.gmra.mxu2 %v5170_v16  ;;  %2236 = vmatmul.bf16.gmra.mxu3 %v5177_v60 }
 0x326   : > { %v2099_v25 = vpop.f32.mrf.mxu3  ;;  %v2148_v35 = vpop.f32.mrf.mxu2  ;;  %2571 = vmatpush.bf16.msra.mxu3 %v1414_v2  ;;  %v5247_v2 = vor.u32 %v3567_v24, %v3347_v61  ;;  %v6042_v24 = vld [vmem:[#allocation14_spill] sm:$0xff] }
 0x327   : > { %v5188_v63 = vadd.f32 %v2099_v25, %v2011_v38  ;;  %v5191_v58 = vadd.f32 %v2148_v35, %v4858_v47  ;;  %v6036_v47 = vld [vmem:[#allocation54_spill] sm:$0xff]  ;;  %v6039_v38 = vld [vmem:[#allocation37_spill] sm:$0xff]  ;;  %v5245_v35 = vor.u32 %v3601_v55, %v3473_v59  ;;  %v2026_v61 = vadd.f32 %v4977_v34, %v6042_v24 }
 0x328   : > { %v2013_v31 = vadd.f32 %v4877_v21, %v6036_v47  ;;  %v6043_v34 = vld [vmem:[#allocation17_spill] sm:$0xff] }
 0x329   : > { %2444 = vmatmul.bf16.gmra.mxu1 %v6037_v33 }
 0x32e   : > { %v2101_v57 = vpop.f32.mrf.mxu3  ;;  %v2150_v45 = vpop.f32.mrf.mxu2 }
 0x32f   : > { %v5207_v3 = vadd.f32 %v2101_v57, %v2013_v31  ;;  %v5210_v5 = vadd.f32 %v2150_v45, %v4879_v19  ;;  %v3489_v31 = vld [vmem:[%s5862_s2 + $0x1e8] sm:$0xf]  ;;  %v3363_v57 = vld [vmem:[%s5862_s2 + $0xf8] sm:$0xf0] }
 0x330   : > { %v6041_v45 = vld [vmem:[#allocation20_spill] sm:$0xff]  ;;  %v5280_v55 = vor.u32 %v3571_v11, %v3363_v57 }
 0x333   : > { %2192 = vmatmul.bf16.gmra.mxu2 %v5212_v12  ;;  %2241 = vmatmul.bf16.gmra.mxu3 %v5214_v13 }
 0x336   : > { %v2104_v21 = vpop.f32.mrf.mxu3  ;;  %v2153_v30 = vpop.f32.mrf.mxu2 }
 0x337   : > { %v5221_v41 = vadd.f32 %v2104_v21, %v2016_v9  ;;  %v5224_v19 = vadd.f32 %v2153_v30, %v4894_v0  ;;  %v2018_v0 = vadd.f32 %v4913_v4, %v6039_v38 }
 0x339   : > { %2449 = vmatmul.bf16.gmra.mxu1 %v4781_v8  ;;  %v3605_v8 = vld [vmem:[%s5862_s2 + $0x1f4] sm:$0xf0] }
 0x33a   : > { %v5278_v59 = vor.u32 %v3605_v8, %v3489_v31 }
 0x33e   : > { %v2106_v40 = vpop.f32.mrf.mxu3  ;;  %v2155_v6 = vpop.f32.mrf.mxu2 }
 0x33f   : > { %v5240_v15 = vadd.f32 %v2106_v40, %v2018_v0  ;;  %v5243_v25 = vadd.f32 %v2155_v6, %v4915_v28 }
 0x343   : > { %2197 = vmatmul.bf16.gmra.mxu2 %v5245_v35  ;;  %2246 = vmatmul.bf16.gmra.mxu3 %v5247_v2 }
 0x346   : > { %v2109_v4 = vpop.f32.mrf.mxu3  ;;  %v2158_v48 = vpop.f32.mrf.mxu2 }
 0x347   : > { %v5254_v52 = vadd.f32 %v2109_v4, %v2021_v49  ;;  %v5257_v28 = vadd.f32 %v2158_v48, %v4936_v10  ;;  %v2023_v10 = vadd.f32 %v4959_v43, %v6041_v45  ;;  %v3379_v49 = vld [vmem:[%s5862_s2 + $0x118] sm:$0xf0]  ;;  %v2028_v4 = vadd.f32 %v5004_v50, %v6043_v34  ;;  %v5299_v48 = vpop.permute.xlu0 %1543  ;;  %v6047_v34 = vld [vmem:[#allocation48_spill] sm:$0xff] }
 0x34e   : > { %v2111_v33 = vpop.f32.mrf.mxu3  ;;  %v2160_v9 = vpop.f32.mrf.mxu2 }
 0x34f   : > { %v5273_v21 = vadd.f32 %v2111_v33, %v2023_v10  ;;  %v5276_v30 = vadd.f32 %v2160_v9, %v4961_v23  ;;  %v3575_v23 = vld [vmem:[%s5862_s2 + $0x10c] sm:$0xf] }
 0x350   : > { %v5306_v57 = vor.u32 %v3575_v23, %v3379_v49  ;;  %v6044_v10 = vld [vmem:[#allocation40_spill] sm:$0xff] }
 0x351   : > { %v1991_v33 = vadd.f32 %v6044_v10, %v5299_v48  ;;  %v6045_v9 = vld [vmem:[#allocation36_spill] sm:$0xff] }
 0x352   : > { %v3579_v49 = vld [vmem:[%s5862_s2 + $0x12c] sm:$0xf] }
 0x353   : > { %2202 = vmatmul.bf16.gmra.mxu2 %v5278_v59  ;;  %2251 = vmatmul.bf16.gmra.mxu3 %v5280_v55  ;;  %v2080_v50 = vadd.f32 %v5021_v22, %v1991_v33 }
 0x356   : > { %v2114_v0 = vpop.f32.mrf.mxu3  ;;  %v2163_v43 = vpop.f32.mrf.mxu2 }
 0x357   : > { %v5286_v40 = vadd.f32 %v2114_v0, %v2026_v61  ;;  %v5289_v6 = vadd.f32 %v2163_v43, %v4979_v32 }
 0x35e   : > { %v2116_v31 = vpop.f32.mrf.mxu3  ;;  %v2165_v8 = vpop.f32.mrf.mxu2 }
 0x35f   : > { %v5301_v11 = vadd.f32 %v2116_v31, %v2028_v4  ;;  %v5304_v32 = vadd.f32 %v2165_v8, %v5006_v39  ;;  %v5316_v31 = vpop.permute.xlu1 %1548  ;;  %v6046_v39 = vld [vmem:[#allocation45_spill] sm:$0xff]  ;;  %v3395_v8 = vld [vmem:[%s5862_s2 + $0x138] sm:$0xf0] }
 0x360   : > { %v1993_v23 = vadd.f32 %v6046_v39, %v5316_v31 }
 0x362   : > { %v2082_v22 = vadd.f32 %v5047_v26, %v1993_v23 }
 0x363   : > { %2256 = vmatmul.bf16.gmra.mxu3 %v5306_v57  ;;  %2483 = vmatmul.bf16.vlgmr.msra.gmra.mxu2 %v6045_v9 }
 0x366   : > { %v2168_v61 = vpop.f32.mrf.mxu2  ;;  %v2217_v0 = vpop.f32.mrf.mxu3 }
 0x367   : > { %v5313_v43 = vadd.f32 %v2168_v61, %v2080_v50  ;;  %v2218_v4 = vadd.f32 %v2217_v0, %v5023_v37  ;;  %v5330_v61 = vor.u32 %v3579_v49, %v3395_v8 }
 0x369   : > { %v2653_v9 = vmul.f32 0.2, %v2218_v4 }
 0x36b   : > { %v2717_v39 = vmax.f32 %v2218_v4, %v2653_v9  ;;  %v3411_v4 = vld [vmem:[%s5862_s2 + $0x158] sm:$0xf0] }
 0x36e   : > { %v2170_v10 = vpop.f32.mrf.mxu2  ;;  %v2219_v33 = vpop.f32.mrf.mxu3 }
 0x36f   : > { %v5327_v50 = vadd.f32 %v2170_v10, %v2082_v22  ;;  %v2220_v37 = vadd.f32 %v2219_v33, %v5049_v53  ;;  %v3583_v53 = vld [vmem:[%s5862_s2 + $0x14c] sm:$0xf]  ;;  %v6048_v10 = vld [vmem:[#allocation11_spill] sm:$0xff] }
 0x371   : > { %v2655_v0 = vmul.f32 0.2, %v2220_v37 }
 0x373   : > { %v2719_v38 = vmax.f32 %v2220_v37, %v2655_v0  ;;  %2261 = vmatmul.bf16.gmra.mxu3 %v5330_v61  ;;  %2488 = vmatmul.bf16.gmra.mxu2 %v6047_v34  ;;  %v6049_v37 = vld [vmem:[#allocation57_spill] sm:$0xff] }
 0x375   : > { %v5334_v24 = vpack.c.bf16 %v2719_v38, %v2717_v39 }
 0x376   : > { %v2173_v45 = vpop.f32.mrf.mxu2  ;;  %v2222_v26 = vpop.f32.mrf.mxu3 }
 0x377   : > { %v5337_v23 = vadd.f32 %v2173_v45, %v5063_v42  ;;  %v2223_v22 = vadd.f32 %v2222_v26, %v5065_v56  ;;  %v5350_v42 = vor.u32 %v3583_v53, %v3411_v4  ;;  %v3587_v53 = vld [vmem:[%s5862_s2 + $0x16c] sm:$0xf] }
 0x379   : > { %v2657_v34 = vmul.f32 0.2, %v2223_v22 }
 0x37b   : > { %v2721_v56 = vmax.f32 %v2223_v22, %v2657_v34  ;;  %v3427_v22 = vld [vmem:[%s5862_s2 + $0x178] sm:$0xf0] }
 0x37e   : > { %v2175_v49 = vpop.f32.mrf.mxu2  ;;  %v2224_v8 = vpop.f32.mrf.mxu3 }
 0x37f   : > { %v5347_v38 = vadd.f32 %v2175_v49, %v5084_v20  ;;  %v2225_v33 = vadd.f32 %v2224_v8, %v6048_v10  ;;  %v6051_v20 = vld [vmem:[#allocation19_spill] sm:$0xff] }
 0x381   : > { %v2659_v45 = vmul.f32 0.2, %v2225_v33 }
 0x383   : > { %v2723_v9 = vmax.f32 %v2225_v33, %v2659_v45  ;;  %2266 = vmatmul.bf16.gmra.mxu3 %v5350_v42  ;;  %2493 = vmatmul.bf16.gmra.mxu2 %v6049_v37  ;;  %v6052_v37 = vld [vmem:[#allocation62_spill] sm:$0xff] }
 0x385   : > { %v5354_v0 = vpack.c.bf16 %v2723_v9, %v2721_v56 }
 0x386   : > { %v2178_v39 = vpop.f32.mrf.mxu2  ;;  %v2227_v26 = vpop.f32.mrf.mxu3 }
 0x387   : > { %v5357_v18 = vadd.f32 %v2178_v39, %v6050_v7  ;;  %v2228_v49 = vadd.f32 %v2227_v26, %v6051_v20  ;;  %v5370_v7 = vor.u32 %v3587_v53, %v3427_v22 }
 0x389   : > { %v2661_v34 = vmul.f32 0.2, %v2228_v49 }
 0x38b   : > { %v2725_v56 = vmax.f32 %v2228_v49, %v2661_v34  ;;  %v3443_v49 = vld [vmem:[%s5862_s2 + $0x198] sm:$0xf0] }
 0x38e   : > { %v2180_v4 = vpop.f32.mrf.mxu2  ;;  %v2229_v8 = vpop.f32.mrf.mxu3 }
 0x38f   : > { %v5367_v10 = vadd.f32 %v2180_v4, %v5123_v27  ;;  %v2230_v33 = vadd.f32 %v2229_v8, %v5126_v51  ;;  %v3591_v51 = vld [vmem:[%s5862_s2 + $0x18c] sm:$0xf] }
 0x391   : > { %v2663_v45 = vmul.f32 0.2, %v2230_v33 }
 0x393   : > { %v2727_v9 = vmax.f32 %v2230_v33, %v2663_v45  ;;  %2271 = vmatmul.bf16.gmra.mxu3 %v5370_v7  ;;  %2498 = vmatmul.bf16.gmra.mxu2 %v6052_v37 }
 0x395   : > { %v5374_v39 = vpack.c.bf16 %v2727_v9, %v2725_v56  ;;  %v6053_v56 = vld [vmem:[#allocation64_spill] sm:$0xff] }
 0x396   : > { %v2183_v26 = vpop.f32.mrf.mxu2  ;;  %v2232_v20 = vpop.f32.mrf.mxu3 }
 0x397   : > { %v5377_v47 = vadd.f32 %v2183_v26, %v5143_v14  ;;  %v2233_v27 = vadd.f32 %v2232_v20, %v5146_v36  ;;  %v5390_v14 = vor.u32 %v3591_v51, %v3443_v49 }
 0x399   : > { %v2665_v4 = vmul.f32 0.2, %v2233_v27 }
 0x39b   : > { %v2729_v36 = vmax.f32 %v2233_v27, %v2665_v4  ;;  %v3459_v27 = vld [vmem:[%s5862_s2 + $0x1b8] sm:$0xf0] }
 0x39e   : > { %v2185_v53 = vpop.f32.mrf.mxu2  ;;  %v2234_v22 = vpop.f32.mrf.mxu3 }
 0x39f   : > { %v5387_v8 = vadd.f32 %v2185_v53, %v5172_v17  ;;  %v2235_v34 = vadd.f32 %v2234_v22, %v5175_v29  ;;  %v3595_v29 = vld [vmem:[%s5862_s2 + $0x1ac] sm:$0xf] }
 0x3a1   : > { %v2667_v33 = vmul.f32 0.2, %v2235_v34 }
 0x3a3   : > { %v2731_v45 = vmax.f32 %v2235_v34, %v2667_v33  ;;  %2276 = vmatmul.bf16.gmra.mxu3 %v5390_v14  ;;  %2503 = vmatmul.bf16.gmra.mxu2 %v6053_v56 }
 0x3a5   : > { %v5394_v9 = vpack.c.bf16 %v2731_v45, %v2729_v36  ;;  %v6054_v36 = vld [vmem:[#allocation66_spill] sm:$0xff] }
 0x3a6   : > { %v2188_v37 = vpop.f32.mrf.mxu2  ;;  %v2237_v26 = vpop.f32.mrf.mxu3 }
 0x3a7   : > { %v5397_v20 = vadd.f32 %v2188_v37, %v5188_v63  ;;  %v2238_v17 = vadd.f32 %v2237_v26, %v5191_v58  ;;  %v5410_v63 = vor.u32 %v3595_v29, %v3459_v27 }
 0x3a9   : > { %v2669_v53 = vmul.f32 0.2, %v2238_v17 }
 0x3ab   : > { %v2733_v58 = vmax.f32 %v2238_v17, %v2669_v53  ;;  %v3475_v17 = vld [vmem:[%s5862_s2 + $0x1d8] sm:$0xf0] }
 0x3ae   : > { %v2190_v51 = vpop.f32.mrf.mxu2  ;;  %v2239_v49 = vpop.f32.mrf.mxu3 }
 0x3af   : > { %v5407_v22 = vadd.f32 %v2190_v51, %v5207_v3  ;;  %v2240_v4 = vadd.f32 %v2239_v49, %v5210_v5  ;;  %v3599_v5 = vld [vmem:[%s5862_s2 + $0x1cc] sm:$0xf] }
 0x3b1   : > { %v2671_v34 = vmul.f32 0.2, %v2240_v4 }
 0x3b3   : > { %v2735_v33 = vmax.f32 %v2240_v4, %v2671_v34  ;;  %2281 = vmatmul.bf16.gmra.mxu3 %v5410_v63  ;;  %2508 = vmatmul.bf16.gmra.mxu2 %v6054_v36 }
 0x3b5   : > { %v5414_v45 = vpack.c.bf16 %v2735_v33, %v2733_v58  ;;  %v6055_v58 = vld [vmem:[#allocation68_spill] sm:$0xff] }
 0x3b6   : > { %v2193_v56 = vpop.f32.mrf.mxu2  ;;  %v2242_v37 = vpop.f32.mrf.mxu3 }
 0x3b7   : > { %v5417_v26 = vadd.f32 %v2193_v56, %v5221_v41  ;;  %v2243_v3 = vadd.f32 %v2242_v37, %v5224_v19  ;;  %v5430_v41 = vor.u32 %v3599_v5, %v3475_v17 }
 0x3b9   : > { %v2673_v51 = vmul.f32 0.2, %v2243_v3 }
 0x3bb   : > { %v2737_v19 = vmax.f32 %v2243_v3, %v2673_v51  ;;  %v3491_v3 = vld [vmem:[%s5862_s2 + $0x1f8] sm:$0xf0] }
 0x3be   : > { %v2195_v29 = vpop.f32.mrf.mxu2  ;;  %v2244_v27 = vpop.f32.mrf.mxu3 }
 0x3bf   : > { %v5427_v49 = vadd.f32 %v2195_v29, %v5240_v15  ;;  %v2245_v53 = vadd.f32 %v2244_v27, %v5243_v25  ;;  %v3603_v25 = vld [vmem:[%s5862_s2 + $0x1ec] sm:$0xf] }
 0x3c1   : > { %v2675_v4 = vmul.f32 0.2, %v2245_v53 }
 0x3c3   : > { %v2739_v34 = vmax.f32 %v2245_v53, %v2675_v4  ;;  %2286 = vmatmul.bf16.gmra.mxu3 %v5430_v41  ;;  %2513 = vmatmul.bf16.gmra.mxu2 %v6055_v58 }
 0x3c5   : > { %v2792_v33 = vpack.c.bf16 %v2739_v34, %v2737_v19  ;;  %v6056_v19 = vld [vmem:[#allocation70_spill] sm:$0xff] }
 0x3c6   : > { %v2198_v36 = vpop.f32.mrf.mxu2  ;;  %v2247_v56 = vpop.f32.mrf.mxu3 }
 0x3c7   : > { %v5435_v37 = vadd.f32 %v2198_v36, %v5254_v52  ;;  %v2248_v15 = vadd.f32 %v2247_v56, %v5257_v28  ;;  %v5448_v52 = vor.u32 %v3603_v25, %v3491_v3 }
 0x3c9   : > { %v2677_v29 = vmul.f32 0.2, %v2248_v15 }
 0x3cb   : > { %v2741_v28 = vmax.f32 %v2248_v15, %v2677_v29 }
 0x3ce   : > { %v2200_v5 = vpop.f32.mrf.mxu2  ;;  %v2249_v17 = vpop.f32.mrf.mxu3 }
 0x3cf   : > { %v5445_v27 = vadd.f32 %v2200_v5, %v5273_v21  ;;  %v2250_v51 = vadd.f32 %v2249_v17, %v5276_v30 }
 0x3d1   : > { %v2679_v53 = vmul.f32 0.2, %v2250_v51 }
 0x3d3   : > { %v2743_v4 = vmax.f32 %v2250_v51, %v2679_v53  ;;  %2291 = vmatmul.bf16.gmra.mxu3 %v5448_v52  ;;  %2518 = vmatmul.bf16.gmra.mxu2 %v6056_v19  ;;  %v6057_v51 = vld [vmem:[#allocation38_spill] sm:$0xff]  ;;  %v6058_v53 = vld [vmem:[#allocation9_spill] sm:$0xff] }
 0x3d5   : > { %v2794_v34 = vpack.c.bf16 %v2743_v4, %v2741_v28 }
 0x3d6   : > { %v2203_v58 = vpop.f32.mrf.mxu2  ;;  %v2252_v36 = vpop.f32.mrf.mxu3 }
 0x3d7   : > { %v5453_v56 = vadd.f32 %v2203_v58, %v5286_v40  ;;  %v2253_v21 = vadd.f32 %v2252_v36, %v5289_v6  ;;  %v6059_v36 = vld [vmem:[#allocation16_spill] sm:$0xff] }
 0x3d9   : > { %v2681_v30 = vmul.f32 0.2, %v2253_v21 }
 0x3db   : > { %v2745_v17 = vmax.f32 %v2253_v21, %v2681_v30  ;;  %v6060_v21 = vld [vmem:[#allocation7_spill] sm:$0xff] }
 0x3de   : > { %v2205_v5 = vpop.f32.mrf.mxu2  ;;  %v2254_v54 = vpop.f32.mrf.mxu3 }
 0x3df   : > { %v5457_v25 = vadd.f32 %v2205_v5, %v5301_v11  ;;  %v2255_v15 = vadd.f32 %v2254_v54, %v5304_v32 }
 0x3e1   : > { %v2683_v3 = vmul.f32 0.2, %v2255_v15 }
 0x3e3   : > { %v2747_v29 = vmax.f32 %v2255_v15, %v2683_v3  ;;  %2572 = vmatmul.bf16.vlgmr.msra.gmra.mxu3 %v6057_v51  ;;  %2523 = vmatmul.bf16.gmra.mxu2 %v6058_v53  ;;  %v5474_v15 = vpop.f32.mrf.mxu0  ;;  %v5476_v3 = vpop.f32.mrf.mxu1  ;;  %v6061_v51 = vld [vmem:[#allocation46_spill] sm:$0xff] }
 0x3e5   : > { %v2796_v28 = vpack.c.bf16 %v2747_v29, %v2745_v17 }
 0x3e6   : > { %v2257_v40 = vpop.f32.mrf.mxu3 }
 0x3e7   : > { %v2258_v4 = vadd.f32 %v2257_v40, %v5313_v43  ;;  %2827 = vmatpush.bf16.msra.mxu0 %v2796_v28  ;;  %v6064_v40 = vld [vmem:[#allocation63_spill] sm:$0xff] }
 0x3e9   : > { %v2685_v19 = vmul.f32 0.2, %v2258_v4 }
 0x3eb   : > { %2828 = vmatpush.bf16.msra.mxu0 %v2794_v34  ;;  %v2749_v54 = vmax.f32 %v2258_v4, %v2685_v19  ;;  %v5484_v53 = vpop.f32.mrf.mxu0  ;;  %v5487_v28 = vpop.f32.mrf.mxu1  ;;  %2454 = vmatmul.bf16.gmra.mxu1 %v6064_v40 }
 0x3ee   : > { %v2259_v6 = vpop.f32.mrf.mxu3 }
 0x3ef   : > { %v2260_v11 = vadd.f32 %v2259_v6, %v5327_v50  ;;  %2829 = vmatpush.bf16.msra.mxu0 %v2792_v33 }
 0x3f1   : > { %v2687_v58 = vmul.f32 0.2, %v2260_v11 }
 0x3f3   : > { %v2751_v32 = vmax.f32 %v2260_v11, %v2687_v58  ;;  %2577 = vmatmul.bf16.gmra.mxu3 %v6059_v36  ;;  %2830 = vmatpush.bf16.msra.mxu0 %v5414_v45  ;;  %v2484_v11 = vpop.f32.mrf.mxu2 }
 0x3f4   : > { %2528 = vmatmul.bf16.gmra.mxu2 %v6060_v21 }
 0x3f5   : > { %v5467_v5 = vpack.c.bf16 %v2751_v32, %v2749_v54  ;;  %v5493_v54 = vpop.f32.mrf.mxu1 }
 0x3f6   : > { %v2262_v30 = vpop.f32.mrf.mxu3 }
 0x3f7   : > { %v2263_v43 = vadd.f32 %v2262_v30, %v5337_v23  ;;  %2831 = vmatpush.bf16.msra.mxu0 %v5394_v9  ;;  %v6062_v23 = vld [vmem:[#allocation8_spill] sm:$0xff] }
 0x3f9   : > { %v2689_v33 = vmul.f32 0.2, %v2263_v43 }
 0x3fb   : > { %2832 = vmatpush.bf16.msra.mxu0 %v5374_v39  ;;  %v2753_v17 = vmax.f32 %v2263_v43, %v2689_v33 }
 0x3fd   : > { %v5503_v33 = vpop.f32.mrf.mxu1 }
 0x3fe   : > { %v2264_v50 = vpop.f32.mrf.mxu3 }
 0x3ff   : > { %v2265_v34 = vadd.f32 %v2264_v50, %v5347_v38  ;;  %2833 = vmatpush.bf16.msra.mxu0 %v5354_v0  ;;  %v6063_v0 = vld [vmem:[#allocation13_spill] sm:$0xff]  ;;  %v2486_v50 = vpop.f32.mrf.mxu2 }
 0x400   : > { %2365 = vmatmul.bf16.gmra.mxu0 %v6063_v0 }
 0x401   : > { %v2691_v45 = vmul.f32 0.2, %v2265_v34 }
 0x403   : > { %v2755_v29 = vmax.f32 %v2265_v34, %v2691_v45  ;;  %2582 = vmatmul.bf16.gmra.mxu3 %v6061_v51  ;;  %2834 = vmatpush.bf16.msra.mxu0 %v5334_v24  ;;  %v5491_v24 = vpop.f32.mrf.mxu0  ;;  %v6066_v34 = vld [vmem:[#allocation65_spill] sm:$0xff] }
 0x404   : > { %2533 = vmatmul.bf16.gmra.mxu2 %v6062_v23  ;;  %2459 = vmatmul.bf16.gmra.mxu1 %v6066_v34 }
 0x405   : > { %v5481_v39 = vpack.c.bf16 %v2755_v29, %v2753_v17  ;;  %v5509_v51 = vpop.f32.mrf.mxu1 }
 0x406   : > { %v2267_v9 = vpop.f32.mrf.mxu3 }
 0x407   : > { %v2268_v38 = vadd.f32 %v2267_v9, %v5357_v18  ;;  %v2489_v23 = vpop.f32.mrf.mxu2 }
 0x409   : > { %v2693_v6 = vmul.f32 0.2, %v2268_v38 }
 0x40b   : > { %v2757_v32 = vmax.f32 %v2268_v38, %v2693_v6  ;;  %v5500_v43 = vpop.f32.mrf.mxu0 }
 0x40d   : > { %v5519_v6 = vpop.f32.mrf.mxu1 }
 0x40e   : > { %v2269_v4 = vpop.f32.mrf.mxu3 }
 0x40f   : > { %v2270_v19 = vadd.f32 %v2269_v4, %v5367_v10  ;;  %v6065_v10 = vld [vmem:[#allocation15_spill] sm:$0xff] }
 0x410   : > { %2370 = vmatmul.bf16.gmra.mxu0 %v6065_v10 }
 0x411   : > { %v2695_v58 = vmul.f32 0.2, %v2270_v19 }
 0x413   : > { %v2759_v18 = vmax.f32 %v2270_v19, %v2695_v58  ;;  %2587 = vmatmul.bf16.gmra.mxu3 %v5128_v44  ;;  %v5507_v29 = vpop.f32.mrf.mxu0  ;;  %v6068_v19 = vld [vmem:[#allocation67_spill] sm:$0xff]  ;;  %v2491_v58 = vpop.f32.mrf.mxu2 }
 0x414   : > { %2538 = vmatmul.bf16.gmra.mxu2 %v5121_v46  ;;  %2464 = vmatmul.bf16.gmra.mxu1 %v6068_v19 }
 0x415   : > { %v5497_v36 = vpack.c.bf16 %v2759_v18, %v2757_v32 }
 0x416   : > { %v2272_v21 = vpop.f32.mrf.mxu3 }
 0x417   : > { %v2273_v30 = vadd.f32 %v2272_v21, %v5377_v47 }
 0x419   : > { %v2697_v17 = vmul.f32 0.2, %v2273_v30 }
 0x41b   : > { %v2761_v47 = vmax.f32 %v2273_v30, %v2697_v17  ;;  %v5516_v4 = vpop.f32.mrf.mxu0  ;;  %v5525_v30 = vpop.f32.mrf.mxu1 }
 0x41c   : > { %v2494_v17 = vpop.f32.mrf.mxu2 }
 0x41e   : > { %v2274_v45 = vpop.f32.mrf.mxu3 }
 0x41f   : > { %v2275_v44 = vadd.f32 %v2274_v45, %v5387_v8  ;;  %v6067_v8 = vld [vmem:[#allocation18_spill] sm:$0xff] }
 0x420   : > { %2375 = vmatmul.bf16.gmra.mxu0 %v6067_v8 }
 0x421   : > { %v2699_v46 = vmul.f32 0.2, %v2275_v44 }
 0x423   : > { %v2763_v9 = vmax.f32 %v2275_v44, %v2699_v46  ;;  %2592 = vmatmul.bf16.gmra.mxu3 %v5177_v60  ;;  %v5523_v21 = vpop.f32.mrf.mxu0  ;;  %v6069_v46 = vld [vmem:[#allocation26_spill] sm:$0xff] }
 0x424   : > { %2543 = vmatmul.bf16.gmra.mxu2 %v5170_v16 }
 0x425   : > { %v5513_v38 = vpack.c.bf16 %v2763_v9, %v2761_v47  ;;  %v6070_v47 = vld [vmem:[#allocation69_spill] sm:$0xff] }
 0x426   : > { %v2277_v0 = vpop.f32.mrf.mxu3 }
 0x427   : > { %v2278_v40 = vadd.f32 %v2277_v0, %v5397_v20  ;;  %v6071_v0 = vld [vmem:[#allocation50_spill] sm:$0xff] }
 0x429   : > { %v2701_v18 = vmul.f32 0.2, %v2278_v40 }
 0x42b   : > { %v2765_v10 = vmax.f32 %v2278_v40, %v2701_v18  ;;  %v5531_v44 = vpop.f32.mrf.mxu0  ;;  %v2307_v40 = vadd.f32 %v5474_v15, %v6071_v0 }
 0x42e   : > { %v2279_v32 = vpop.f32.mrf.mxu3 }
 0x42f   : > { %v2280_v60 = vadd.f32 %v2279_v32, %v5407_v22  ;;  %v5534_v22 = vpop.f32.mrf.mxu1  ;;  %2469 = vmatmul.bf16.gmra.mxu1 %v6070_v47 }
 0x430   : > { %2380 = vmatmul.bf16.gmra.mxu0 %v6069_v46 }
 0x431   : > { %v2703_v16 = vmul.f32 0.2, %v2280_v60 }
 0x433   : > { %v2767_v20 = vmax.f32 %v2280_v60, %v2703_v16  ;;  %2597 = vmatmul.bf16.gmra.mxu3 %v5214_v13  ;;  %v2396_v13 = vadd.f32 %v5476_v3, %v2307_v40  ;;  %v5542_v18 = vpop.f32.mrf.mxu0  ;;  %v2496_v60 = vpop.f32.mrf.mxu2 }
 0x434   : > { %2548 = vmatmul.bf16.gmra.mxu2 %v5212_v12 }
 0x435   : > { %v5529_v34 = vpack.c.bf16 %v2767_v20, %v2765_v10  ;;  %v2485_v32 = vadd.f32 %v2484_v11, %v2396_v13  ;;  %v6072_v10 = vld [vmem:[#allocation34_spill] sm:$0xff]  ;;  %v6073_v13 = vld [vmem:[#allocation28_spill] sm:$0xff] }
 0x436   : > { %v2282_v45 = vpop.f32.mrf.mxu3  ;;  %v2309_v20 = vadd.f32 %v5484_v53, %v6072_v10 }
 0x437   : > { %v2283_v9 = vadd.f32 %v2282_v45, %v5417_v26  ;;  %v5546_v46 = vpop.f32.mrf.mxu1 }
 0x438   : > { %v2398_v15 = vadd.f32 %v5487_v28, %v2309_v20 }
 0x439   : > { %v2705_v8 = vmul.f32 0.2, %v2283_v9 }
 0x43a   : > { %v2487_v3 = vadd.f32 %v2486_v50, %v2398_v15 }
 0x43b   : > { %v2769_v26 = vmax.f32 %v2283_v9, %v2705_v8  ;;  %v5551_v47 = vpop.f32.mrf.mxu0  ;;  %v2499_v40 = vpop.f32.mrf.mxu2  ;;  %v2312_v9 = vadd.f32 %v5491_v24, %v6073_v13  ;;  %v6075_v13 = vld [vmem:[#allocation58_spill] sm:$0xff] }
 0x43e   : > { %v2284_v12 = vpop.f32.mrf.mxu3 }
 0x43f   : > { %v2285_v19 = vadd.f32 %v2284_v12, %v5427_v49  ;;  %v5553_v0 = vpop.f32.mrf.mxu1  ;;  %v2401_v12 = vadd.f32 %v5493_v54, %v2312_v9 }
 0x441   : > { %v2707_v16 = vmul.f32 0.2, %v2285_v19 }
 0x443   : > { %v2771_v45 = vmax.f32 %v2285_v19, %v2707_v16  ;;  %2602 = vmatmul.bf16.gmra.mxu3 %v5247_v2  ;;  %v5560_v50 = vpop.f32.mrf.mxu0  ;;  %v6074_v16 = vld [vmem:[#allocation55_spill] sm:$0xff]  ;;  %v2501_v54 = vpop.f32.mrf.mxu2 }
 0x444   : > { %2553 = vmatmul.bf16.gmra.mxu2 %v5245_v35  ;;  %v2490_v35 = vadd.f32 %v2489_v23, %v2401_v12  ;;  %v2314_v10 = vadd.f32 %v5500_v43, %v6074_v16 }
 0x445   : > { %v2808_v49 = vpack.c.bf16 %v2771_v45, %v2769_v26 }
 0x446   : > { %v2287_v11 = vpop.f32.mrf.mxu3  ;;  %v2403_v24 = vadd.f32 %v5503_v33, %v2314_v10 }
 0x447   : > { %v2288_v53 = vadd.f32 %v2287_v11, %v5435_v37  ;;  %v5564_v20 = vpop.f32.mrf.mxu1 }
 0x449   : > { %v2709_v8 = vmul.f32 0.2, %v2288_v53 }
 0x44b   : > { %v2773_v26 = vmax.f32 %v2288_v53, %v2709_v8  ;;  %v5569_v15 = vpop.f32.mrf.mxu0  ;;  %v2317_v53 = vadd.f32 %v5507_v29, %v6075_v13  ;;  %v2504_v12 = vpop.f32.mrf.mxu2 }
 0x44d   : > { %v2406_v9 = vadd.f32 %v5509_v51, %v2317_v53 }
 0x44e   : > { %v2289_v2 = vpop.f32.mrf.mxu3 }
 0x44f   : > { %v2290_v28 = vadd.f32 %v2289_v2, %v5445_v27  ;;  %v2492_v27 = vadd.f32 %v2491_v58, %v2403_v24  ;;  %v5571_v11 = vpop.f32.mrf.mxu1 }
 0x451   : > { %v2711_v19 = vmul.f32 0.2, %v2290_v28 }
 0x453   : > { %v2775_v37 = vmax.f32 %v2290_v28, %v2711_v19  ;;  %2607 = vmatmul.bf16.gmra.mxu3 %v5280_v55  ;;  %v5580_v58 = vpop.f32.mrf.mxu0  ;;  %v6076_v28 = vld [vmem:[#allocation61_spill] sm:$0xff]  ;;  %v5592_v24 = vpop.f32.mrf.mxu2 }
 0x454   : > { %2558 = vmatmul.bf16.gmra.mxu2 %v5278_v59  ;;  %v5578_v59 = vadd.f32 %v2494_v17, %v2406_v9  ;;  %v2319_v19 = vadd.f32 %v5516_v4, %v6076_v28  ;;  %v6077_v4 = vld [vmem:[#allocation33_spill] sm:$0xff] }
 0x455   : > { %v2810_v45 = vpack.c.bf16 %v2775_v37, %v2773_v26 }
 0x456   : > { %v2292_v23 = vpop.f32.mrf.mxu3  ;;  %v2408_v29 = vadd.f32 %v5519_v6, %v2319_v19 }
 0x457   : > { %v2293_v43 = vadd.f32 %v2292_v23, %v5453_v56  ;;  %v5584_v16 = vpop.f32.mrf.mxu1 }
 0x458   : > { %v5588_v26 = vadd.f32 %v2496_v60, %v2408_v29 }
 0x459   : > { %v2713_v33 = vmul.f32 0.2, %v2293_v43 }
 0x45b   : > { %v2777_v56 = vmax.f32 %v2293_v43, %v2713_v33  ;;  %v5590_v37 = vpop.f32.mrf.mxu0  ;;  %v2322_v43 = vadd.f32 %v5523_v21, %v6077_v4 }
 0x45e   : > { %v2294_v55 = vpop.f32.mrf.mxu3 }
 0x45f   : > { %v2295_v2 = vadd.f32 %v2294_v55, %v5457_v25  ;;  %v5594_v23 = vpop.f32.mrf.mxu1  ;;  %v6078_v55 = vld [vmem:[#allocation53_spill] sm:$0xff] }
 0x460   : > { %v2324_v33 = vadd.f32 %v5531_v44, %v6078_v55 }
 0x461   : > { %v2715_v8 = vmul.f32 0.2, %v2295_v2 }
 0x463   : > { %v2779_v10 = vmax.f32 %v2295_v2, %v2715_v8  ;;  %2612 = vmatmul.bf16.gmra.mxu3 %v5306_v57  ;;  %v2411_v57 = vadd.f32 %v5525_v30, %v2322_v43  ;;  %v2413_v30 = vadd.f32 %v5534_v22, %v2324_v33 }
 0x465   : > { %v2812_v51 = vpack.c.bf16 %v2779_v10, %v2777_v56  ;;  %v5599_v60 = vadd.f32 %v2499_v40, %v2411_v57  ;;  %v2781_v56 = vld [vmem:[%s5864_s4] sm:$0x3] }
 0x466   : > { %v2573_v25 = vpop.f32.mrf.mxu3  ;;  %2822 = vst [vmem:[#allocation1] ss:$9 sm:$0xff] %v2781_v56 }
 0x467   : > { %v2574_v17 = vadd.f32 %v2573_v25, %v2485_v32  ;;  %2840 = vmatpush.bf16.msra.mxu1 %v2812_v51  ;;  %v5601_v32 = vpop.f32.mrf.mxu0  ;;  %v5605_v2 = vpop.f32.mrf.mxu1 }
 0x469   : > { %v2654_v6 = vmul.f32 0.2, %v2574_v17 }
 0x46b   : > { %2841 = vmatpush.bf16.msra.mxu1 %v2810_v45  ;;  %v5607_v45 = vpop.f32.mrf.mxu2  ;;  %v2718_v8 = vmax.f32 %v2574_v17, %v2654_v6  ;;  %v6080_v17 = vld [vmem:[#allocation29_spill] sm:$0xff] }
 0x46c   : > { %v2329_v4 = vadd.f32 %v5551_v47, %v6080_v17 }
 0x46d   : > { %v5635_v43 = vld [vmem:[#allocation1] sm:$0xff] }
 0x46e   : > { %v2575_v13 = vpop.f32.mrf.mxu3  ;;  %2835 = vmatmul.bf16.vlgmr.msra.gmra.mxu0 %v5635_v43 }
 0x46f   : > { %v2576_v53 = vadd.f32 %v2575_v13, %v2487_v3  ;;  %2842 = vmatpush.bf16.msra.mxu1 %v2808_v49  ;;  %v2502_v3 = vadd.f32 %v2501_v54, %v2413_v30  ;;  %v5615_v44 = vpop.f32.mrf.mxu0  ;;  %v5617_v19 = vpop.f32.mrf.mxu1 }
 0x471   : > { %v2656_v9 = vmul.f32 0.2, %v2576_v53 }
 0x473   : > { %v2720_v21 = vmax.f32 %v2576_v53, %v2656_v9  ;;  %2617 = vmatmul.bf16.gmra.mxu3 %v5330_v61  ;;  %2843 = vmatpush.bf16.msra.mxu1 %v5529_v34  ;;  %v6079_v61 = vld [vmem:[#allocation44_spill] sm:$0xff]  ;;  %v5625_v22 = vpop.f32.mrf.mxu2 }
 0x474   : > { %v2327_v34 = vadd.f32 %v5542_v18, %v6079_v61 }
 0x475   : > { %v5612_v49 = vpack.c.bf16 %v2720_v21, %v2718_v8 }
 0x476   : > { %v2578_v40 = vpop.f32.mrf.mxu3 }
 0x477   : > { %v2579_v28 = vadd.f32 %v2578_v40, %v2490_v35  ;;  %2844 = vmatpush.bf16.msra.mxu1 %v5513_v38  ;;  %v2416_v35 = vadd.f32 %v5546_v46, %v2327_v34  ;;  %v5629_v51 = vpop.f32.mrf.mxu0  ;;  %v6082_v40 = vld [vmem:[#allocation39_spill] sm:$0xff] }
 0x479   : > { %v2658_v38 = vmul.f32 0.2, %v2579_v28  ;;  %v2505_v29 = vadd.f32 %v2504_v12, %v2416_v35 }
 0x47b   : > { %2845 = vmatpush.bf16.msra.mxu1 %v5497_v36  ;;  %v5633_v36 = vpop.f32.mrf.mxu1  ;;  %v2722_v18 = vmax.f32 %v2579_v28, %v2658_v38  ;;  %v5645_v47 = vpop.f32.mrf.mxu2 }
 0x47e   : > { %v2580_v54 = vpop.f32.mrf.mxu3 }
 0x47f   : > { %v2581_v10 = vadd.f32 %v2580_v54, %v2492_v27  ;;  %2846 = vmatpush.bf16.msra.mxu1 %v5481_v39  ;;  %v2418_v39 = vadd.f32 %v5553_v0, %v2329_v4  ;;  %v5641_v27 = vld [vmem:[#allocation1 + $0x9] sm:$0xff]  ;;  %v5649_v6 = vpop.f32.mrf.mxu0 }
 0x481   : > { %v2660_v25 = vmul.f32 0.2, %v2581_v10 }
 0x483   : > { %v2724_v46 = vmax.f32 %v2581_v10, %v2660_v25  ;;  %2622 = vmatmul.bf16.gmra.mxu3 %v5350_v42  ;;  %2847 = vmatpush.bf16.msra.mxu1 %v5467_v5  ;;  %v5651_v53 = vpop.f32.mrf.mxu1  ;;  %v6081_v42 = vld [vmem:[#allocation31_spill] sm:$0xff]  ;;  %v5659_v21 = vpop.f32.mrf.mxu2 }
 0x484   : > { %v2332_v5 = vadd.f32 %v5560_v50, %v6081_v42 }
 0x485   : > { %v5643_v12 = vpack.c.bf16 %v2724_v46, %v2722_v18  ;;  %v6084_v46 = vld [vmem:[#allocation24_spill] sm:$0xff] }
 0x486   : > { %v2583_v57 = vpop.f32.mrf.mxu3  ;;  %2848 = vmatmul.bf16.vlgmr.msra.gmra.mxu1 %v5641_v27  ;;  %v2421_v0 = vadd.f32 %v5564_v20, %v2332_v5 }
 0x487   : > { %v2584_v13 = vadd.f32 %v2583_v57, %v5578_v59  ;;  %v5657_v8 = vpop.f32.mrf.mxu0  ;;  %v2334_v59 = vadd.f32 %v5569_v15, %v6082_v40  ;;  %v6083_v15 = vld [vmem:[#allocation21_spill] sm:$0xff] }
 0x488   : > { %v2337_v10 = vadd.f32 %v5580_v58, %v6083_v15 }
 0x489   : > { %v2662_v55 = vmul.f32 0.2, %v2584_v13  ;;  %v2423_v50 = vadd.f32 %v5571_v11, %v2334_v59  ;;  %v2507_v59 = vadd.f32 %v5592_v24, %v2418_v39  ;;  %v2510_v39 = vadd.f32 %v5607_v45, %v2421_v0 }
 0x48a   : > { %v2426_v25 = vadd.f32 %v5584_v16, %v2337_v10  ;;  %v2349_v0 = vadd.f32 %v5649_v6, %v5316_v31  ;;  %v6087_v31 = vld [vmem:[#allocation30_spill] sm:$0xff] }
 0x48b   : > { %v5663_v28 = vpop.f32.mrf.mxu1  ;;  %v2726_v56 = vmax.f32 %v2584_v13, %v2662_v55  ;;  %v5674_v38 = vpop.f32.mrf.mxu2  ;;  %v2814_v13 = vld [vmem:[#allocation2] sm:$0x1]  ;;  %v2352_v6 = vadd.f32 %v5657_v8, %v6087_v31 }
 0x48c   : > { %2817 = vperm.xlu2 %3650, %v2814_v13  }
 0x48e   : > { %v2585_v9 = vpop.f32.mrf.mxu3 }
 0x48f   : > { %v2586_v33 = vadd.f32 %v2585_v9, %v5588_v26  ;;  %v5670_v35 = vpop.f32.mrf.mxu0 }
 0x491   : > { %v2664_v30 = vmul.f32 0.2, %v2586_v33 }
 0x493   : > { %v2728_v61 = vmax.f32 %v2586_v33, %v2664_v30  ;;  %2627 = vmatmul.bf16.gmra.mxu3 %v5370_v7  ;;  %v5672_v54 = vpop.f32.mrf.mxu1  ;;  %v5687_v16 = vpop.f32.mrf.mxu2 }
 0x495   : > { %v5667_v20 = vpack.c.bf16 %v2728_v61, %v2726_v56 }
 0x496   : > { %v2588_v34 = vpop.f32.mrf.mxu3 }
 0x497   : > { %v2589_v26 = vadd.f32 %v2588_v34, %v5599_v60  ;;  %v5679_v11 = vpop.f32.mrf.mxu0  ;;  %v2339_v60 = vadd.f32 %v5590_v37, %v6084_v46  ;;  %v6085_v37 = vld [vmem:[#allocation22_spill] sm:$0xff] }
 0x498   : > { %v2342_v40 = vadd.f32 %v5601_v32, %v6085_v37 }
 0x499   : > { %v2666_v7 = vmul.f32 0.2, %v2589_v26  ;;  %v2428_v58 = vadd.f32 %v5594_v23, %v2339_v60 }
 0x49b   : > { %v5683_v57 = vpop.f32.mrf.mxu1  ;;  %v2730_v42 = vmax.f32 %v2589_v26, %v2666_v7  ;;  %v2524_v56 = vpop.f32.mrf.mxu2 }
 0x49e   : > { %v2590_v17 = vpop.f32.mrf.mxu3 }
 0x49f   : > { %v2591_v4 = vadd.f32 %v2590_v17, %v2502_v3  ;;  %v5691_v33 = vpop.f32.mrf.mxu0 }
 0x4a1   : > { %v2668_v18 = vmul.f32 0.2, %v2591_v4 }
 0x4a3   : > { %v2732_v5 = vmax.f32 %v2591_v4, %v2668_v18  ;;  %2632 = vmatmul.bf16.gmra.mxu3 %v5390_v14  ;;  %v5693_v30 = vpop.f32.mrf.mxu1  ;;  %v5699_v14 = vadd.f32 %v5605_v2, %v2342_v40  ;;  %v2526_v46 = vpop.f32.mrf.mxu2 }
 0x4a5   : > { %v5689_v9 = vpack.c.bf16 %v2732_v5, %v2730_v42  ;;  %v2512_v42 = vadd.f32 %v5625_v22, %v2423_v50  ;;  %v2515_v50 = vadd.f32 %v5645_v47, %v2426_v25  ;;  %v6088_v25 = vld [vmem:[#allocation41_spill] sm:$0xff] }
 0x4a6   : > { %v2593_v3 = vpop.f32.mrf.mxu3 }
 0x4a7   : > { %v2594_v55 = vadd.f32 %v2593_v3, %v2505_v29  ;;  %v5701_v26 = vpop.f32.mrf.mxu0  ;;  %v6086_v29 = vld [vmem:[#allocation25_spill] sm:$0xff] }
 0x4a8   : > { %v2344_v10 = vadd.f32 %v5615_v44, %v6086_v29  ;;  %v2347_v44 = vadd.f32 %v5629_v51, %v5299_v48  ;;  %v2438_v48 = vadd.f32 %v5651_v53, %v2349_v0 }
 0x4a9   : > { %v2670_v61 = vmul.f32 0.2, %v2594_v55 }
 0x4aa   : > { %v2433_v24 = vadd.f32 %v5617_v19, %v2344_v10  ;;  %v2527_v22 = vadd.f32 %v2526_v46, %v2438_v48  ;;  %v2517_v10 = vadd.f32 %v5659_v21, %v2428_v58  ;;  %v2354_v46 = vadd.f32 %v5670_v35, %v6088_v25 }
 0x4ab   : > { %v5705_v17 = vpop.f32.mrf.mxu1  ;;  %v2734_v7 = vmax.f32 %v2594_v55, %v2670_v61 }
 0x4ac   : > { %v2443_v8 = vadd.f32 %v5672_v54, %v2354_v46 }
 0x4ae   : > { %v2595_v23 = vpop.f32.mrf.mxu3 }
 0x4af   : > { %v2596_v34 = vadd.f32 %v2595_v23, %v2507_v59  ;;  %v5712_v18 = vpop.f32.mrf.mxu0  ;;  %v2529_v59 = vpop.f32.mrf.mxu2 }
 0x4b1   : > { %v2672_v15 = vmul.f32 0.2, %v2596_v34 }
 0x4b3   : > { %v2736_v4 = vmax.f32 %v2596_v34, %v2672_v15  ;;  %2637 = vmatmul.bf16.gmra.mxu3 %v5410_v63  ;;  %v5714_v60 = vpop.f32.mrf.mxu1  ;;  %v2436_v63 = vadd.f32 %v5633_v36, %v2347_v44 }
 0x4b5   : > { %v5709_v32 = vpack.c.bf16 %v2736_v4, %v2734_v7  ;;  %v2525_v55 = vadd.f32 %v2524_v56, %v2436_v63 }
 0x4b6   : > { %v2598_v2 = vpop.f32.mrf.mxu3 }
 0x4b7   : > { %v2599_v13 = vadd.f32 %v2598_v2, %v2510_v39  ;;  %v5720_v37 = vpop.f32.mrf.mxu0  ;;  %v2531_v29 = vpop.f32.mrf.mxu2 }
 0x4b9   : > { %v2674_v19 = vmul.f32 0.2, %v2599_v13 }
 0x4bb   : > { %v5724_v40 = vpop.f32.mrf.mxu1  ;;  %v2738_v23 = vmax.f32 %v2599_v13, %v2674_v19 }
 0x4be   : > { %v2600_v5 = vpop.f32.mrf.mxu3 }
 0x4bf   : > { %v2601_v3 = vadd.f32 %v2600_v5, %v2512_v42  ;;  %v5729_v56 = vpop.f32.mrf.mxu0  ;;  %v2534_v63 = vpop.f32.mrf.mxu2  ;;  %v2520_v5 = vadd.f32 %v5674_v38, %v5699_v14  ;;  %v6090_v14 = vld [vmem:[#allocation71_spill] sm:$0xff] }
 0x4c1   : > { %v2676_v45 = vmul.f32 0.2, %v2601_v3 }
 0x4c3   : > { %v2740_v61 = vmax.f32 %v2601_v3, %v2676_v45  ;;  %2642 = vmatmul.bf16.gmra.mxu3 %v5430_v41  ;;  %v5731_v34 = vpop.f32.mrf.mxu1  ;;  %v2441_v41 = vadd.f32 %v5663_v28, %v2352_v6  ;;  %v2532_v28 = vadd.f32 %v2531_v29, %v2443_v8  ;;  %v6089_v45 = vld [vmem:[#allocation49_spill] sm:$0xff] }
 0x4c4   : > { %v2357_v0 = vadd.f32 %v5679_v11, %v6089_v45 }
 0x4c5   : > { %v2793_v51 = vpack.c.bf16 %v2740_v61, %v2738_v23  ;;  %v2530_v2 = vadd.f32 %v2529_v59, %v2441_v41  ;;  %v2522_v59 = vadd.f32 %v5687_v16, %v2433_v24 }
 0x4c6   : > { %v2603_v36 = vpop.f32.mrf.mxu3 }
 0x4c7   : > { %v2604_v15 = vadd.f32 %v2603_v36, %v2515_v50  ;;  %v5737_v39 = vpop.f32.mrf.mxu0  ;;  %v2536_v50 = vpop.f32.mrf.mxu2 }
 0x4c9   : > { %v2678_v53 = vmul.f32 0.2, %v2604_v15 }
 0x4cb   : > { %v5741_v13 = vpop.f32.mrf.mxu1  ;;  %v2742_v44 = vmax.f32 %v2604_v15, %v2678_v53  ;;  %v2359_v15 = vadd.f32 %v5691_v33, %v6090_v14 }
 0x4cd   : > { %v2448_v11 = vadd.f32 %v5693_v30, %v2359_v15 }
 0x4ce   : > { %v2605_v7 = vpop.f32.mrf.mxu3 }
 0x4cf   : > { %v2606_v4 = vadd.f32 %v2605_v7, %v2517_v10  ;;  %v5747_v19 = vpop.f32.mrf.mxu0  ;;  %v5762_v24 = vadd.f32 %v2536_v50, %v2448_v11  ;;  %v2539_v53 = vpop.f32.mrf.mxu2  ;;  %v6095_v11 = vld [vmem:[#allocation20_spill] sm:$0xff] }
 0x4d1   : > { %v2680_v47 = vmul.f32 0.2, %v2606_v4 }
 0x4d3   : > { %v2744_v42 = vmax.f32 %v2606_v4, %v2680_v47  ;;  %2647 = vmatmul.bf16.gmra.mxu3 %v5448_v52  ;;  %v5749_v3 = vpop.f32.mrf.mxu1  ;;  %v2446_v52 = vadd.f32 %v5683_v57, %v2357_v0  ;;  %v2362_v4 = vadd.f32 %v5701_v26, %v6032_v1 }
 0x4d5   : > { %v2795_v21 = vpack.c.bf16 %v2744_v42, %v2742_v44  ;;  %v5755_v48 = vadd.f32 %v2534_v63, %v2446_v52  ;;  %v2451_v33 = vadd.f32 %v5705_v17, %v2362_v4 }
 0x4d6   : > { %v2608_v58 = vpop.f32.mrf.mxu3 }
 0x4d7   : > { %v2609_v35 = vadd.f32 %v2608_v58, %v2520_v5  ;;  %v2376_v36 = vpop.f32.mrf.mxu0  ;;  %v5767_v30 = vadd.f32 %v2539_v53, %v2451_v33  ;;  %v2541_v26 = vpop.f32.mrf.mxu2  ;;  %v6097_v53 = vld [vmem:[#allocation17_spill] sm:$0xff] }
 0x4d9   : > { %v2682_v23 = vmul.f32 0.2, %v2609_v35 }
 0x4db   : > { %v5759_v31 = vpop.f32.mrf.mxu1  ;;  %v2746_v6 = vmax.f32 %v2609_v35, %v2682_v23 }
 0x4de   : > { %v2610_v54 = vpop.f32.mrf.mxu3 }
 0x4df   : > { %v2611_v61 = vadd.f32 %v2610_v54, %v2522_v59  ;;  %v2378_v41 = vpop.f32.mrf.mxu0  ;;  %v2544_v0 = vpop.f32.mrf.mxu2 }
 0x4e1   : > { %v2684_v38 = vmul.f32 0.2, %v2611_v61 }
 0x4e3   : > { %v2748_v29 = vmax.f32 %v2611_v61, %v2684_v38  ;;  %v2467_v7 = vpop.f32.mrf.mxu1  ;;  %v6092_v61 = vld [vmem:[#allocation54_spill] sm:$0xff] }
 0x4e5   : > { %v2797_v16 = vpack.c.bf16 %v2748_v29, %v2746_v6  ;;  %v6094_v6 = vld [vmem:[#allocation32_spill] sm:$0xff] }
 0x4e6   : > { %v2613_v57 = vpop.f32.mrf.mxu3  ;;  %v2377_v29 = vadd.f32 %v2376_v36, %v6094_v6 }
 0x4e7   : > { %v2614_v10 = vadd.f32 %v2613_v57, %v2525_v55  ;;  %2853 = vmatpush.bf16.msrb.mxu2 %v2797_v16  ;;  %v2381_v44 = vpop.f32.mrf.mxu0  ;;  %v2364_v55 = vadd.f32 %v5712_v18, %v6033_v62  ;;  %v6091_v62 = vld [vmem:[#allocation43_spill] sm:$0xff]  ;;  %v2379_v16 = vadd.f32 %v2378_v41, %v6095_v11  ;;  %v6098_v41 = vld [vmem:[#allocation37_spill] sm:$0xff] }
 0x4e8   : > { %v2367_v18 = vadd.f32 %v5720_v37, %v6091_v62  ;;  %v2369_v37 = vadd.f32 %v5729_v56, %v6092_v61  ;;  %v6096_v56 = vld [vmem:[#allocation14_spill] sm:$0xff] }
 0x4e9   : > { %v2686_v25 = vmul.f32 0.2, %v2614_v10  ;;  %v2453_v1 = vadd.f32 %v5714_v60, %v2364_v55 }
 0x4ea   : > { %v2456_v45 = vadd.f32 %v5724_v40, %v2367_v18  ;;  %v2458_v50 = vadd.f32 %v5731_v34, %v2369_v37 }
 0x4eb   : > { %2854 = vmatpush.bf16.msrb.mxu2 %v2795_v21  ;;  %v2470_v8 = vpop.f32.mrf.mxu1  ;;  %v2750_v58 = vmax.f32 %v2614_v10, %v2686_v25  ;;  %v2542_v17 = vadd.f32 %v2541_v26, %v2453_v1  ;;  %v2382_v10 = vadd.f32 %v2381_v44, %v6096_v56 }
 0x4ed   : > { %v2471_v36 = vadd.f32 %v2470_v8, %v2382_v10 }
 0x4ee   : > { %v2615_v47 = vpop.f32.mrf.mxu3 }
 0x4ef   : > { %v2616_v46 = vadd.f32 %v2615_v47, %v2527_v22  ;;  %2855 = vmatpush.bf16.msrb.mxu2 %v2793_v51  ;;  %v2383_v5 = vpop.f32.mrf.mxu0  ;;  %v2466_v47 = vadd.f32 %v5759_v31, %v2377_v29 }
 0x4f1   : > { %v2688_v42 = vmul.f32 0.2, %v2616_v46 }
 0x4f3   : > { %v2752_v63 = vmax.f32 %v2616_v46, %v2688_v42  ;;  %2856 = vmatpush.bf16.msrb.mxu2 %v5709_v32  ;;  %v2472_v35 = vpop.f32.mrf.mxu1  ;;  %v5780_v32 = vpop.permute.xlu2 %2817  ;;  %v2374_v42 = vadd.f32 %v5747_v19, %v6098_v41 }
 0x4f4   : > { %v2820_v59 = vperm.slane %v5780_v32, 0 }
 0x4f5   : > { %v5773_v21 = vpack.c.bf16 %v2752_v63, %v2750_v58  ;;  %v2463_v44 = vadd.f32 %v5749_v3, %v2374_v42 }
 0x4f6   : > { %v2618_v22 = vpop.f32.mrf.mxu3 }
 0x4f7   : > { %v2619_v51 = vadd.f32 %v2618_v22, %v2530_v2  ;;  %2857 = vmatpush.bf16.msrb.mxu2 %v5689_v9  ;;  %v2545_v2 = vadd.f32 %v2544_v0, %v2456_v45  ;;  %v2836_v9 = vpop.f32.mrf.mxu0  ;;  %v2546_v22 = vpop.f32.mrf.mxu2 }
 0x4f9   : > { %v2690_v54 = vmul.f32 0.2, %v2619_v51 }
 0x4fb   : > { %2858 = vmatpush.bf16.msrb.mxu2 %v5667_v20  ;;  %v2837_v20 = vadd.f32 %v2836_v9, %v2820_v59  ;;  %v2754_v14 = vmax.f32 %v2619_v51, %v2690_v54 }
 0x4fe   : > { %v2620_v60 = vpop.f32.mrf.mxu3 }
 0x4ff   : > { %v2621_v52 = vadd.f32 %v2620_v60, %v2532_v28  ;;  %2859 = vmatpush.bf16.msrb.mxu2 %v5643_v12  ;;  %v6093_v12 = vld [vmem:[#allocation23_spill] sm:$0xff]  ;;  %v2838_v25 = vpop.f32.mrf.mxu0  ;;  %v2549_v60 = vpop.f32.mrf.mxu2 }
 0x500   : > { %v2372_v15 = vadd.f32 %v5737_v39, %v6093_v12  ;;  %v2468_v39 = vadd.f32 %v2467_v7, %v2379_v16 }
 0x501   : > { %v2692_v23 = vmul.f32 0.2, %v2621_v52 }
 0x502   : > { %v2461_v33 = vadd.f32 %v5741_v13, %v2372_v15 }
 0x503   : > { %v2756_v40 = vmax.f32 %v2621_v52, %v2692_v23  ;;  %2860 = vmatpush.bf16.msrb.mxu2 %v5612_v49  ;;  %v2849_v38 = vpop.f32.mrf.mxu1  ;;  %v2384_v49 = vadd.f32 %v2383_v5, %v6097_v53 }
 0x504   : > { %v5790_v28 = vadd.f32 %v2849_v38, %v2837_v20 }
 0x505   : > { %v5799_v4 = vpack.c.bf16 %v2756_v40, %v2754_v14  ;;  %v2473_v46 = vadd.f32 %v2472_v35, %v2384_v49  ;;  %v2550_v40 = vadd.f32 %v2549_v60, %v2461_v33 }
 0x506   : > { %v2623_v57 = vpop.f32.mrf.mxu3  ;;  %2861 = vmatmul.bf16.vlgmr.msrb.gmra.mxu2 %v5635_v43 }
 0x507   : > { %v2624_v34 = vadd.f32 %v2623_v57, %v5755_v48  ;;  %v2551_v20 = vpop.f32.mrf.mxu2 }
 0x508   : > { %v2552_v14 = vadd.f32 %v2551_v20, %v2463_v44 }
 0x509   : > { %v2694_v58 = vmul.f32 0.2, %v2624_v34 }
 0x50b   : > { %v2851_v43 = vpop.f32.mrf.mxu1  ;;  %v2758_v48 = vmax.f32 %v2624_v34, %v2694_v58 }
 0x50e   : > { %v2625_v55 = vpop.f32.mrf.mxu3 }
 0x50f   : > { %v2626_v63 = vadd.f32 %v2625_v55, %v5762_v24  ;;  %v2547_v24 = vadd.f32 %v2546_v22, %v2458_v50 }
 0x511   : > { %v2696_v1 = vmul.f32 0.2, %v2626_v63 }
 0x513   : > { %v2760_v26 = vmax.f32 %v2626_v63, %v2696_v1 }
 0x515   : > { %v5808_v13 = vpack.c.bf16 %v2760_v26, %v2758_v48 }
 0x516   : > { %v2628_v31 = vpop.f32.mrf.mxu3 }
 0x517   : > { %v2629_v7 = vadd.f32 %v2628_v31, %v5767_v30 }
 0x519   : > { %v2698_v51 = vmul.f32 0.2, %v2629_v7 }
 0x51b   : > { %v2762_v35 = vmax.f32 %v2629_v7, %v2698_v51  ;;  %v3495_v51 = vmul.f32 -1.442695, %v5790_v28 }
 0x51d   : > { %3651 = vpow2.f32 %v3495_v51 }
 0x51e   : > { %v2630_v8 = vpop.f32.mrf.mxu3 }
 0x51f   : > { %v2631_v5 = vadd.f32 %v2630_v8, %v2542_v17  ;;  %v2554_v17 = vpop.f32.mrf.mxu2 }
 0x520   : > { %v2555_v56 = vadd.f32 %v2554_v17, %v2466_v47 }
 0x521   : > { %v2700_v19 = vmul.f32 0.2, %v2631_v5 }
 0x523   : > { %v2764_v62 = vmax.f32 %v2631_v5, %v2700_v19  ;;  %v3652_v5 = vpop.eup %3651 }
 0x525   : > { %v2805_v3 = vpack.c.bf16 %v2764_v62, %v2762_v35  ;;  %v2885_v35 = vadd.f32 1.0, %v3652_v5 }
 0x526   : > { %v2633_v18 = vpop.f32.mrf.mxu3 }
 0x527   : > { %v2634_v45 = vadd.f32 %v2633_v18, %v2545_v2  ;;  %v2556_v16 = vpop.f32.mrf.mxu2  ;;  %3653 = vrcp.f32 %v2885_v35  ;;  %vm2892_vm2 = vweird.f32 %v2885_v35 }
 0x528   : > { %v2557_v53 = vadd.f32 %v2556_v16, %v2468_v39 }
 0x529   : > { %v2702_v52 = vmul.f32 0.2, %v2634_v45 }
 0x52b   : > { %v2766_v23 = vmax.f32 %v2634_v45, %v2702_v52  ;;  %v2898_v52 = vand.u32 2147483648, %v2885_v35 }
 0x52e   : > { %v2635_v0 = vpop.f32.mrf.mxu3 }
 0x52f   : > { %v2636_v9 = vadd.f32 %v2635_v0, %v2547_v24  ;;  %v2559_v41 = vpop.f32.mrf.mxu2 }
 0x530   : > { %v2560_v58 = vadd.f32 %v2559_v41, %v2471_v36 }
 0x531   : > { %v2704_v54 = vmul.f32 0.2, %v2636_v9 }
 0x533   : > { %v2768_v61 = vmax.f32 %v2636_v9, %v2704_v54 }
 0x535   : > { %v2807_v30 = vpack.c.bf16 %v2768_v61, %v2766_v23 }
 0x536   : > { %v2638_v37 = vpop.f32.mrf.mxu3 }
 0x537   : > { %v2639_v38 = vadd.f32 %v2638_v37, %v2550_v40  ;;  %v2561_v63 = vpop.f32.mrf.mxu2  ;;  %v2922_v37 = vlaneseq  ;;  %v2899_v40 = vor.u32 1.1754944e-38, %v2898_v52 }
 0x538   : > { %v2562_v48 = vadd.f32 %v2561_v63, %v2473_v46 }
 0x539   : > { %v2706_v15 = vmul.f32 0.2, %v2639_v38  ;;  %vm2924_vm10 = vcmp.lt.s32.totalorder %v2922_v37, 256 }
 0x53b   : > { %v2770_v2 = vmax.f32 %v2639_v38, %v2706_v15 }
 0x53e   : > { %v2640_v12 = vpop.f32.mrf.mxu3 }
 0x53f   : > { %v2641_v6 = vadd.f32 %v2640_v12, %v2552_v14 }
 0x541   : > { %v2708_v29 = vmul.f32 0.2, %v2641_v6 }
 0x543   : > { %v2772_v11 = vmax.f32 %v2641_v6, %v2708_v29 }
 0x545   : > { %v2809_v50 = vpack.c.bf16 %v2772_v11, %v2770_v2 }
 0x546   : > { %v2643_v57 = vpop.f32.mrf.mxu3 }
 0x547   : > { %v2644_v10 = vadd.f32 %v2643_v57, %v2555_v56 }
 0x549   : > { %v2710_v34 = vmul.f32 0.2, %v2644_v10 }
 0x54b   : > { %v2774_v42 = vmax.f32 %v2644_v10, %v2710_v34 }
 0x54e   : > { %v2645_v49 = vpop.f32.mrf.mxu3 }
 0x54f   : > { %v2646_v25 = vadd.f32 %v2645_v49, %v2557_v53 }
 0x551   : > { %v2712_v33 = vmul.f32 0.2, %v2646_v25 }
 0x553   : > { %v2776_v43 = vmax.f32 %v2646_v25, %v2712_v33 }
 0x555   : > { %v2811_v44 = vpack.c.bf16 %v2776_v43, %v2774_v42 }
 0x556   : > { %v2648_v55 = vpop.f32.mrf.mxu3 }
 0x557   : > { %v2649_v1 = vadd.f32 %v2648_v55, %v2560_v58 }
 0x559   : > { %v2714_v31 = vmul.f32 0.2, %v2649_v1 }
 0x55b   : > { %v2778_v47 = vmax.f32 %v2649_v1, %v2714_v31 }
 0x55e   : > { %v2650_v26 = vpop.f32.mrf.mxu3 }
 0x55f   : > { %v2651_v7 = vadd.f32 %v2650_v26, %v2562_v48 }
 0x561   : > { %v2716_v8 = vmul.f32 0.2, %v2651_v7 }
 0x563   : > { %v2780_v22 = vmax.f32 %v2651_v7, %v2716_v8 }
 0x565   : > { %v2813_v39 = vpack.c.bf16 %v2780_v22, %v2778_v47 }
 0x567   : > { %2866 = vmatpush.bf16.msrb.mxu3 %v2813_v39 }
 0x56b   : > { %2867 = vmatpush.bf16.msrb.mxu3 %v2811_v44 }
 0x56f   : > { %2868 = vmatpush.bf16.msrb.mxu3 %v2809_v50 }
 0x573   : > { %2869 = vmatpush.bf16.msrb.mxu3 %v2807_v30 }
 0x577   : > { %2870 = vmatpush.bf16.msrb.mxu3 %v2805_v3 }
 0x57b   : > { %2871 = vmatpush.bf16.msrb.mxu3 %v5808_v13 }
 0x57f   : > { %2872 = vmatpush.bf16.msrb.mxu3 %v5799_v4  ;;  %v3654_v4 = vpop.eup %3653 }
 0x580   : > { %v2888_v45 = vmul.f32 %v3654_v4, %v2885_v35  ;;  %vm2893_vm3 = vweird.f32 %v3654_v4 }
 0x581   : > { %vm5821_vm5 = vmor %vm2892_vm2, %vm2893_vm3 }
 0x582   : > { %v2889_v28 = vsub.f32 1.0, %v2888_v45 }
 0x583   : > { %2873 = vmatpush.bf16.msrb.mxu3 %v5773_v21 }
 0x584   : > { %v2890_v0 = vmul.f32 %v3654_v4, %v2889_v28 }
 0x586   : > { %2874 = vmatmul.bf16.vlgmr.msrb.gmra.mxu3 %v5641_v27  ;;  %v2891_v20 = vadd.f32 %v3654_v4, %v2890_v0 }
 0x588   : > { %v2895_v17 = vsel %vm5821_vm5, %v3654_v4, %v2891_v20 }
 0x589   : > { %v2862_v36 = vpop.f32.mrf.mxu2 }
 0x58a   : > { %v2863_v19 = vadd.f32 %v2862_v36, %v2820_v59  ;;  %v2896_v59 = vand.u32 2147483647, %v2885_v35 }
 0x58c   : > { %vm2897_vm8 = vcmp.eq.f32.partialorder %v2896_v59, 8.507059e+37 }
 0x58d   : > { %v2900_v6 = vsel %vm2897_vm8, %v2899_v40, %v2895_v17 }
 0x591   : > { %v2864_v46 = vpop.f32.mrf.mxu2 }
 0x609   : > { %v2875_v62 = vpop.f32.mrf.mxu3 }
 0x60a   : > { %v2876_v3 = vadd.f32 %v2875_v62, %v2863_v19 }
 0x60c   : > { %v3496_v13 = vmul.f32 -1.442695, %v2876_v3 }
 0x60e   : > { %3655 = vpow2.f32 %v3496_v13 }
 0x611   : > { %v2877_v21 = vpop.f32.mrf.mxu3 }
 0x614   : > { %v3656_v27 = vpop.eup %3655 }
 0x615   : > { %v2886_v18 = vadd.f32 1.0, %v3656_v27 }
 0x617   : > { %3657 = vrcp.f32 %v2886_v18  ;;  %v2913_v9 = vand.u32 2147483648, %v2886_v18  ;;  %v2911_v23 = vand.u32 2147483647, %v2886_v18  ;;  %vm2907_vm6 = vweird.f32 %v2886_v18 }
 0x619   : > { %v2914_v38 = vor.u32 1.1754944e-38, %v2913_v9  ;;  %vm2912_vm9 = vcmp.eq.f32.partialorder %v2911_v23, 8.507059e+37 }
 0x61d   : > { %v3658_v60 = vpop.eup %3657 }
 0x61e   : > { %v2903_v24 = vmul.f32 %v3658_v60, %v2886_v18  ;;  %vm2908_vm4 = vweird.f32 %v3658_v60 }
 0x61f   : > { %vm2909_vm7 = vmor %vm2907_vm6, %vm2908_vm4 }
 0x620   : > { %v2904_v32 = vsub.f32 1.0, %v2903_v24 }
 0x622   : > { %v2905_v54 = vmul.f32 %v3658_v60, %v2904_v32 }
 0x624   : > { %v2906_v30 = vadd.f32 %v3658_v60, %v2905_v54 }
 0x626   : > { %v2910_v14 = vsel %vm2909_vm7, %v3658_v60, %v2906_v30 }
 0x627   : > { %v2915_v12 = vsel %vm2912_vm9, %v2914_v38, %v2910_v14 }
 0x628   : > { %v2919_v15 = vrot.slane %v2915_v12, 7 }
 0x62a   : > { %v2920_v29 = vsel %vm698_vm0, %v2900_v6, %v2919_v15 }
 0x62b   : > { %2926 = vst.msk [vmem:[%s319_s5] sm:$0x3] %vm2924_vm10, %v2920_v29 }
 0x62c   : > { %3686 = shalt.err (!%p3683_p5)
}
 0x62d   : > { %3608 = dma.vmem_to_hbm [thread:$0]  (%p3800_p6), %s2941_s21, 32, %s2943_s22, %s2928_s27  }
 0x62e PF: > { %s2954_s17 = sand.u32 1, %s3709_s23   ;;  %p3611_p7 = pnand %p3010_p9, %p3804_p8 }
 0x62f   : > { %s2955_s15 = scalar_lea.sflag [#allocation5], %s2954_s17 }
 0x630   : > { %p3612_p10 = pneg %p3611_p7 }
 0x632   : > { %3704 = dma.done.wait (%p3612_p10), %s2955_s15, 32  }
 0x633   : > { %3706 = vsyncadd (%p3612_p10), %s2955_s15, 4294967264  ;;  %p18_p11 = scmp.ge.s32.totalorder %s3785_s28, 4   ;;  %s6101_s23 = smov %s3713_s24 }
 0x634   : > { %s6102_s24 = smov %s3717_s25  ;;  %s6103_s25 = smov %s3798_s7 }
 0x635   : > { %s6104_s26 = smov %s3785_s28  ;;  %20 = sbr.rel (!%p18_p11) target bundleno = 6 (0x6), region = 122 }
 0x63a   :  { %2961 = vsyncpa [#allocation5], 1 }
 0x63b   :  { %2963 = vsyncpa [#allocation5 + $0x1], 1 }

</bundles_post_ra>
